<compile_context>
chip_gen: v7x
topology: tpu7x:2x2x1
jax: 0.10.0
libtpu: 0.0.40
codegen_flags: <defaults>
</compile_context>

<pallas_src>
import math
from functools import partial

import numpy as np
import jax
import jax.numpy as jnp
from jax.experimental import pallas as pl
from jax.experimental.pallas import tpu as pltpu


# ----------------------------------------------------------------------------
# In-kernel math helpers
# ----------------------------------------------------------------------------
_SQRT_HALF = 1.0 / math.sqrt(2.0)
_NEG_BIG = -1e30
_HEAD_ORDER = (("price", 1), ("vol", 1), ("drift", 1), ("unc", 2))


def _erf(x):
    # Abramowitz & Stegun 7.1.26 rational approximation (|err| < 1.5e-7).
    a1, a2, a3, a4, a5 = (0.254829592, -0.284496736, 1.421413741,
                          -1.453152027, 1.061405429)
    p = 0.3275911
    s = jnp.where(x < 0.0, -1.0, 1.0)
    ax = jnp.abs(x)
    t = 1.0 / (1.0 + p * ax)
    poly = ((((a5 * t + a4) * t + a3) * t + a2) * t + a1) * t
    return s * (1.0 - poly * jnp.exp(-ax * ax))


def _gelu(y):
    # exact (erf-based) GELU, matching torch.nn.functional.gelu default.
    return 0.5 * y * (1.0 + _erf(y * _SQRT_HALF))


def _sigmoid(y):
    return 1.0 / (1.0 + jnp.exp(-y))


def _softplus(y):
    return jnp.maximum(y, 0.0) + jnp.log(1.0 + jnp.exp(-jnp.abs(y)))


def _layernorm(x, g, b, eps=1e-5):
    mu = jnp.mean(x, axis=-1, keepdims=True)
    xc = x - mu
    var = jnp.mean(xc * xc, axis=-1, keepdims=True)     # biased var (PyTorch LN)
    return xc * jax.lax.rsqrt(var + eps) * g + b


# ----------------------------------------------------------------------------
# Packed-constant layout (host side & kernel side share this)
# ----------------------------------------------------------------------------
def _const_layout(F, D, dff, nhead, L, B, S):
    """Row/width layout of the single packed-constants array."""
    d2, d4 = D // 2, D // 4
    hd = 4 * d4
    rows = B * S
    entries = [
        ("pe", rows, D), ("attn_bias", rows, rows), ("pool", B, rows),
        ("grp", hd, hd), ("head_mask", nhead, D), ("act_mask", 4, 5),
        ("in_w", F, D), ("fe_w1", D, D), ("fe_w2", D, d2),
        ("in_b", 1, D), ("in_g", 1, D), ("in_beta", 1, D),
        ("fe_b1", 1, D), ("fe_g1", 1, D), ("fe_be1", 1, D),
        ("fe_b2", 1, d2), ("fe_g2", 1, d2), ("fe_be2", 1, d2),
        ("hg", 1, hd), ("hbeta", 1, hd),
    ]
    per_layer = ["n1_g", "n1_b", "q_b", "k_b", "v_b", "out_b",
                 "n2_g", "n2_b", "ff_b1", "ff_b2"]
    widths = {"ff_b1": dff}
    for l in range(L):
        for nm in per_layer:
            entries.append((f"{nm}_{l}", 1, widths.get(nm, D)))

    layout, off = {}, 0
    for name, r, w in entries:
        layout[name] = (off, r, w)
        off += ((r + 7) // 8) * 8          # every section 8-row aligned
    width = max(w for _, _, w in entries)
    return layout, off, width


# ----------------------------------------------------------------------------
# The single fused forward kernel
# ----------------------------------------------------------------------------
def _fused_forward_kernel(x_ref, c_ref, lw_ref, hw1_ref, hb1_ref, hw2_ref,
                          hb2_ref, o_ref, *, layout, D, dff, nhead,
                          num_layers, B, S):
    f32 = jnp.float32
    rows = B * S

    def cv(name):
        off, r, w = layout[name]
        return c_ref[off:off + r, 0:w]      # static ref slice -> one clean load

    # ---- input projection -> LayerNorm -> + positional encoding ----
    h = jnp.dot(x_ref[...], cv("in_w"), preferred_element_type=f32) + cv("in_b")
    h = _layernorm(h, cv("in_g"), cv("in_beta"))
    h = h + cv("pe")

    # Constants hoisted once (host precomputed, no in-kernel iota / int div).
    attn_bias = cv("attn_bias")                                   # (rows, rows)
    hm_off, _, _ = layout["head_mask"]
    head_masks = [c_ref[hm_off + i:hm_off + i + 1, 0:D] for i in range(nhead)]

    for l in range(num_layers):
        wq = lw_ref[l, 0:D, 0:D]                   # 1/sqrt(dh) folded host-side
        wk = lw_ref[l, D:2 * D, 0:D]
        wv = lw_ref[l, 2 * D:3 * D, 0:D]
        wo = lw_ref[l, 3 * D:4 * D, 0:D]
        w1 = lw_ref[l, 4 * D:5 * D, 0:dff]
        w2 = lw_ref[l, 5 * D:5 * D + dff, 0:D]

        # --- pre-norm self-attention block ---
        xn = _layernorm(h, cv(f"n1_g_{l}"), cv(f"n1_b_{l}"))
        q = jnp.dot(xn, wq, preferred_element_type=f32) + cv(f"q_b_{l}")
        k = jnp.dot(xn, wk, preferred_element_type=f32) + cv(f"k_b_{l}")
        v = jnp.dot(xn, wv, preferred_element_type=f32) + cv(f"v_b_{l}")

        attn = jnp.zeros((rows, D), f32)
        for hh in range(nhead):
            m_h = head_masks[hh]                                  # (1, D)
            # lane-masked full-width Q x full-width K^T == per-head scores
            s = jax.lax.dot_general(q * m_h, k, (((1,), (1,)), ((), ())),
                                    preferred_element_type=f32) + attn_bias
            p = jnp.exp(s - jnp.max(s, axis=-1, keepdims=True))
            p = p / jnp.sum(p, axis=-1, keepdims=True)            # exact divide
            o_h = jnp.dot(p, v, preferred_element_type=f32)       # head lanes valid
            attn = attn + o_h * m_h
        # single output projection per layer (was 4 per-head matmuls)
        h = h + jnp.dot(attn, wo, preferred_element_type=f32) + cv(f"out_b_{l}")

        # --- pre-norm feed-forward block ---
        xn2 = _layernorm(h, cv(f"n2_g_{l}"), cv(f"n2_b_{l}"))
        ff = _gelu(jnp.dot(xn2, w1, preferred_element_type=f32) + cv(f"ff_b1_{l}"))
        h = h + jnp.dot(ff, w2, preferred_element_type=f32) + cv(f"ff_b2_{l}")

    # ---- mean pool over sequence via precomputed (B, B*S) pooling matrix ----
    g = jnp.dot(cv("pool"), h, preferred_element_type=f32)        # (B, D)

    # ---- feature extractor: Linear -> LN -> GELU, twice (dropout = identity) ----
    f = jnp.dot(g, cv("fe_w1"), preferred_element_type=f32) + cv("fe_b1")
    f = _gelu(_layernorm(f, cv("fe_g1"), cv("fe_be1")))
    f = jnp.dot(f, cv("fe_w2"), preferred_element_type=f32) + cv("fe_b2")
    f = _gelu(_layernorm(f, cv("fe_g2"), cv("fe_be2")))           # (B, D//2)

    # ---- four Bayesian heads fused (concat first linears, block-diag second) ----
    h1 = jnp.dot(f, hw1_ref[...], preferred_element_type=f32) + hb1_ref[...]
    grp = cv("grp")                          # per-head group-averaging matrix
    mu = jnp.dot(h1, grp, preferred_element_type=f32)
    xc = h1 - mu
    var = jnp.dot(xc * xc, grp, preferred_element_type=f32)
    h1 = _gelu(xc * jax.lax.rsqrt(var + 1e-5) * cv("hg") + cv("hbeta"))
    y = jnp.dot(h1, hw2_ref[...], preferred_element_type=f32) + hb2_ref[...]  # (B, 5)

    # per-column activation: [price id | vol sigmoid | drift tanh | unc softplus x2]
    ao, _, aw = layout["act_mask"]
    y = (y * c_ref[ao + 0:ao + 1, 0:aw]
         + _sigmoid(y) * c_ref[ao + 1:ao + 2, 0:aw]
         + jnp.tanh(y) * c_ref[ao + 2:ao + 3, 0:aw]
         + _softplus(y) * c_ref[ao + 3:ao + 4, 0:aw])
    o_ref[...] = y


# ----------------------------------------------------------------------------
# Parameter construction (deterministic, synthetic)
# ----------------------------------------------------------------------------
def _xavier(key, fan_in, fan_out, gain=0.5):
    bound = gain * math.sqrt(6.0 / (fan_in + fan_out))
    return jax.random.uniform(key, (fan_in, fan_out), jnp.float32, -bound, bound)


def _init_bayesian_linear(key, fan_in, fan_out, posterior_std_init=0.1):
    return {
        "w_mu": _xavier(key, fan_in, fan_out),
        "w_log_std": jnp.full((fan_in, fan_out), math.log(posterior_std_init),
                              jnp.float32),
        "b_mu": jnp.zeros((1, fan_out), jnp.float32),
        "b_log_std": jnp.full((1, fan_out), math.log(posterior_std_init),
                              jnp.float32),
    }


def positional_encoding(d_model, max_len):
    position = jnp.arange(max_len, dtype=jnp.float32)[:, None]
    div_term = jnp.exp(jnp.arange(0, d_model, 2, dtype=jnp.float32)
                       * (-math.log(10000.0) / d_model))
    pe = jnp.zeros((max_len, d_model), jnp.float32)
    pe = pe.at[:, 0::2].set(jnp.sin(position * div_term))
    pe = pe.at[:, 1::2].set(jnp.cos(position * div_term))
    return pe


def init_params(key, input_size, d_model, nhead, num_layers, dff, max_seq_len):
    d2, d4 = d_model // 2, d_model // 4
    keys = iter(jax.random.split(key, 64))
    nk = lambda: next(keys)

    params = {
        "in_proj_w": _xavier(nk(), input_size, d_model),
        "in_proj_b": jnp.zeros((1, d_model), jnp.float32),
        "in_norm_g": jnp.ones((1, d_model), jnp.float32),
        "in_norm_b": jnp.zeros((1, d_model), jnp.float32),
        "pe": positional_encoding(d_model, max_seq_len),
    }
    layers = []
    for _ in range(num_layers):
        layers.append({
            "norm1_g": jnp.ones((1, d_model), jnp.float32),
            "norm1_b": jnp.zeros((1, d_model), jnp.float32),
            "norm2_g": jnp.ones((1, d_model), jnp.float32),
            "norm2_b": jnp.zeros((1, d_model), jnp.float32),
            "attn_in_w": _xavier(nk(), d_model, 3 * d_model),
            "attn_in_b": jnp.zeros((1, 3 * d_model), jnp.float32),
            "attn_out_w": _xavier(nk(), d_model, d_model),
            "attn_out_b": jnp.zeros((1, d_model), jnp.float32),
            "ff_w1": _xavier(nk(), d_model, dff),
            "ff_b1": jnp.zeros((1, dff), jnp.float32),
            "ff_w2": _xavier(nk(), dff, d_model),
            "ff_b2": jnp.zeros((1, d_model), jnp.float32),
        })
    params["layers"] = layers

    params["fe_w1"] = _xavier(nk(), d_model, d_model)
    params["fe_b1"] = jnp.zeros((1, d_model), jnp.float32)
    params["fe_ln1_g"] = jnp.ones((1, d_model), jnp.float32)
    params["fe_ln1_b"] = jnp.zeros((1, d_model), jnp.float32)
    params["fe_w2"] = _xavier(nk(), d_model, d2)
    params["fe_b2"] = jnp.zeros((1, d2), jnp.float32)
    params["fe_ln2_g"] = jnp.ones((1, d2), jnp.float32)
    params["fe_ln2_b"] = jnp.zeros((1, d2), jnp.float32)

    def head(out_dim):
        return {
            "bl1": _init_bayesian_linear(nk(), d2, d4),
            "ln_g": jnp.ones((1, d4), jnp.float32),
            "ln_b": jnp.zeros((1, d4), jnp.float32),
            "bl2": _init_bayesian_linear(nk(), d4, out_dim),
        }

    params["price"] = head(1)
    params["vol"] = head(1)
    params["drift"] = head(1)
    params["unc"] = head(2)
    return params


# ----------------------------------------------------------------------------
# One-time host-side packing (runs once at setup; zero per-call glue)
# ----------------------------------------------------------------------------
def pack_static(params, B, S, nhead):
    F, D = params["in_proj_w"].shape
    dff = params["layers"][0]["ff_w1"].shape[1]
    L = len(params["layers"])
    d2, d4 = D // 2, D // 4
    hd = 4 * d4
    rows = B * S
    dh = D // nhead
    scale = 1.0 / math.sqrt(dh)
    assert D % nhead == 0 and D % 8 == 0 and dff % 8 == 0

    layout, total_rows, width = _const_layout(F, D, dff, nhead, L, B, S)
    cp = np.zeros((total_rows, width), np.float32)

    def put(name, arr):
        off, r, w = layout[name]
        cp[off:off + r, 0:w] = np.asarray(arr, np.float32).reshape(r, w)

    # --- precomputed constant matrices (previously built in-kernel) ---
    put("pe", np.tile(np.asarray(params["pe"])[:S], (B, 1)))
    same_b = (np.arange(rows)[:, None] // S) == (np.arange(rows)[None, :] // S)
    put("attn_bias", np.where(same_b, 0.0, _NEG_BIG))
    put("pool", np.where(np.arange(B)[:, None] == np.arange(rows)[None, :] // S,
                         1.0 / S, 0.0))
    gidx = np.arange(hd) // d4
    put("grp", np.where(gidx[:, None] == gidx[None, :], 1.0 / d4, 0.0))
    put("head_mask",
        (np.arange(D)[None, :] // dh == np.arange(nhead)[:, None]).astype(np.float32))
    am = np.zeros((4, 5), np.float32)
    am[0, 0] = am[1, 1] = am[2, 2] = am[3, 3] = am[3, 4] = 1.0
    put("act_mask", am)

    # --- small weights / vectors ---
    put("in_w", params["in_proj_w"])
    put("fe_w1", params["fe_w1"])
    put("fe_w2", params["fe_w2"])
    put("in_b", params["in_proj_b"]); put("in_g", params["in_norm_g"])
    put("in_beta", params["in_norm_b"])
    put("fe_b1", params["fe_b1"]); put("fe_g1", params["fe_ln1_g"])
    put("fe_be1", params["fe_ln1_b"])
    put("fe_b2", params["fe_b2"]); put("fe_g2", params["fe_ln2_g"])
    put("fe_be2", params["fe_ln2_b"])
    put("hg", np.concatenate([np.asarray(params[n]["ln_g"]) for n, _ in _HEAD_ORDER], 1))
    put("hbeta", np.concatenate([np.asarray(params[n]["ln_b"]) for n, _ in _HEAD_ORDER], 1))

    for l, lp in enumerate(params["layers"]):
        b_in = np.asarray(lp["attn_in_b"]).reshape(3 * D)
        put(f"n1_g_{l}", lp["norm1_g"]); put(f"n1_b_{l}", lp["norm1_b"])
        put(f"q_b_{l}", b_in[0:D] * scale)           # score scale folded into b_q
        put(f"k_b_{l}", b_in[D:2 * D])
        put(f"v_b_{l}", b_in[2 * D:3 * D])
        put(f"out_b_{l}", lp["attn_out_b"])
        put(f"n2_g_{l}", lp["norm2_g"]); put(f"n2_b_{l}", lp["norm2_b"])
        put(f"ff_b1_{l}", lp["ff_b1"]); put(f"ff_b2_{l}", lp["ff_b2"])

    # --- stacked per-layer matmul weights: one (L, 5D+dff, max(D,dff)) array ---
    lw = np.zeros((L, 5 * D + dff, max(D, dff)), np.float32)
    for l, lp in enumerate(params["layers"]):
        w_in = np.asarray(lp["attn_in_w"])                       # (D, 3D)
        lw[l, 0:D, 0:D] = w_in[:, 0:D] * scale                   # Wq (scale folded)
        lw[l, D:2 * D, 0:D] = w_in[:, D:2 * D]                   # Wk
        lw[l, 2 * D:3 * D, 0:D] = w_in[:, 2 * D:3 * D]           # Wv
        lw[l, 3 * D:4 * D, 0:D] = np.asarray(lp["attn_out_w"])
        lw[l, 4 * D:5 * D, 0:dff] = np.asarray(lp["ff_w1"])
        lw[l, 5 * D:5 * D + dff, 0:D] = np.asarray(lp["ff_w2"])

    # --- Bayesian heads: concat first linears, block-diagonal second linears ---
    total_out = sum(od for _, od in _HEAD_ORDER)                 # 5
    hw1_mu = np.concatenate([np.asarray(params[n]["bl1"]["w_mu"]) for n, _ in _HEAD_ORDER], 1)
    hw1_std = np.concatenate([np.exp(np.asarray(params[n]["bl1"]["w_log_std"]))
                              for n, _ in _HEAD_ORDER], 1)
    hb1_mu = np.concatenate([np.asarray(params[n]["bl1"]["b_mu"]) for n, _ in _HEAD_ORDER], 1)
    hb1_std = np.concatenate([np.exp(np.asarray(params[n]["bl1"]["b_log_std"]))
                              for n, _ in _HEAD_ORDER], 1)
    hw2_mu = np.zeros((hd, total_out), np.float32)
    hw2_std = np.zeros((hd, total_out), np.float32)              # std 0 off-block
    hb2_mu = np.zeros((1, total_out), np.float32)
    hb2_std = np.zeros((1, total_out), np.float32)
    col = 0
    for i, (n, od) in enumerate(_HEAD_ORDER):
        hw2_mu[i * d4:(i + 1) * d4, col:col + od] = np.asarray(params[n]["bl2"]["w_mu"])
        hw2_std[i * d4:(i + 1) * d4, col:col + od] = np.exp(np.asarray(params[n]["bl2"]["w_log_std"]))
        hb2_mu[:, col:col + od] = np.asarray(params[n]["bl2"]["b_mu"])
        hb2_std[:, col:col + od] = np.exp(np.asarray(params[n]["bl2"]["b_log_std"]))
        col += od

    return {
        "const": jnp.asarray(cp),
        "layer_w": jnp.asarray(lw),
        "hw1_mu": jnp.asarray(hw1_mu), "hw1_std": jnp.asarray(hw1_std),
        "hb1_mu": jnp.asarray(hb1_mu), "hb1_std": jnp.asarray(hb1_std),
        "hw2_mu": jnp.asarray(hw2_mu), "hw2_std": jnp.asarray(hw2_std),
        "hb2_mu": jnp.asarray(hb2_mu), "hb2_std": jnp.asarray(hb2_std),
    }


# ----------------------------------------------------------------------------
# Forward pass: 4 tiny sampling ops + one fused pallas_call
# ----------------------------------------------------------------------------
@partial(jax.jit, static_argnames=("d_model", "dff", "nhead", "num_layers", "sample"))
def forward(packed, x, key, *, d_model, dff, nhead, num_layers, sample=True):
    B, S, F = x.shape
    layout, _, _ = _const_layout(F, d_model, dff, nhead, num_layers, B, S)
    x2d = x.reshape(B * S, F)

    # TODO(synk): Bayesian reparameterization sampling stays in plain JAX
    # (mu + std*eps, std precomputed); in-kernel pltpu.prng_* would need an
    # in-kernel Box-Muller and buys nothing at these sizes.
    if sample:
        k1, k2, k3, k4 = jax.random.split(key, 4)
        hw1 = packed["hw1_mu"] + packed["hw1_std"] * jax.random.normal(k1, packed["hw1_mu"].shape)
        hb1 = packed["hb1_mu"] + packed["hb1_std"] * jax.random.normal(k2, packed["hb1_mu"].shape)
        hw2 = packed["hw2_mu"] + packed["hw2_std"] * jax.random.normal(k3, packed["hw2_mu"].shape)
        hb2 = packed["hb2_mu"] + packed["hb2_std"] * jax.random.normal(k4, packed["hb2_mu"].shape)
    else:
        hw1, hb1, hw2, hb2 = (packed["hw1_mu"], packed["hb1_mu"],
                              packed["hw2_mu"], packed["hb2_mu"])

    vmem = pl.BlockSpec(memory_space=pltpu.MemorySpace.VMEM)
    out = pl.pallas_call(
        partial(_fused_forward_kernel, layout=layout, D=d_model, dff=dff,
                nhead=nhead, num_layers=num_layers, B=B, S=S),
        out_shape=jax.ShapeDtypeStruct((B, 5), jnp.float32),
        in_specs=[vmem] * 7,
        out_specs=vmem,
    )(x2d, packed["const"], packed["layer_w"], hw1, hb1, hw2, hb2)

    price = out[:, 0:1]
    vol = out[:, 1:2]
    drift = out[:, 2:3]
    aleatoric = out[:, 3:4]
    epistemic = out[:, 4:5]
    return price, vol, drift, aleatoric, epistemic


# ----------------------------------------------------------------------------
# Entry point
# ----------------------------------------------------------------------------
if __name__ == "__main__":
    B, S, FEAT = 2, 8, 8          # batch, seq, input features
    D_MODEL, NHEAD, NLAYERS, DFF = 32, 4, 2, 64

    key = jax.random.PRNGKey(0)
    pkey, xkey, skey = jax.random.split(key, 3)

    params = init_params(pkey, FEAT, D_MODEL, NHEAD, NLAYERS, DFF,
                         max_seq_len=100)
    packed = pack_static(params, B, S, NHEAD)      # one-time host packing
    x = jax.random.normal(xkey, (B, S, FEAT), jnp.float32)

    outs = forward(packed, x, skey, d_model=D_MODEL, dff=DFF, nhead=NHEAD,
                   num_layers=NLAYERS, sample=True)
    outs = jax.block_until_ready(outs)

    price, vol, drift, aleatoric, epistemic = outs
    assert price.shape == (B, 1)
    assert vol.shape == (B, 1)
    assert drift.shape == (B, 1)
    assert aleatoric.shape == (B, 1)
    assert epistemic.shape == (B, 1)
    assert all(bool(jnp.all(jnp.isfinite(o))) for o in outs)
    assert bool(jnp.all(vol >= 0.0)) and bool(jnp.all(vol <= 1.0))
    assert bool(jnp.all(jnp.abs(drift) <= 1.0))
    assert bool(jnp.all(aleatoric >= 0.0)) and bool(jnp.all(epistemic >= 0.0))

    print("KERNEL_OK")
</pallas_src>

<mosaic_0001>
module attributes {stable_mosaic.version = 11 : i64} {
  func.func @_fused_forward_kernel(%arg0: memref<16x8xf32, #tpu.memory_space<vmem>>, %arg1: memref<408x64xf32, #tpu.memory_space<vmem>>, %arg2: memref<2x224x64xf32, #tpu.memory_space<vmem>>, %arg3: memref<16x32xf32, #tpu.memory_space<vmem>>, %arg4: memref<1x32xf32, #tpu.memory_space<vmem>>, %arg5: memref<32x5xf32, #tpu.memory_space<vmem>>, %arg6: memref<1x5xf32, #tpu.memory_space<vmem>>, %arg7: memref<2x5xf32, #tpu.memory_space<vmem>>) attributes {dimension_semantics = [], scalar_prefetch = 0 : i64, scratch_operands = 0 : i64, tpu.core_type = #tpu.core_type<tc>} {
    %c0 = arith.constant 0 : index
    %c0_0 = arith.constant 0 : index
    %0 = vector.load %arg0[%c0, %c0_0] : memref<16x8xf32, #tpu.memory_space<vmem>>, vector<16x8xf32>
    %c88 = arith.constant 88 : index
    %c0_1 = arith.constant 0 : index
    %1 = vector.load %arg1[%c88, %c0_1] : memref<408x64xf32, #tpu.memory_space<vmem>>, vector<8x32xf32>
    %cst = arith.constant dense<0.000000e+00> : vector<16x32xf32>
    %2 = tpu.matmul %0, %1, %cst {dimension_numbers = #tpu.dot_dimension_numbers<[1], [0], [0], [1], [0, 0, 1, 1], [], []>} : vector<16x8xf32>, vector<8x32xf32>, vector<16x32xf32> -> vector<16x32xf32>
    %c160 = arith.constant 160 : index
    %c0_2 = arith.constant 0 : index
    %3 = vector.load %arg1[%c160, %c0_2] : memref<408x64xf32, #tpu.memory_space<vmem>>, vector<1x32xf32>
    %4 = vector.broadcast %3 : vector<1x32xf32> to vector<16x32xf32>
    %5 = arith.addf %2, %4 : vector<16x32xf32>
    %c168 = arith.constant 168 : index
    %c0_3 = arith.constant 0 : index
    %6 = vector.load %arg1[%c168, %c0_3] : memref<408x64xf32, #tpu.memory_space<vmem>>, vector<1x32xf32>
    %c176 = arith.constant 176 : index
    %c0_4 = arith.constant 0 : index
    %7 = vector.load %arg1[%c176, %c0_4] : memref<408x64xf32, #tpu.memory_space<vmem>>, vector<1x32xf32>
    %cst_5 = arith.constant dense<0.000000e+00> : vector<16xf32>
    %8 = vector.multi_reduction <add>, %5, %cst_5 [1] : vector<16x32xf32> to vector<16xf32>
    %9 = vector.shape_cast %8 : vector<16xf32> to vector<16x1xf32>
    %cst_6 = arith.constant 3.200000e+01 : f32
    %10 = vector.broadcast %cst_6 : f32 to vector<16x1xf32>
    %11 = arith.divf %9, %10 : vector<16x1xf32>
    %12 = vector.broadcast %11 : vector<16x1xf32> to vector<16x32xf32>
    %13 = arith.subf %5, %12 : vector<16x32xf32>
    %14 = arith.mulf %13, %13 : vector<16x32xf32>
    %cst_7 = arith.constant dense<0.000000e+00> : vector<16xf32>
    %15 = vector.multi_reduction <add>, %14, %cst_7 [1] : vector<16x32xf32> to vector<16xf32>
    %16 = vector.shape_cast %15 : vector<16xf32> to vector<16x1xf32>
    %cst_8 = arith.constant 3.200000e+01 : f32
    %17 = vector.broadcast %cst_8 : f32 to vector<16x1xf32>
    %18 = arith.divf %16, %17 : vector<16x1xf32>
    %cst_9 = arith.constant 9.99999974E-6 : f32
    %19 = vector.broadcast %cst_9 : f32 to vector<16x1xf32>
    %20 = arith.addf %18, %19 : vector<16x1xf32>
    %21 = math.rsqrt %20 : vector<16x1xf32>
    %22 = vector.broadcast %21 : vector<16x1xf32> to vector<16x32xf32>
    %23 = arith.mulf %13, %22 : vector<16x32xf32>
    %24 = vector.broadcast %6 : vector<1x32xf32> to vector<16x32xf32>
    %25 = arith.mulf %23, %24 : vector<16x32xf32>
    %26 = vector.broadcast %7 : vector<1x32xf32> to vector<16x32xf32>
    %27 = arith.addf %25, %26 : vector<16x32xf32>
    %c0_10 = arith.constant 0 : index
    %c0_11 = arith.constant 0 : index
    %28 = vector.load %arg1[%c0_10, %c0_11] : memref<408x64xf32, #tpu.memory_space<vmem>>, vector<16x32xf32>
    %29 = arith.addf %27, %28 : vector<16x32xf32>
    %c16 = arith.constant 16 : index
    %c0_12 = arith.constant 0 : index
    %30 = vector.load %arg1[%c16, %c0_12] : memref<408x64xf32, #tpu.memory_space<vmem>>, vector<16x16xf32>
    %c72 = arith.constant 72 : index
    %c0_13 = arith.constant 0 : index
    %31 = vector.load %arg1[%c72, %c0_13] : memref<408x64xf32, #tpu.memory_space<vmem>>, vector<1x32xf32>
    %c73 = arith.constant 73 : index
    %c0_14 = arith.constant 0 : index
    %32 = vector.load %arg1[%c73, %c0_14] : memref<408x64xf32, #tpu.memory_space<vmem>>, vector<1x32xf32>
    %c74 = arith.constant 74 : index
    %c0_15 = arith.constant 0 : index
    %33 = vector.load %arg1[%c74, %c0_15] : memref<408x64xf32, #tpu.memory_space<vmem>>, vector<1x32xf32>
    %c75 = arith.constant 75 : index
    %c0_16 = arith.constant 0 : index
    %34 = vector.load %arg1[%c75, %c0_16] : memref<408x64xf32, #tpu.memory_space<vmem>>, vector<1x32xf32>
    %c0_17 = arith.constant 0 : index
    %c0_18 = arith.constant 0 : index
    %c0_19 = arith.constant 0 : index
    %35 = vector.load %arg2[%c0_17, %c0_18, %c0_19] : memref<2x224x64xf32, #tpu.memory_space<vmem>>, vector<1x32x32xf32>
    %36 = vector.shape_cast %35 : vector<1x32x32xf32> to vector<32x32xf32>
    %c0_20 = arith.constant 0 : index
    %c32 = arith.constant 32 : index
    %c0_21 = arith.constant 0 : index
    %37 = vector.load %arg2[%c0_20, %c32, %c0_21] : memref<2x224x64xf32, #tpu.memory_space<vmem>>, vector<1x32x32xf32>
    %38 = vector.shape_cast %37 : vector<1x32x32xf32> to vector<32x32xf32>
    %c0_22 = arith.constant 0 : index
    %c64 = arith.constant 64 : index
    %c0_23 = arith.constant 0 : index
    %39 = vector.load %arg2[%c0_22, %c64, %c0_23] : memref<2x224x64xf32, #tpu.memory_space<vmem>>, vector<1x32x32xf32>
    %40 = vector.shape_cast %39 : vector<1x32x32xf32> to vector<32x32xf32>
    %c0_24 = arith.constant 0 : index
    %c96 = arith.constant 96 : index
    %c0_25 = arith.constant 0 : index
    %41 = vector.load %arg2[%c0_24, %c96, %c0_25] : memref<2x224x64xf32, #tpu.memory_space<vmem>>, vector<1x32x32xf32>
    %42 = vector.shape_cast %41 : vector<1x32x32xf32> to vector<32x32xf32>
    %c0_26 = arith.constant 0 : index
    %c128 = arith.constant 128 : index
    %c0_27 = arith.constant 0 : index
    %43 = vector.load %arg2[%c0_26, %c128, %c0_27] : memref<2x224x64xf32, #tpu.memory_space<vmem>>, vector<1x32x64xf32>
    %44 = vector.shape_cast %43 : vector<1x32x64xf32> to vector<32x64xf32>
    %c0_28 = arith.constant 0 : index
    %c160_29 = arith.constant 160 : index
    %c0_30 = arith.constant 0 : index
    %45 = vector.load %arg2[%c0_28, %c160_29, %c0_30] : memref<2x224x64xf32, #tpu.memory_space<vmem>>, vector<1x64x32xf32>
    %46 = vector.shape_cast %45 : vector<1x64x32xf32> to vector<64x32xf32>
    %c248 = arith.constant 248 : index
    %c0_31 = arith.constant 0 : index
    %47 = vector.load %arg1[%c248, %c0_31] : memref<408x64xf32, #tpu.memory_space<vmem>>, vector<1x32xf32>
    %c256 = arith.constant 256 : index
    %c0_32 = arith.constant 0 : index
    %48 = vector.load %arg1[%c256, %c0_32] : memref<408x64xf32, #tpu.memory_space<vmem>>, vector<1x32xf32>
    %cst_33 = arith.constant dense<0.000000e+00> : vector<16xf32>
    %49 = vector.multi_reduction <add>, %29, %cst_33 [1] : vector<16x32xf32> to vector<16xf32>
    %50 = vector.shape_cast %49 : vector<16xf32> to vector<16x1xf32>
    %cst_34 = arith.constant 3.200000e+01 : f32
    %51 = vector.broadcast %cst_34 : f32 to vector<16x1xf32>
    %52 = arith.divf %50, %51 : vector<16x1xf32>
    %53 = vector.broadcast %52 : vector<16x1xf32> to vector<16x32xf32>
    %54 = arith.subf %29, %53 : vector<16x32xf32>
    %55 = arith.mulf %54, %54 : vector<16x32xf32>
    %cst_35 = arith.constant dense<0.000000e+00> : vector<16xf32>
    %56 = vector.multi_reduction <add>, %55, %cst_35 [1] : vector<16x32xf32> to vector<16xf32>
    %57 = vector.shape_cast %56 : vector<16xf32> to vector<16x1xf32>
    %cst_36 = arith.constant 3.200000e+01 : f32
    %58 = vector.broadcast %cst_36 : f32 to vector<16x1xf32>
    %59 = arith.divf %57, %58 : vector<16x1xf32>
    %cst_37 = arith.constant 9.99999974E-6 : f32
    %60 = vector.broadcast %cst_37 : f32 to vector<16x1xf32>
    %61 = arith.addf %59, %60 : vector<16x1xf32>
    %62 = math.rsqrt %61 : vector<16x1xf32>
    %63 = vector.broadcast %62 : vector<16x1xf32> to vector<16x32xf32>
    %64 = arith.mulf %54, %63 : vector<16x32xf32>
    %65 = vector.broadcast %47 : vector<1x32xf32> to vector<16x32xf32>
    %66 = arith.mulf %64, %65 : vector<16x32xf32>
    %67 = vector.broadcast %48 : vector<1x32xf32> to vector<16x32xf32>
    %68 = arith.addf %66, %67 : vector<16x32xf32>
    %cst_38 = arith.constant dense<0.000000e+00> : vector<16x32xf32>
    %69 = tpu.matmul %68, %36, %cst_38 {dimension_numbers = #tpu.dot_dimension_numbers<[1], [0], [0], [1], [0, 0, 1, 1], [], []>} : vector<16x32xf32>, vector<32x32xf32>, vector<16x32xf32> -> vector<16x32xf32>
    %c264 = arith.constant 264 : index
    %c0_39 = arith.constant 0 : index
    %70 = vector.load %arg1[%c264, %c0_39] : memref<408x64xf32, #tpu.memory_space<vmem>>, vector<1x32xf32>
    %71 = vector.broadcast %70 : vector<1x32xf32> to vector<16x32xf32>
    %72 = arith.addf %69, %71 : vector<16x32xf32>
    %cst_40 = arith.constant dense<0.000000e+00> : vector<16x32xf32>
    %73 = tpu.matmul %68, %38, %cst_40 {dimension_numbers = #tpu.dot_dimension_numbers<[1], [0], [0], [1], [0, 0, 1, 1], [], []>} : vector<16x32xf32>, vector<32x32xf32>, vector<16x32xf32> -> vector<16x32xf32>
    %c272 = arith.constant 272 : index
    %c0_41 = arith.constant 0 : index
    %74 = vector.load %arg1[%c272, %c0_41] : memref<408x64xf32, #tpu.memory_space<vmem>>, vector<1x32xf32>
    %75 = vector.broadcast %74 : vector<1x32xf32> to vector<16x32xf32>
    %76 = arith.addf %73, %75 : vector<16x32xf32>
    %cst_42 = arith.constant dense<0.000000e+00> : vector<16x32xf32>
    %77 = tpu.matmul %68, %40, %cst_42 {dimension_numbers = #tpu.dot_dimension_numbers<[1], [0], [0], [1], [0, 0, 1, 1], [], []>} : vector<16x32xf32>, vector<32x32xf32>, vector<16x32xf32> -> vector<16x32xf32>
    %c280 = arith.constant 280 : index
    %c0_43 = arith.constant 0 : index
    %78 = vector.load %arg1[%c280, %c0_43] : memref<408x64xf32, #tpu.memory_space<vmem>>, vector<1x32xf32>
    %79 = vector.broadcast %78 : vector<1x32xf32> to vector<16x32xf32>
    %80 = arith.addf %77, %79 : vector<16x32xf32>
    %cst_44 = arith.constant 0.000000e+00 : f32
    %81 = vector.broadcast %cst_44 : f32 to vector<16x32xf32>
    %82 = vector.broadcast %31 : vector<1x32xf32> to vector<16x32xf32>
    %83 = arith.mulf %72, %82 : vector<16x32xf32>
    %cst_45 = arith.constant dense<0.000000e+00> : vector<16x16xf32>
    %84 = tpu.matmul %83, %76, %cst_45 {dimension_numbers = #tpu.dot_dimension_numbers<[1], [1], [0], [0], [0, 0, 1, 0], [], []>} : vector<16x32xf32>, vector<16x32xf32>, vector<16x16xf32> -> vector<16x16xf32>
    %85 = arith.addf %84, %30 : vector<16x16xf32>
    %cst_46 = arith.constant dense<0xFF800000> : vector<16xf32>
    %86 = vector.multi_reduction <maximumf>, %85, %cst_46 [1] : vector<16x16xf32> to vector<16xf32>
    %87 = vector.shape_cast %86 : vector<16xf32> to vector<16x1xf32>
    %88 = vector.broadcast %87 : vector<16x1xf32> to vector<16x16xf32>
    %89 = arith.subf %85, %88 : vector<16x16xf32>
    %90 = math.exp %89 : vector<16x16xf32>
    %cst_47 = arith.constant dense<0.000000e+00> : vector<16xf32>
    %91 = vector.multi_reduction <add>, %90, %cst_47 [1] : vector<16x16xf32> to vector<16xf32>
    %92 = vector.shape_cast %91 : vector<16xf32> to vector<16x1xf32>
    %93 = vector.broadcast %92 : vector<16x1xf32> to vector<16x16xf32>
    %94 = arith.divf %90, %93 : vector<16x16xf32>
    %cst_48 = arith.constant dense<0.000000e+00> : vector<16x32xf32>
    %95 = tpu.matmul %94, %80, %cst_48 {dimension_numbers = #tpu.dot_dimension_numbers<[1], [0], [0], [1], [0, 0, 1, 1], [], []>} : vector<16x16xf32>, vector<16x32xf32>, vector<16x32xf32> -> vector<16x32xf32>
    %96 = vector.broadcast %31 : vector<1x32xf32> to vector<16x32xf32>
    %97 = arith.mulf %95, %96 : vector<16x32xf32>
    %98 = arith.addf %81, %97 : vector<16x32xf32>
    %99 = vector.broadcast %32 : vector<1x32xf32> to vector<16x32xf32>
    %100 = arith.mulf %72, %99 : vector<16x32xf32>
    %cst_49 = arith.constant dense<0.000000e+00> : vector<16x16xf32>
    %101 = tpu.matmul %100, %76, %cst_49 {dimension_numbers = #tpu.dot_dimension_numbers<[1], [1], [0], [0], [0, 0, 1, 0], [], []>} : vector<16x32xf32>, vector<16x32xf32>, vector<16x16xf32> -> vector<16x16xf32>
    %102 = arith.addf %101, %30 : vector<16x16xf32>
    %cst_50 = arith.constant dense<0xFF800000> : vector<16xf32>
    %103 = vector.multi_reduction <maximumf>, %102, %cst_50 [1] : vector<16x16xf32> to vector<16xf32>
    %104 = vector.shape_cast %103 : vector<16xf32> to vector<16x1xf32>
    %105 = vector.broadcast %104 : vector<16x1xf32> to vector<16x16xf32>
    %106 = arith.subf %102, %105 : vector<16x16xf32>
    %107 = math.exp %106 : vector<16x16xf32>
    %cst_51 = arith.constant dense<0.000000e+00> : vector<16xf32>
    %108 = vector.multi_reduction <add>, %107, %cst_51 [1] : vector<16x16xf32> to vector<16xf32>
    %109 = vector.shape_cast %108 : vector<16xf32> to vector<16x1xf32>
    %110 = vector.broadcast %109 : vector<16x1xf32> to vector<16x16xf32>
    %111 = arith.divf %107, %110 : vector<16x16xf32>
    %cst_52 = arith.constant dense<0.000000e+00> : vector<16x32xf32>
    %112 = tpu.matmul %111, %80, %cst_52 {dimension_numbers = #tpu.dot_dimension_numbers<[1], [0], [0], [1], [0, 0, 1, 1], [], []>} : vector<16x16xf32>, vector<16x32xf32>, vector<16x32xf32> -> vector<16x32xf32>
    %113 = vector.broadcast %32 : vector<1x32xf32> to vector<16x32xf32>
    %114 = arith.mulf %112, %113 : vector<16x32xf32>
    %115 = arith.addf %98, %114 : vector<16x32xf32>
    %116 = vector.broadcast %33 : vector<1x32xf32> to vector<16x32xf32>
    %117 = arith.mulf %72, %116 : vector<16x32xf32>
    %cst_53 = arith.constant dense<0.000000e+00> : vector<16x16xf32>
    %118 = tpu.matmul %117, %76, %cst_53 {dimension_numbers = #tpu.dot_dimension_numbers<[1], [1], [0], [0], [0, 0, 1, 0], [], []>} : vector<16x32xf32>, vector<16x32xf32>, vector<16x16xf32> -> vector<16x16xf32>
    %119 = arith.addf %118, %30 : vector<16x16xf32>
    %cst_54 = arith.constant dense<0xFF800000> : vector<16xf32>
    %120 = vector.multi_reduction <maximumf>, %119, %cst_54 [1] : vector<16x16xf32> to vector<16xf32>
    %121 = vector.shape_cast %120 : vector<16xf32> to vector<16x1xf32>
    %122 = vector.broadcast %121 : vector<16x1xf32> to vector<16x16xf32>
    %123 = arith.subf %119, %122 : vector<16x16xf32>
    %124 = math.exp %123 : vector<16x16xf32>
    %cst_55 = arith.constant dense<0.000000e+00> : vector<16xf32>
    %125 = vector.multi_reduction <add>, %124, %cst_55 [1] : vector<16x16xf32> to vector<16xf32>
    %126 = vector.shape_cast %125 : vector<16xf32> to vector<16x1xf32>
    %127 = vector.broadcast %126 : vector<16x1xf32> to vector<16x16xf32>
    %128 = arith.divf %124, %127 : vector<16x16xf32>
    %cst_56 = arith.constant dense<0.000000e+00> : vector<16x32xf32>
    %129 = tpu.matmul %128, %80, %cst_56 {dimension_numbers = #tpu.dot_dimension_numbers<[1], [0], [0], [1], [0, 0, 1, 1], [], []>} : vector<16x16xf32>, vector<16x32xf32>, vector<16x32xf32> -> vector<16x32xf32>
    %130 = vector.broadcast %33 : vector<1x32xf32> to vector<16x32xf32>
    %131 = arith.mulf %129, %130 : vector<16x32xf32>
    %132 = arith.addf %115, %131 : vector<16x32xf32>
    %133 = vector.broadcast %34 : vector<1x32xf32> to vector<16x32xf32>
    %134 = arith.mulf %72, %133 : vector<16x32xf32>
    %cst_57 = arith.constant dense<0.000000e+00> : vector<16x16xf32>
    %135 = tpu.matmul %134, %76, %cst_57 {dimension_numbers = #tpu.dot_dimension_numbers<[1], [1], [0], [0], [0, 0, 1, 0], [], []>} : vector<16x32xf32>, vector<16x32xf32>, vector<16x16xf32> -> vector<16x16xf32>
    %136 = arith.addf %135, %30 : vector<16x16xf32>
    %cst_58 = arith.constant dense<0xFF800000> : vector<16xf32>
    %137 = vector.multi_reduction <maximumf>, %136, %cst_58 [1] : vector<16x16xf32> to vector<16xf32>
    %138 = vector.shape_cast %137 : vector<16xf32> to vector<16x1xf32>
    %139 = vector.broadcast %138 : vector<16x1xf32> to vector<16x16xf32>
    %140 = arith.subf %136, %139 : vector<16x16xf32>
    %141 = math.exp %140 : vector<16x16xf32>
    %cst_59 = arith.constant dense<0.000000e+00> : vector<16xf32>
    %142 = vector.multi_reduction <add>, %141, %cst_59 [1] : vector<16x16xf32> to vector<16xf32>
    %143 = vector.shape_cast %142 : vector<16xf32> to vector<16x1xf32>
    %144 = vector.broadcast %143 : vector<16x1xf32> to vector<16x16xf32>
    %145 = arith.divf %141, %144 : vector<16x16xf32>
    %cst_60 = arith.constant dense<0.000000e+00> : vector<16x32xf32>
    %146 = tpu.matmul %145, %80, %cst_60 {dimension_numbers = #tpu.dot_dimension_numbers<[1], [0], [0], [1], [0, 0, 1, 1], [], []>} : vector<16x16xf32>, vector<16x32xf32>, vector<16x32xf32> -> vector<16x32xf32>
    %147 = vector.broadcast %34 : vector<1x32xf32> to vector<16x32xf32>
    %148 = arith.mulf %146, %147 : vector<16x32xf32>
    %149 = arith.addf %132, %148 : vector<16x32xf32>
    %cst_61 = arith.constant dense<0.000000e+00> : vector<16x32xf32>
    %150 = tpu.matmul %149, %42, %cst_61 {dimension_numbers = #tpu.dot_dimension_numbers<[1], [0], [0], [1], [0, 0, 1, 1], [], []>} : vector<16x32xf32>, vector<32x32xf32>, vector<16x32xf32> -> vector<16x32xf32>
    %151 = arith.addf %29, %150 : vector<16x32xf32>
    %c288 = arith.constant 288 : index
    %c0_62 = arith.constant 0 : index
    %152 = vector.load %arg1[%c288, %c0_62] : memref<408x64xf32, #tpu.memory_space<vmem>>, vector<1x32xf32>
    %153 = vector.broadcast %152 : vector<1x32xf32> to vector<16x32xf32>
    %154 = arith.addf %151, %153 : vector<16x32xf32>
    %c296 = arith.constant 296 : index
    %c0_63 = arith.constant 0 : index
    %155 = vector.load %arg1[%c296, %c0_63] : memref<408x64xf32, #tpu.memory_space<vmem>>, vector<1x32xf32>
    %c304 = arith.constant 304 : index
    %c0_64 = arith.constant 0 : index
    %156 = vector.load %arg1[%c304, %c0_64] : memref<408x64xf32, #tpu.memory_space<vmem>>, vector<1x32xf32>
    %cst_65 = arith.constant dense<0.000000e+00> : vector<16xf32>
    %157 = vector.multi_reduction <add>, %154, %cst_65 [1] : vector<16x32xf32> to vector<16xf32>
    %158 = vector.shape_cast %157 : vector<16xf32> to vector<16x1xf32>
    %cst_66 = arith.constant 3.200000e+01 : f32
    %159 = vector.broadcast %cst_66 : f32 to vector<16x1xf32>
    %160 = arith.divf %158, %159 : vector<16x1xf32>
    %161 = vector.broadcast %160 : vector<16x1xf32> to vector<16x32xf32>
    %162 = arith.subf %154, %161 : vector<16x32xf32>
    %163 = arith.mulf %162, %162 : vector<16x32xf32>
    %cst_67 = arith.constant dense<0.000000e+00> : vector<16xf32>
    %164 = vector.multi_reduction <add>, %163, %cst_67 [1] : vector<16x32xf32> to vector<16xf32>
    %165 = vector.shape_cast %164 : vector<16xf32> to vector<16x1xf32>
    %cst_68 = arith.constant 3.200000e+01 : f32
    %166 = vector.broadcast %cst_68 : f32 to vector<16x1xf32>
    %167 = arith.divf %165, %166 : vector<16x1xf32>
    %cst_69 = arith.constant 9.99999974E-6 : f32
    %168 = vector.broadcast %cst_69 : f32 to vector<16x1xf32>
    %169 = arith.addf %167, %168 : vector<16x1xf32>
    %170 = math.rsqrt %169 : vector<16x1xf32>
    %171 = vector.broadcast %170 : vector<16x1xf32> to vector<16x32xf32>
    %172 = arith.mulf %162, %171 : vector<16x32xf32>
    %173 = vector.broadcast %155 : vector<1x32xf32> to vector<16x32xf32>
    %174 = arith.mulf %172, %173 : vector<16x32xf32>
    %175 = vector.broadcast %156 : vector<1x32xf32> to vector<16x32xf32>
    %176 = arith.addf %174, %175 : vector<16x32xf32>
    %cst_70 = arith.constant dense<0.000000e+00> : vector<16x64xf32>
    %177 = tpu.matmul %176, %44, %cst_70 {dimension_numbers = #tpu.dot_dimension_numbers<[1], [0], [0], [1], [0, 0, 1, 1], [], []>} : vector<16x32xf32>, vector<32x64xf32>, vector<16x64xf32> -> vector<16x64xf32>
    %c312 = arith.constant 312 : index
    %c0_71 = arith.constant 0 : index
    %178 = vector.load %arg1[%c312, %c0_71] : memref<408x64xf32, #tpu.memory_space<vmem>>, vector<1x64xf32>
    %179 = vector.broadcast %178 : vector<1x64xf32> to vector<16x64xf32>
    %180 = arith.addf %177, %179 : vector<16x64xf32>
    %cst_72 = arith.constant 5.000000e-01 : f32
    %181 = vector.broadcast %cst_72 : f32 to vector<16x64xf32>
    %182 = arith.mulf %181, %180 : vector<16x64xf32>
    %cst_73 = arith.constant 0.707106769 : f32
    %183 = vector.broadcast %cst_73 : f32 to vector<16x64xf32>
    %184 = arith.mulf %180, %183 : vector<16x64xf32>
    %cst_74 = arith.constant 0.000000e+00 : f32
    %185 = vector.broadcast %cst_74 : f32 to vector<16x64xf32>
    %186 = arith.cmpf olt, %184, %185 : vector<16x64xf32>
    %cst_75 = arith.constant -1.000000e+00 : f32
    %cst_76 = arith.constant 1.000000e+00 : f32
    %187 = vector.broadcast %cst_75 : f32 to vector<16x64xf32>
    %188 = vector.broadcast %cst_76 : f32 to vector<16x64xf32>
    %189 = arith.select %186, %187, %188 : vector<16x64xi1>, vector<16x64xf32>
    %190 = math.absf %184 : vector<16x64xf32>
    %cst_77 = arith.constant 0.327591091 : f32
    %191 = vector.broadcast %cst_77 : f32 to vector<16x64xf32>
    %192 = arith.mulf %191, %190 : vector<16x64xf32>
    %cst_78 = arith.constant 1.000000e+00 : f32
    %193 = vector.broadcast %cst_78 : f32 to vector<16x64xf32>
    %194 = arith.addf %193, %192 : vector<16x64xf32>
    %cst_79 = arith.constant 1.000000e+00 : f32
    %195 = vector.broadcast %cst_79 : f32 to vector<16x64xf32>
    %196 = arith.divf %195, %194 : vector<16x64xf32>
    %cst_80 = arith.constant 1.06140542 : f32
    %197 = vector.broadcast %cst_80 : f32 to vector<16x64xf32>
    %198 = arith.mulf %197, %196 : vector<16x64xf32>
    %cst_81 = arith.constant -1.45315206 : f32
    %199 = vector.broadcast %cst_81 : f32 to vector<16x64xf32>
    %200 = arith.addf %198, %199 : vector<16x64xf32>
    %201 = arith.mulf %200, %196 : vector<16x64xf32>
    %cst_82 = arith.constant 1.42141378 : f32
    %202 = vector.broadcast %cst_82 : f32 to vector<16x64xf32>
    %203 = arith.addf %201, %202 : vector<16x64xf32>
    %204 = arith.mulf %203, %196 : vector<16x64xf32>
    %cst_83 = arith.constant -0.284496725 : f32
    %205 = vector.broadcast %cst_83 : f32 to vector<16x64xf32>
    %206 = arith.addf %204, %205 : vector<16x64xf32>
    %207 = arith.mulf %206, %196 : vector<16x64xf32>
    %cst_84 = arith.constant 0.254829586 : f32
    %208 = vector.broadcast %cst_84 : f32 to vector<16x64xf32>
    %209 = arith.addf %207, %208 : vector<16x64xf32>
    %210 = arith.mulf %209, %196 : vector<16x64xf32>
    %cst_85 = arith.constant 0.000000e+00 : f32
    %211 = vector.broadcast %cst_85 : f32 to vector<16x64xf32>
    %212 = arith.subf %211, %190 : vector<16x64xf32>
    %213 = arith.mulf %212, %190 : vector<16x64xf32>
    %214 = math.exp %213 : vector<16x64xf32>
    %215 = arith.mulf %210, %214 : vector<16x64xf32>
    %cst_86 = arith.constant 1.000000e+00 : f32
    %216 = vector.broadcast %cst_86 : f32 to vector<16x64xf32>
    %217 = arith.subf %216, %215 : vector<16x64xf32>
    %218 = arith.mulf %189, %217 : vector<16x64xf32>
    %cst_87 = arith.constant 1.000000e+00 : f32
    %219 = vector.broadcast %cst_87 : f32 to vector<16x64xf32>
    %220 = arith.addf %219, %218 : vector<16x64xf32>
    %221 = arith.mulf %182, %220 : vector<16x64xf32>
    %cst_88 = arith.constant dense<0.000000e+00> : vector<16x32xf32>
    %222 = tpu.matmul %221, %46, %cst_88 {dimension_numbers = #tpu.dot_dimension_numbers<[1], [0], [0], [1], [0, 0, 1, 1], [], []>} : vector<16x64xf32>, vector<64x32xf32>, vector<16x32xf32> -> vector<16x32xf32>
    %223 = arith.addf %154, %222 : vector<16x32xf32>
    %c320 = arith.constant 320 : index
    %c0_89 = arith.constant 0 : index
    %224 = vector.load %arg1[%c320, %c0_89] : memref<408x64xf32, #tpu.memory_space<vmem>>, vector<1x32xf32>
    %225 = vector.broadcast %224 : vector<1x32xf32> to vector<16x32xf32>
    %226 = arith.addf %223, %225 : vector<16x32xf32>
    %c1 = arith.constant 1 : index
    %c0_90 = arith.constant 0 : index
    %c0_91 = arith.constant 0 : index
    %227 = vector.load %arg2[%c1, %c0_90, %c0_91] : memref<2x224x64xf32, #tpu.memory_space<vmem>>, vector<1x32x32xf32>
    %228 = vector.shape_cast %227 : vector<1x32x32xf32> to vector<32x32xf32>
    %c1_92 = arith.constant 1 : index
    %c32_93 = arith.constant 32 : index
    %c0_94 = arith.constant 0 : index
    %229 = vector.load %arg2[%c1_92, %c32_93, %c0_94] : memref<2x224x64xf32, #tpu.memory_space<vmem>>, vector<1x32x32xf32>
    %230 = vector.shape_cast %229 : vector<1x32x32xf32> to vector<32x32xf32>
    %c1_95 = arith.constant 1 : index
    %c64_96 = arith.constant 64 : index
    %c0_97 = arith.constant 0 : index
    %231 = vector.load %arg2[%c1_95, %c64_96, %c0_97] : memref<2x224x64xf32, #tpu.memory_space<vmem>>, vector<1x32x32xf32>
    %232 = vector.shape_cast %231 : vector<1x32x32xf32> to vector<32x32xf32>
    %c1_98 = arith.constant 1 : index
    %c96_99 = arith.constant 96 : index
    %c0_100 = arith.constant 0 : index
    %233 = vector.load %arg2[%c1_98, %c96_99, %c0_100] : memref<2x224x64xf32, #tpu.memory_space<vmem>>, vector<1x32x32xf32>
    %234 = vector.shape_cast %233 : vector<1x32x32xf32> to vector<32x32xf32>
    %c1_101 = arith.constant 1 : index
    %c128_102 = arith.constant 128 : index
    %c0_103 = arith.constant 0 : index
    %235 = vector.load %arg2[%c1_101, %c128_102, %c0_103] : memref<2x224x64xf32, #tpu.memory_space<vmem>>, vector<1x32x64xf32>
    %236 = vector.shape_cast %235 : vector<1x32x64xf32> to vector<32x64xf32>
    %c1_104 = arith.constant 1 : index
    %c160_105 = arith.constant 160 : index
    %c0_106 = arith.constant 0 : index
    %237 = vector.load %arg2[%c1_104, %c160_105, %c0_106] : memref<2x224x64xf32, #tpu.memory_space<vmem>>, vector<1x64x32xf32>
    %238 = vector.shape_cast %237 : vector<1x64x32xf32> to vector<64x32xf32>
    %c328 = arith.constant 328 : index
    %c0_107 = arith.constant 0 : index
    %239 = vector.load %arg1[%c328, %c0_107] : memref<408x64xf32, #tpu.memory_space<vmem>>, vector<1x32xf32>
    %c336 = arith.constant 336 : index
    %c0_108 = arith.constant 0 : index
    %240 = vector.load %arg1[%c336, %c0_108] : memref<408x64xf32, #tpu.memory_space<vmem>>, vector<1x32xf32>
    %cst_109 = arith.constant dense<0.000000e+00> : vector<16xf32>
    %241 = vector.multi_reduction <add>, %226, %cst_109 [1] : vector<16x32xf32> to vector<16xf32>
    %242 = vector.shape_cast %241 : vector<16xf32> to vector<16x1xf32>
    %cst_110 = arith.constant 3.200000e+01 : f32
    %243 = vector.broadcast %cst_110 : f32 to vector<16x1xf32>
    %244 = arith.divf %242, %243 : vector<16x1xf32>
    %245 = vector.broadcast %244 : vector<16x1xf32> to vector<16x32xf32>
    %246 = arith.subf %226, %245 : vector<16x32xf32>
    %247 = arith.mulf %246, %246 : vector<16x32xf32>
    %cst_111 = arith.constant dense<0.000000e+00> : vector<16xf32>
    %248 = vector.multi_reduction <add>, %247, %cst_111 [1] : vector<16x32xf32> to vector<16xf32>
    %249 = vector.shape_cast %248 : vector<16xf32> to vector<16x1xf32>
    %cst_112 = arith.constant 3.200000e+01 : f32
    %250 = vector.broadcast %cst_112 : f32 to vector<16x1xf32>
    %251 = arith.divf %249, %250 : vector<16x1xf32>
    %cst_113 = arith.constant 9.99999974E-6 : f32
    %252 = vector.broadcast %cst_113 : f32 to vector<16x1xf32>
    %253 = arith.addf %251, %252 : vector<16x1xf32>
    %254 = math.rsqrt %253 : vector<16x1xf32>
    %255 = vector.broadcast %254 : vector<16x1xf32> to vector<16x32xf32>
    %256 = arith.mulf %246, %255 : vector<16x32xf32>
    %257 = vector.broadcast %239 : vector<1x32xf32> to vector<16x32xf32>
    %258 = arith.mulf %256, %257 : vector<16x32xf32>
    %259 = vector.broadcast %240 : vector<1x32xf32> to vector<16x32xf32>
    %260 = arith.addf %258, %259 : vector<16x32xf32>
    %cst_114 = arith.constant dense<0.000000e+00> : vector<16x32xf32>
    %261 = tpu.matmul %260, %228, %cst_114 {dimension_numbers = #tpu.dot_dimension_numbers<[1], [0], [0], [1], [0, 0, 1, 1], [], []>} : vector<16x32xf32>, vector<32x32xf32>, vector<16x32xf32> -> vector<16x32xf32>
    %c344 = arith.constant 344 : index
    %c0_115 = arith.constant 0 : index
    %262 = vector.load %arg1[%c344, %c0_115] : memref<408x64xf32, #tpu.memory_space<vmem>>, vector<1x32xf32>
    %263 = vector.broadcast %262 : vector<1x32xf32> to vector<16x32xf32>
    %264 = arith.addf %261, %263 : vector<16x32xf32>
    %cst_116 = arith.constant dense<0.000000e+00> : vector<16x32xf32>
    %265 = tpu.matmul %260, %230, %cst_116 {dimension_numbers = #tpu.dot_dimension_numbers<[1], [0], [0], [1], [0, 0, 1, 1], [], []>} : vector<16x32xf32>, vector<32x32xf32>, vector<16x32xf32> -> vector<16x32xf32>
    %c352 = arith.constant 352 : index
    %c0_117 = arith.constant 0 : index
    %266 = vector.load %arg1[%c352, %c0_117] : memref<408x64xf32, #tpu.memory_space<vmem>>, vector<1x32xf32>
    %267 = vector.broadcast %266 : vector<1x32xf32> to vector<16x32xf32>
    %268 = arith.addf %265, %267 : vector<16x32xf32>
    %cst_118 = arith.constant dense<0.000000e+00> : vector<16x32xf32>
    %269 = tpu.matmul %260, %232, %cst_118 {dimension_numbers = #tpu.dot_dimension_numbers<[1], [0], [0], [1], [0, 0, 1, 1], [], []>} : vector<16x32xf32>, vector<32x32xf32>, vector<16x32xf32> -> vector<16x32xf32>
    %c360 = arith.constant 360 : index
    %c0_119 = arith.constant 0 : index
    %270 = vector.load %arg1[%c360, %c0_119] : memref<408x64xf32, #tpu.memory_space<vmem>>, vector<1x32xf32>
    %271 = vector.broadcast %270 : vector<1x32xf32> to vector<16x32xf32>
    %272 = arith.addf %269, %271 : vector<16x32xf32>
    %cst_120 = arith.constant 0.000000e+00 : f32
    %273 = vector.broadcast %cst_120 : f32 to vector<16x32xf32>
    %274 = vector.broadcast %31 : vector<1x32xf32> to vector<16x32xf32>
    %275 = arith.mulf %264, %274 : vector<16x32xf32>
    %cst_121 = arith.constant dense<0.000000e+00> : vector<16x16xf32>
    %276 = tpu.matmul %275, %268, %cst_121 {dimension_numbers = #tpu.dot_dimension_numbers<[1], [1], [0], [0], [0, 0, 1, 0], [], []>} : vector<16x32xf32>, vector<16x32xf32>, vector<16x16xf32> -> vector<16x16xf32>
    %277 = arith.addf %276, %30 : vector<16x16xf32>
    %cst_122 = arith.constant dense<0xFF800000> : vector<16xf32>
    %278 = vector.multi_reduction <maximumf>, %277, %cst_122 [1] : vector<16x16xf32> to vector<16xf32>
    %279 = vector.shape_cast %278 : vector<16xf32> to vector<16x1xf32>
    %280 = vector.broadcast %279 : vector<16x1xf32> to vector<16x16xf32>
    %281 = arith.subf %277, %280 : vector<16x16xf32>
    %282 = math.exp %281 : vector<16x16xf32>
    %cst_123 = arith.constant dense<0.000000e+00> : vector<16xf32>
    %283 = vector.multi_reduction <add>, %282, %cst_123 [1] : vector<16x16xf32> to vector<16xf32>
    %284 = vector.shape_cast %283 : vector<16xf32> to vector<16x1xf32>
    %285 = vector.broadcast %284 : vector<16x1xf32> to vector<16x16xf32>
    %286 = arith.divf %282, %285 : vector<16x16xf32>
    %cst_124 = arith.constant dense<0.000000e+00> : vector<16x32xf32>
    %287 = tpu.matmul %286, %272, %cst_124 {dimension_numbers = #tpu.dot_dimension_numbers<[1], [0], [0], [1], [0, 0, 1, 1], [], []>} : vector<16x16xf32>, vector<16x32xf32>, vector<16x32xf32> -> vector<16x32xf32>
    %288 = vector.broadcast %31 : vector<1x32xf32> to vector<16x32xf32>
    %289 = arith.mulf %287, %288 : vector<16x32xf32>
    %290 = arith.addf %273, %289 : vector<16x32xf32>
    %291 = vector.broadcast %32 : vector<1x32xf32> to vector<16x32xf32>
    %292 = arith.mulf %264, %291 : vector<16x32xf32>
    %cst_125 = arith.constant dense<0.000000e+00> : vector<16x16xf32>
    %293 = tpu.matmul %292, %268, %cst_125 {dimension_numbers = #tpu.dot_dimension_numbers<[1], [1], [0], [0], [0, 0, 1, 0], [], []>} : vector<16x32xf32>, vector<16x32xf32>, vector<16x16xf32> -> vector<16x16xf32>
    %294 = arith.addf %293, %30 : vector<16x16xf32>
    %cst_126 = arith.constant dense<0xFF800000> : vector<16xf32>
    %295 = vector.multi_reduction <maximumf>, %294, %cst_126 [1] : vector<16x16xf32> to vector<16xf32>
    %296 = vector.shape_cast %295 : vector<16xf32> to vector<16x1xf32>
    %297 = vector.broadcast %296 : vector<16x1xf32> to vector<16x16xf32>
    %298 = arith.subf %294, %297 : vector<16x16xf32>
    %299 = math.exp %298 : vector<16x16xf32>
    %cst_127 = arith.constant dense<0.000000e+00> : vector<16xf32>
    %300 = vector.multi_reduction <add>, %299, %cst_127 [1] : vector<16x16xf32> to vector<16xf32>
    %301 = vector.shape_cast %300 : vector<16xf32> to vector<16x1xf32>
    %302 = vector.broadcast %301 : vector<16x1xf32> to vector<16x16xf32>
    %303 = arith.divf %299, %302 : vector<16x16xf32>
    %cst_128 = arith.constant dense<0.000000e+00> : vector<16x32xf32>
    %304 = tpu.matmul %303, %272, %cst_128 {dimension_numbers = #tpu.dot_dimension_numbers<[1], [0], [0], [1], [0, 0, 1, 1], [], []>} : vector<16x16xf32>, vector<16x32xf32>, vector<16x32xf32> -> vector<16x32xf32>
    %305 = vector.broadcast %32 : vector<1x32xf32> to vector<16x32xf32>
    %306 = arith.mulf %304, %305 : vector<16x32xf32>
    %307 = arith.addf %290, %306 : vector<16x32xf32>
    %308 = vector.broadcast %33 : vector<1x32xf32> to vector<16x32xf32>
    %309 = arith.mulf %264, %308 : vector<16x32xf32>
    %cst_129 = arith.constant dense<0.000000e+00> : vector<16x16xf32>
    %310 = tpu.matmul %309, %268, %cst_129 {dimension_numbers = #tpu.dot_dimension_numbers<[1], [1], [0], [0], [0, 0, 1, 0], [], []>} : vector<16x32xf32>, vector<16x32xf32>, vector<16x16xf32> -> vector<16x16xf32>
    %311 = arith.addf %310, %30 : vector<16x16xf32>
    %cst_130 = arith.constant dense<0xFF800000> : vector<16xf32>
    %312 = vector.multi_reduction <maximumf>, %311, %cst_130 [1] : vector<16x16xf32> to vector<16xf32>
    %313 = vector.shape_cast %312 : vector<16xf32> to vector<16x1xf32>
    %314 = vector.broadcast %313 : vector<16x1xf32> to vector<16x16xf32>
    %315 = arith.subf %311, %314 : vector<16x16xf32>
    %316 = math.exp %315 : vector<16x16xf32>
    %cst_131 = arith.constant dense<0.000000e+00> : vector<16xf32>
    %317 = vector.multi_reduction <add>, %316, %cst_131 [1] : vector<16x16xf32> to vector<16xf32>
    %318 = vector.shape_cast %317 : vector<16xf32> to vector<16x1xf32>
    %319 = vector.broadcast %318 : vector<16x1xf32> to vector<16x16xf32>
    %320 = arith.divf %316, %319 : vector<16x16xf32>
    %cst_132 = arith.constant dense<0.000000e+00> : vector<16x32xf32>
    %321 = tpu.matmul %320, %272, %cst_132 {dimension_numbers = #tpu.dot_dimension_numbers<[1], [0], [0], [1], [0, 0, 1, 1], [], []>} : vector<16x16xf32>, vector<16x32xf32>, vector<16x32xf32> -> vector<16x32xf32>
    %322 = vector.broadcast %33 : vector<1x32xf32> to vector<16x32xf32>
    %323 = arith.mulf %321, %322 : vector<16x32xf32>
    %324 = arith.addf %307, %323 : vector<16x32xf32>
    %325 = vector.broadcast %34 : vector<1x32xf32> to vector<16x32xf32>
    %326 = arith.mulf %264, %325 : vector<16x32xf32>
    %cst_133 = arith.constant dense<0.000000e+00> : vector<16x16xf32>
    %327 = tpu.matmul %326, %268, %cst_133 {dimension_numbers = #tpu.dot_dimension_numbers<[1], [1], [0], [0], [0, 0, 1, 0], [], []>} : vector<16x32xf32>, vector<16x32xf32>, vector<16x16xf32> -> vector<16x16xf32>
    %328 = arith.addf %327, %30 : vector<16x16xf32>
    %cst_134 = arith.constant dense<0xFF800000> : vector<16xf32>
    %329 = vector.multi_reduction <maximumf>, %328, %cst_134 [1] : vector<16x16xf32> to vector<16xf32>
    %330 = vector.shape_cast %329 : vector<16xf32> to vector<16x1xf32>
    %331 = vector.broadcast %330 : vector<16x1xf32> to vector<16x16xf32>
    %332 = arith.subf %328, %331 : vector<16x16xf32>
    %333 = math.exp %332 : vector<16x16xf32>
    %cst_135 = arith.constant dense<0.000000e+00> : vector<16xf32>
    %334 = vector.multi_reduction <add>, %333, %cst_135 [1] : vector<16x16xf32> to vector<16xf32>
    %335 = vector.shape_cast %334 : vector<16xf32> to vector<16x1xf32>
    %336 = vector.broadcast %335 : vector<16x1xf32> to vector<16x16xf32>
    %337 = arith.divf %333, %336 : vector<16x16xf32>
    %cst_136 = arith.constant dense<0.000000e+00> : vector<16x32xf32>
    %338 = tpu.matmul %337, %272, %cst_136 {dimension_numbers = #tpu.dot_dimension_numbers<[1], [0], [0], [1], [0, 0, 1, 1], [], []>} : vector<16x16xf32>, vector<16x32xf32>, vector<16x32xf32> -> vector<16x32xf32>
    %339 = vector.broadcast %34 : vector<1x32xf32> to vector<16x32xf32>
    %340 = arith.mulf %338, %339 : vector<16x32xf32>
    %341 = arith.addf %324, %340 : vector<16x32xf32>
    %cst_137 = arith.constant dense<0.000000e+00> : vector<16x32xf32>
    %342 = tpu.matmul %341, %234, %cst_137 {dimension_numbers = #tpu.dot_dimension_numbers<[1], [0], [0], [1], [0, 0, 1, 1], [], []>} : vector<16x32xf32>, vector<32x32xf32>, vector<16x32xf32> -> vector<16x32xf32>
    %343 = arith.addf %226, %342 : vector<16x32xf32>
    %c368 = arith.constant 368 : index
    %c0_138 = arith.constant 0 : index
    %344 = vector.load %arg1[%c368, %c0_138] : memref<408x64xf32, #tpu.memory_space<vmem>>, vector<1x32xf32>
    %345 = vector.broadcast %344 : vector<1x32xf32> to vector<16x32xf32>
    %346 = arith.addf %343, %345 : vector<16x32xf32>
    %c376 = arith.constant 376 : index
    %c0_139 = arith.constant 0 : index
    %347 = vector.load %arg1[%c376, %c0_139] : memref<408x64xf32, #tpu.memory_space<vmem>>, vector<1x32xf32>
    %c384 = arith.constant 384 : index
    %c0_140 = arith.constant 0 : index
    %348 = vector.load %arg1[%c384, %c0_140] : memref<408x64xf32, #tpu.memory_space<vmem>>, vector<1x32xf32>
    %cst_141 = arith.constant dense<0.000000e+00> : vector<16xf32>
    %349 = vector.multi_reduction <add>, %346, %cst_141 [1] : vector<16x32xf32> to vector<16xf32>
    %350 = vector.shape_cast %349 : vector<16xf32> to vector<16x1xf32>
    %cst_142 = arith.constant 3.200000e+01 : f32
    %351 = vector.broadcast %cst_142 : f32 to vector<16x1xf32>
    %352 = arith.divf %350, %351 : vector<16x1xf32>
    %353 = vector.broadcast %352 : vector<16x1xf32> to vector<16x32xf32>
    %354 = arith.subf %346, %353 : vector<16x32xf32>
    %355 = arith.mulf %354, %354 : vector<16x32xf32>
    %cst_143 = arith.constant dense<0.000000e+00> : vector<16xf32>
    %356 = vector.multi_reduction <add>, %355, %cst_143 [1] : vector<16x32xf32> to vector<16xf32>
    %357 = vector.shape_cast %356 : vector<16xf32> to vector<16x1xf32>
    %cst_144 = arith.constant 3.200000e+01 : f32
    %358 = vector.broadcast %cst_144 : f32 to vector<16x1xf32>
    %359 = arith.divf %357, %358 : vector<16x1xf32>
    %cst_145 = arith.constant 9.99999974E-6 : f32
    %360 = vector.broadcast %cst_145 : f32 to vector<16x1xf32>
    %361 = arith.addf %359, %360 : vector<16x1xf32>
    %362 = math.rsqrt %361 : vector<16x1xf32>
    %363 = vector.broadcast %362 : vector<16x1xf32> to vector<16x32xf32>
    %364 = arith.mulf %354, %363 : vector<16x32xf32>
    %365 = vector.broadcast %347 : vector<1x32xf32> to vector<16x32xf32>
    %366 = arith.mulf %364, %365 : vector<16x32xf32>
    %367 = vector.broadcast %348 : vector<1x32xf32> to vector<16x32xf32>
    %368 = arith.addf %366, %367 : vector<16x32xf32>
    %cst_146 = arith.constant dense<0.000000e+00> : vector<16x64xf32>
    %369 = tpu.matmul %368, %236, %cst_146 {dimension_numbers = #tpu.dot_dimension_numbers<[1], [0], [0], [1], [0, 0, 1, 1], [], []>} : vector<16x32xf32>, vector<32x64xf32>, vector<16x64xf32> -> vector<16x64xf32>
    %c392 = arith.constant 392 : index
    %c0_147 = arith.constant 0 : index
    %370 = vector.load %arg1[%c392, %c0_147] : memref<408x64xf32, #tpu.memory_space<vmem>>, vector<1x64xf32>
    %371 = vector.broadcast %370 : vector<1x64xf32> to vector<16x64xf32>
    %372 = arith.addf %369, %371 : vector<16x64xf32>
    %cst_148 = arith.constant 5.000000e-01 : f32
    %373 = vector.broadcast %cst_148 : f32 to vector<16x64xf32>
    %374 = arith.mulf %373, %372 : vector<16x64xf32>
    %cst_149 = arith.constant 0.707106769 : f32
    %375 = vector.broadcast %cst_149 : f32 to vector<16x64xf32>
    %376 = arith.mulf %372, %375 : vector<16x64xf32>
    %cst_150 = arith.constant 0.000000e+00 : f32
    %377 = vector.broadcast %cst_150 : f32 to vector<16x64xf32>
    %378 = arith.cmpf olt, %376, %377 : vector<16x64xf32>
    %cst_151 = arith.constant -1.000000e+00 : f32
    %cst_152 = arith.constant 1.000000e+00 : f32
    %379 = vector.broadcast %cst_151 : f32 to vector<16x64xf32>
    %380 = vector.broadcast %cst_152 : f32 to vector<16x64xf32>
    %381 = arith.select %378, %379, %380 : vector<16x64xi1>, vector<16x64xf32>
    %382 = math.absf %376 : vector<16x64xf32>
    %cst_153 = arith.constant 0.327591091 : f32
    %383 = vector.broadcast %cst_153 : f32 to vector<16x64xf32>
    %384 = arith.mulf %383, %382 : vector<16x64xf32>
    %cst_154 = arith.constant 1.000000e+00 : f32
    %385 = vector.broadcast %cst_154 : f32 to vector<16x64xf32>
    %386 = arith.addf %385, %384 : vector<16x64xf32>
    %cst_155 = arith.constant 1.000000e+00 : f32
    %387 = vector.broadcast %cst_155 : f32 to vector<16x64xf32>
    %388 = arith.divf %387, %386 : vector<16x64xf32>
    %cst_156 = arith.constant 1.06140542 : f32
    %389 = vector.broadcast %cst_156 : f32 to vector<16x64xf32>
    %390 = arith.mulf %389, %388 : vector<16x64xf32>
    %cst_157 = arith.constant -1.45315206 : f32
    %391 = vector.broadcast %cst_157 : f32 to vector<16x64xf32>
    %392 = arith.addf %390, %391 : vector<16x64xf32>
    %393 = arith.mulf %392, %388 : vector<16x64xf32>
    %cst_158 = arith.constant 1.42141378 : f32
    %394 = vector.broadcast %cst_158 : f32 to vector<16x64xf32>
    %395 = arith.addf %393, %394 : vector<16x64xf32>
    %396 = arith.mulf %395, %388 : vector<16x64xf32>
    %cst_159 = arith.constant -0.284496725 : f32
    %397 = vector.broadcast %cst_159 : f32 to vector<16x64xf32>
    %398 = arith.addf %396, %397 : vector<16x64xf32>
    %399 = arith.mulf %398, %388 : vector<16x64xf32>
    %cst_160 = arith.constant 0.254829586 : f32
    %400 = vector.broadcast %cst_160 : f32 to vector<16x64xf32>
    %401 = arith.addf %399, %400 : vector<16x64xf32>
    %402 = arith.mulf %401, %388 : vector<16x64xf32>
    %cst_161 = arith.constant 0.000000e+00 : f32
    %403 = vector.broadcast %cst_161 : f32 to vector<16x64xf32>
    %404 = arith.subf %403, %382 : vector<16x64xf32>
    %405 = arith.mulf %404, %382 : vector<16x64xf32>
    %406 = math.exp %405 : vector<16x64xf32>
    %407 = arith.mulf %402, %406 : vector<16x64xf32>
    %cst_162 = arith.constant 1.000000e+00 : f32
    %408 = vector.broadcast %cst_162 : f32 to vector<16x64xf32>
    %409 = arith.subf %408, %407 : vector<16x64xf32>
    %410 = arith.mulf %381, %409 : vector<16x64xf32>
    %cst_163 = arith.constant 1.000000e+00 : f32
    %411 = vector.broadcast %cst_163 : f32 to vector<16x64xf32>
    %412 = arith.addf %411, %410 : vector<16x64xf32>
    %413 = arith.mulf %374, %412 : vector<16x64xf32>
    %cst_164 = arith.constant dense<0.000000e+00> : vector<16x32xf32>
    %414 = tpu.matmul %413, %238, %cst_164 {dimension_numbers = #tpu.dot_dimension_numbers<[1], [0], [0], [1], [0, 0, 1, 1], [], []>} : vector<16x64xf32>, vector<64x32xf32>, vector<16x32xf32> -> vector<16x32xf32>
    %415 = arith.addf %346, %414 : vector<16x32xf32>
    %c400 = arith.constant 400 : index
    %c0_165 = arith.constant 0 : index
    %416 = vector.load %arg1[%c400, %c0_165] : memref<408x64xf32, #tpu.memory_space<vmem>>, vector<1x32xf32>
    %417 = vector.broadcast %416 : vector<1x32xf32> to vector<16x32xf32>
    %418 = arith.addf %415, %417 : vector<16x32xf32>
    %c32_166 = arith.constant 32 : index
    %c0_167 = arith.constant 0 : index
    %419 = vector.load %arg1[%c32_166, %c0_167] : memref<408x64xf32, #tpu.memory_space<vmem>>, vector<2x16xf32>
    %cst_168 = arith.constant dense<0.000000e+00> : vector<2x32xf32>
    %420 = tpu.matmul %419, %418, %cst_168 {dimension_numbers = #tpu.dot_dimension_numbers<[1], [0], [0], [1], [0, 0, 1, 1], [], []>} : vector<2x16xf32>, vector<16x32xf32>, vector<2x32xf32> -> vector<2x32xf32>
    %c96_169 = arith.constant 96 : index
    %c0_170 = arith.constant 0 : index
    %421 = vector.load %arg1[%c96_169, %c0_170] : memref<408x64xf32, #tpu.memory_space<vmem>>, vector<32x32xf32>
    %cst_171 = arith.constant dense<0.000000e+00> : vector<2x32xf32>
    %422 = tpu.matmul %420, %421, %cst_171 {dimension_numbers = #tpu.dot_dimension_numbers<[1], [0], [0], [1], [0, 0, 1, 1], [], []>} : vector<2x32xf32>, vector<32x32xf32>, vector<2x32xf32> -> vector<2x32xf32>
    %c184 = arith.constant 184 : index
    %c0_172 = arith.constant 0 : index
    %423 = vector.load %arg1[%c184, %c0_172] : memref<408x64xf32, #tpu.memory_space<vmem>>, vector<1x32xf32>
    %424 = vector.broadcast %423 : vector<1x32xf32> to vector<2x32xf32>
    %425 = arith.addf %422, %424 : vector<2x32xf32>
    %c192 = arith.constant 192 : index
    %c0_173 = arith.constant 0 : index
    %426 = vector.load %arg1[%c192, %c0_173] : memref<408x64xf32, #tpu.memory_space<vmem>>, vector<1x32xf32>
    %c200 = arith.constant 200 : index
    %c0_174 = arith.constant 0 : index
    %427 = vector.load %arg1[%c200, %c0_174] : memref<408x64xf32, #tpu.memory_space<vmem>>, vector<1x32xf32>
    %cst_175 = arith.constant dense<0.000000e+00> : vector<2xf32>
    %428 = vector.multi_reduction <add>, %425, %cst_175 [1] : vector<2x32xf32> to vector<2xf32>
    %429 = vector.shape_cast %428 : vector<2xf32> to vector<2x1xf32>
    %cst_176 = arith.constant 3.200000e+01 : f32
    %430 = vector.broadcast %cst_176 : f32 to vector<2x1xf32>
    %431 = arith.divf %429, %430 : vector<2x1xf32>
    %432 = vector.broadcast %431 : vector<2x1xf32> to vector<2x32xf32>
    %433 = arith.subf %425, %432 : vector<2x32xf32>
    %434 = arith.mulf %433, %433 : vector<2x32xf32>
    %cst_177 = arith.constant dense<0.000000e+00> : vector<2xf32>
    %435 = vector.multi_reduction <add>, %434, %cst_177 [1] : vector<2x32xf32> to vector<2xf32>
    %436 = vector.shape_cast %435 : vector<2xf32> to vector<2x1xf32>
    %cst_178 = arith.constant 3.200000e+01 : f32
    %437 = vector.broadcast %cst_178 : f32 to vector<2x1xf32>
    %438 = arith.divf %436, %437 : vector<2x1xf32>
    %cst_179 = arith.constant 9.99999974E-6 : f32
    %439 = vector.broadcast %cst_179 : f32 to vector<2x1xf32>
    %440 = arith.addf %438, %439 : vector<2x1xf32>
    %441 = math.rsqrt %440 : vector<2x1xf32>
    %442 = vector.broadcast %441 : vector<2x1xf32> to vector<2x32xf32>
    %443 = arith.mulf %433, %442 : vector<2x32xf32>
    %444 = vector.broadcast %426 : vector<1x32xf32> to vector<2x32xf32>
    %445 = arith.mulf %443, %444 : vector<2x32xf32>
    %446 = vector.broadcast %427 : vector<1x32xf32> to vector<2x32xf32>
    %447 = arith.addf %445, %446 : vector<2x32xf32>
    %cst_180 = arith.constant 5.000000e-01 : f32
    %448 = vector.broadcast %cst_180 : f32 to vector<2x32xf32>
    %449 = arith.mulf %448, %447 : vector<2x32xf32>
    %cst_181 = arith.constant 0.707106769 : f32
    %450 = vector.broadcast %cst_181 : f32 to vector<2x32xf32>
    %451 = arith.mulf %447, %450 : vector<2x32xf32>
    %cst_182 = arith.constant 0.000000e+00 : f32
    %452 = vector.broadcast %cst_182 : f32 to vector<2x32xf32>
    %453 = arith.cmpf olt, %451, %452 : vector<2x32xf32>
    %cst_183 = arith.constant -1.000000e+00 : f32
    %cst_184 = arith.constant 1.000000e+00 : f32
    %454 = vector.broadcast %cst_183 : f32 to vector<2x32xf32>
    %455 = vector.broadcast %cst_184 : f32 to vector<2x32xf32>
    %456 = arith.select %453, %454, %455 : vector<2x32xi1>, vector<2x32xf32>
    %457 = math.absf %451 : vector<2x32xf32>
    %cst_185 = arith.constant 0.327591091 : f32
    %458 = vector.broadcast %cst_185 : f32 to vector<2x32xf32>
    %459 = arith.mulf %458, %457 : vector<2x32xf32>
    %cst_186 = arith.constant 1.000000e+00 : f32
    %460 = vector.broadcast %cst_186 : f32 to vector<2x32xf32>
    %461 = arith.addf %460, %459 : vector<2x32xf32>
    %cst_187 = arith.constant 1.000000e+00 : f32
    %462 = vector.broadcast %cst_187 : f32 to vector<2x32xf32>
    %463 = arith.divf %462, %461 : vector<2x32xf32>
    %cst_188 = arith.constant 1.06140542 : f32
    %464 = vector.broadcast %cst_188 : f32 to vector<2x32xf32>
    %465 = arith.mulf %464, %463 : vector<2x32xf32>
    %cst_189 = arith.constant -1.45315206 : f32
    %466 = vector.broadcast %cst_189 : f32 to vector<2x32xf32>
    %467 = arith.addf %465, %466 : vector<2x32xf32>
    %468 = arith.mulf %467, %463 : vector<2x32xf32>
    %cst_190 = arith.constant 1.42141378 : f32
    %469 = vector.broadcast %cst_190 : f32 to vector<2x32xf32>
    %470 = arith.addf %468, %469 : vector<2x32xf32>
    %471 = arith.mulf %470, %463 : vector<2x32xf32>
    %cst_191 = arith.constant -0.284496725 : f32
    %472 = vector.broadcast %cst_191 : f32 to vector<2x32xf32>
    %473 = arith.addf %471, %472 : vector<2x32xf32>
    %474 = arith.mulf %473, %463 : vector<2x32xf32>
    %cst_192 = arith.constant 0.254829586 : f32
    %475 = vector.broadcast %cst_192 : f32 to vector<2x32xf32>
    %476 = arith.addf %474, %475 : vector<2x32xf32>
    %477 = arith.mulf %476, %463 : vector<2x32xf32>
    %cst_193 = arith.constant 0.000000e+00 : f32
    %478 = vector.broadcast %cst_193 : f32 to vector<2x32xf32>
    %479 = arith.subf %478, %457 : vector<2x32xf32>
    %480 = arith.mulf %479, %457 : vector<2x32xf32>
    %481 = math.exp %480 : vector<2x32xf32>
    %482 = arith.mulf %477, %481 : vector<2x32xf32>
    %cst_194 = arith.constant 1.000000e+00 : f32
    %483 = vector.broadcast %cst_194 : f32 to vector<2x32xf32>
    %484 = arith.subf %483, %482 : vector<2x32xf32>
    %485 = arith.mulf %456, %484 : vector<2x32xf32>
    %cst_195 = arith.constant 1.000000e+00 : f32
    %486 = vector.broadcast %cst_195 : f32 to vector<2x32xf32>
    %487 = arith.addf %486, %485 : vector<2x32xf32>
    %488 = arith.mulf %449, %487 : vector<2x32xf32>
    %c128_196 = arith.constant 128 : index
    %c0_197 = arith.constant 0 : index
    %489 = vector.load %arg1[%c128_196, %c0_197] : memref<408x64xf32, #tpu.memory_space<vmem>>, vector<32x16xf32>
    %cst_198 = arith.constant dense<0.000000e+00> : vector<2x16xf32>
    %490 = tpu.matmul %488, %489, %cst_198 {dimension_numbers = #tpu.dot_dimension_numbers<[1], [0], [0], [1], [0, 0, 1, 1], [], []>} : vector<2x32xf32>, vector<32x16xf32>, vector<2x16xf32> -> vector<2x16xf32>
    %c208 = arith.constant 208 : index
    %c0_199 = arith.constant 0 : index
    %491 = vector.load %arg1[%c208, %c0_199] : memref<408x64xf32, #tpu.memory_space<vmem>>, vector<1x16xf32>
    %492 = vector.broadcast %491 : vector<1x16xf32> to vector<2x16xf32>
    %493 = arith.addf %490, %492 : vector<2x16xf32>
    %c216 = arith.constant 216 : index
    %c0_200 = arith.constant 0 : index
    %494 = vector.load %arg1[%c216, %c0_200] : memref<408x64xf32, #tpu.memory_space<vmem>>, vector<1x16xf32>
    %c224 = arith.constant 224 : index
    %c0_201 = arith.constant 0 : index
    %495 = vector.load %arg1[%c224, %c0_201] : memref<408x64xf32, #tpu.memory_space<vmem>>, vector<1x16xf32>
    %cst_202 = arith.constant dense<0.000000e+00> : vector<2xf32>
    %496 = vector.multi_reduction <add>, %493, %cst_202 [1] : vector<2x16xf32> to vector<2xf32>
    %497 = vector.shape_cast %496 : vector<2xf32> to vector<2x1xf32>
    %cst_203 = arith.constant 1.600000e+01 : f32
    %498 = vector.broadcast %cst_203 : f32 to vector<2x1xf32>
    %499 = arith.divf %497, %498 : vector<2x1xf32>
    %500 = vector.broadcast %499 : vector<2x1xf32> to vector<2x16xf32>
    %501 = arith.subf %493, %500 : vector<2x16xf32>
    %502 = arith.mulf %501, %501 : vector<2x16xf32>
    %cst_204 = arith.constant dense<0.000000e+00> : vector<2xf32>
    %503 = vector.multi_reduction <add>, %502, %cst_204 [1] : vector<2x16xf32> to vector<2xf32>
    %504 = vector.shape_cast %503 : vector<2xf32> to vector<2x1xf32>
    %cst_205 = arith.constant 1.600000e+01 : f32
    %505 = vector.broadcast %cst_205 : f32 to vector<2x1xf32>
    %506 = arith.divf %504, %505 : vector<2x1xf32>
    %cst_206 = arith.constant 9.99999974E-6 : f32
    %507 = vector.broadcast %cst_206 : f32 to vector<2x1xf32>
    %508 = arith.addf %506, %507 : vector<2x1xf32>
    %509 = math.rsqrt %508 : vector<2x1xf32>
    %510 = vector.broadcast %509 : vector<2x1xf32> to vector<2x16xf32>
    %511 = arith.mulf %501, %510 : vector<2x16xf32>
    %512 = vector.broadcast %494 : vector<1x16xf32> to vector<2x16xf32>
    %513 = arith.mulf %511, %512 : vector<2x16xf32>
    %514 = vector.broadcast %495 : vector<1x16xf32> to vector<2x16xf32>
    %515 = arith.addf %513, %514 : vector<2x16xf32>
    %cst_207 = arith.constant 5.000000e-01 : f32
    %516 = vector.broadcast %cst_207 : f32 to vector<2x16xf32>
    %517 = arith.mulf %516, %515 : vector<2x16xf32>
    %cst_208 = arith.constant 0.707106769 : f32
    %518 = vector.broadcast %cst_208 : f32 to vector<2x16xf32>
    %519 = arith.mulf %515, %518 : vector<2x16xf32>
    %cst_209 = arith.constant 0.000000e+00 : f32
    %520 = vector.broadcast %cst_209 : f32 to vector<2x16xf32>
    %521 = arith.cmpf olt, %519, %520 : vector<2x16xf32>
    %cst_210 = arith.constant -1.000000e+00 : f32
    %cst_211 = arith.constant 1.000000e+00 : f32
    %522 = vector.broadcast %cst_210 : f32 to vector<2x16xf32>
    %523 = vector.broadcast %cst_211 : f32 to vector<2x16xf32>
    %524 = arith.select %521, %522, %523 : vector<2x16xi1>, vector<2x16xf32>
    %525 = math.absf %519 : vector<2x16xf32>
    %cst_212 = arith.constant 0.327591091 : f32
    %526 = vector.broadcast %cst_212 : f32 to vector<2x16xf32>
    %527 = arith.mulf %526, %525 : vector<2x16xf32>
    %cst_213 = arith.constant 1.000000e+00 : f32
    %528 = vector.broadcast %cst_213 : f32 to vector<2x16xf32>
    %529 = arith.addf %528, %527 : vector<2x16xf32>
    %cst_214 = arith.constant 1.000000e+00 : f32
    %530 = vector.broadcast %cst_214 : f32 to vector<2x16xf32>
    %531 = arith.divf %530, %529 : vector<2x16xf32>
    %cst_215 = arith.constant 1.06140542 : f32
    %532 = vector.broadcast %cst_215 : f32 to vector<2x16xf32>
    %533 = arith.mulf %532, %531 : vector<2x16xf32>
    %cst_216 = arith.constant -1.45315206 : f32
    %534 = vector.broadcast %cst_216 : f32 to vector<2x16xf32>
    %535 = arith.addf %533, %534 : vector<2x16xf32>
    %536 = arith.mulf %535, %531 : vector<2x16xf32>
    %cst_217 = arith.constant 1.42141378 : f32
    %537 = vector.broadcast %cst_217 : f32 to vector<2x16xf32>
    %538 = arith.addf %536, %537 : vector<2x16xf32>
    %539 = arith.mulf %538, %531 : vector<2x16xf32>
    %cst_218 = arith.constant -0.284496725 : f32
    %540 = vector.broadcast %cst_218 : f32 to vector<2x16xf32>
    %541 = arith.addf %539, %540 : vector<2x16xf32>
    %542 = arith.mulf %541, %531 : vector<2x16xf32>
    %cst_219 = arith.constant 0.254829586 : f32
    %543 = vector.broadcast %cst_219 : f32 to vector<2x16xf32>
    %544 = arith.addf %542, %543 : vector<2x16xf32>
    %545 = arith.mulf %544, %531 : vector<2x16xf32>
    %cst_220 = arith.constant 0.000000e+00 : f32
    %546 = vector.broadcast %cst_220 : f32 to vector<2x16xf32>
    %547 = arith.subf %546, %525 : vector<2x16xf32>
    %548 = arith.mulf %547, %525 : vector<2x16xf32>
    %549 = math.exp %548 : vector<2x16xf32>
    %550 = arith.mulf %545, %549 : vector<2x16xf32>
    %cst_221 = arith.constant 1.000000e+00 : f32
    %551 = vector.broadcast %cst_221 : f32 to vector<2x16xf32>
    %552 = arith.subf %551, %550 : vector<2x16xf32>
    %553 = arith.mulf %524, %552 : vector<2x16xf32>
    %cst_222 = arith.constant 1.000000e+00 : f32
    %554 = vector.broadcast %cst_222 : f32 to vector<2x16xf32>
    %555 = arith.addf %554, %553 : vector<2x16xf32>
    %556 = arith.mulf %517, %555 : vector<2x16xf32>
    %c0_223 = arith.constant 0 : index
    %c0_224 = arith.constant 0 : index
    %557 = vector.load %arg3[%c0_223, %c0_224] : memref<16x32xf32, #tpu.memory_space<vmem>>, vector<16x32xf32>
    %cst_225 = arith.constant dense<0.000000e+00> : vector<2x32xf32>
    %558 = tpu.matmul %556, %557, %cst_225 {dimension_numbers = #tpu.dot_dimension_numbers<[1], [0], [0], [1], [0, 0, 1, 1], [], []>} : vector<2x16xf32>, vector<16x32xf32>, vector<2x32xf32> -> vector<2x32xf32>
    %c0_226 = arith.constant 0 : index
    %c0_227 = arith.constant 0 : index
    %559 = vector.load %arg4[%c0_226, %c0_227] : memref<1x32xf32, #tpu.memory_space<vmem>>, vector<1x32xf32>
    %560 = vector.broadcast %559 : vector<1x32xf32> to vector<2x32xf32>
    %561 = arith.addf %558, %560 : vector<2x32xf32>
    %c40 = arith.constant 40 : index
    %c0_228 = arith.constant 0 : index
    %562 = vector.load %arg1[%c40, %c0_228] : memref<408x64xf32, #tpu.memory_space<vmem>>, vector<32x32xf32>
    %cst_229 = arith.constant dense<0.000000e+00> : vector<2x32xf32>
    %563 = tpu.matmul %561, %562, %cst_229 {dimension_numbers = #tpu.dot_dimension_numbers<[1], [0], [0], [1], [0, 0, 1, 1], [], []>} : vector<2x32xf32>, vector<32x32xf32>, vector<2x32xf32> -> vector<2x32xf32>
    %564 = arith.subf %561, %563 : vector<2x32xf32>
    %565 = arith.mulf %564, %564 : vector<2x32xf32>
    %cst_230 = arith.constant dense<0.000000e+00> : vector<2x32xf32>
    %566 = tpu.matmul %565, %562, %cst_230 {dimension_numbers = #tpu.dot_dimension_numbers<[1], [0], [0], [1], [0, 0, 1, 1], [], []>} : vector<2x32xf32>, vector<32x32xf32>, vector<2x32xf32> -> vector<2x32xf32>
    %cst_231 = arith.constant 9.99999974E-6 : f32
    %567 = vector.broadcast %cst_231 : f32 to vector<2x32xf32>
    %568 = arith.addf %566, %567 : vector<2x32xf32>
    %569 = math.rsqrt %568 : vector<2x32xf32>
    %570 = arith.mulf %564, %569 : vector<2x32xf32>
    %c232 = arith.constant 232 : index
    %c0_232 = arith.constant 0 : index
    %571 = vector.load %arg1[%c232, %c0_232] : memref<408x64xf32, #tpu.memory_space<vmem>>, vector<1x32xf32>
    %572 = vector.broadcast %571 : vector<1x32xf32> to vector<2x32xf32>
    %573 = arith.mulf %570, %572 : vector<2x32xf32>
    %c240 = arith.constant 240 : index
    %c0_233 = arith.constant 0 : index
    %574 = vector.load %arg1[%c240, %c0_233] : memref<408x64xf32, #tpu.memory_space<vmem>>, vector<1x32xf32>
    %575 = vector.broadcast %574 : vector<1x32xf32> to vector<2x32xf32>
    %576 = arith.addf %573, %575 : vector<2x32xf32>
    %cst_234 = arith.constant 5.000000e-01 : f32
    %577 = vector.broadcast %cst_234 : f32 to vector<2x32xf32>
    %578 = arith.mulf %577, %576 : vector<2x32xf32>
    %cst_235 = arith.constant 0.707106769 : f32
    %579 = vector.broadcast %cst_235 : f32 to vector<2x32xf32>
    %580 = arith.mulf %576, %579 : vector<2x32xf32>
    %cst_236 = arith.constant 0.000000e+00 : f32
    %581 = vector.broadcast %cst_236 : f32 to vector<2x32xf32>
    %582 = arith.cmpf olt, %580, %581 : vector<2x32xf32>
    %cst_237 = arith.constant -1.000000e+00 : f32
    %cst_238 = arith.constant 1.000000e+00 : f32
    %583 = vector.broadcast %cst_237 : f32 to vector<2x32xf32>
    %584 = vector.broadcast %cst_238 : f32 to vector<2x32xf32>
    %585 = arith.select %582, %583, %584 : vector<2x32xi1>, vector<2x32xf32>
    %586 = math.absf %580 : vector<2x32xf32>
    %cst_239 = arith.constant 0.327591091 : f32
    %587 = vector.broadcast %cst_239 : f32 to vector<2x32xf32>
    %588 = arith.mulf %587, %586 : vector<2x32xf32>
    %cst_240 = arith.constant 1.000000e+00 : f32
    %589 = vector.broadcast %cst_240 : f32 to vector<2x32xf32>
    %590 = arith.addf %589, %588 : vector<2x32xf32>
    %cst_241 = arith.constant 1.000000e+00 : f32
    %591 = vector.broadcast %cst_241 : f32 to vector<2x32xf32>
    %592 = arith.divf %591, %590 : vector<2x32xf32>
    %cst_242 = arith.constant 1.06140542 : f32
    %593 = vector.broadcast %cst_242 : f32 to vector<2x32xf32>
    %594 = arith.mulf %593, %592 : vector<2x32xf32>
    %cst_243 = arith.constant -1.45315206 : f32
    %595 = vector.broadcast %cst_243 : f32 to vector<2x32xf32>
    %596 = arith.addf %594, %595 : vector<2x32xf32>
    %597 = arith.mulf %596, %592 : vector<2x32xf32>
    %cst_244 = arith.constant 1.42141378 : f32
    %598 = vector.broadcast %cst_244 : f32 to vector<2x32xf32>
    %599 = arith.addf %597, %598 : vector<2x32xf32>
    %600 = arith.mulf %599, %592 : vector<2x32xf32>
    %cst_245 = arith.constant -0.284496725 : f32
    %601 = vector.broadcast %cst_245 : f32 to vector<2x32xf32>
    %602 = arith.addf %600, %601 : vector<2x32xf32>
    %603 = arith.mulf %602, %592 : vector<2x32xf32>
    %cst_246 = arith.constant 0.254829586 : f32
    %604 = vector.broadcast %cst_246 : f32 to vector<2x32xf32>
    %605 = arith.addf %603, %604 : vector<2x32xf32>
    %606 = arith.mulf %605, %592 : vector<2x32xf32>
    %cst_247 = arith.constant 0.000000e+00 : f32
    %607 = vector.broadcast %cst_247 : f32 to vector<2x32xf32>
    %608 = arith.subf %607, %586 : vector<2x32xf32>
    %609 = arith.mulf %608, %586 : vector<2x32xf32>
    %610 = math.exp %609 : vector<2x32xf32>
    %611 = arith.mulf %606, %610 : vector<2x32xf32>
    %cst_248 = arith.constant 1.000000e+00 : f32
    %612 = vector.broadcast %cst_248 : f32 to vector<2x32xf32>
    %613 = arith.subf %612, %611 : vector<2x32xf32>
    %614 = arith.mulf %585, %613 : vector<2x32xf32>
    %cst_249 = arith.constant 1.000000e+00 : f32
    %615 = vector.broadcast %cst_249 : f32 to vector<2x32xf32>
    %616 = arith.addf %615, %614 : vector<2x32xf32>
    %617 = arith.mulf %578, %616 : vector<2x32xf32>
    %c0_250 = arith.constant 0 : index
    %c0_251 = arith.constant 0 : index
    %618 = vector.load %arg5[%c0_250, %c0_251] : memref<32x5xf32, #tpu.memory_space<vmem>>, vector<32x5xf32>
    %cst_252 = arith.constant dense<0.000000e+00> : vector<2x5xf32>
    %619 = tpu.matmul %617, %618, %cst_252 {dimension_numbers = #tpu.dot_dimension_numbers<[1], [0], [0], [1], [0, 0, 1, 1], [], []>} : vector<2x32xf32>, vector<32x5xf32>, vector<2x5xf32> -> vector<2x5xf32>
    %c0_253 = arith.constant 0 : index
    %c0_254 = arith.constant 0 : index
    %620 = vector.load %arg6[%c0_253, %c0_254] : memref<1x5xf32, #tpu.memory_space<vmem>>, vector<1x5xf32>
    %621 = vector.broadcast %620 : vector<1x5xf32> to vector<2x5xf32>
    %622 = arith.addf %619, %621 : vector<2x5xf32>
    %c80 = arith.constant 80 : index
    %c0_255 = arith.constant 0 : index
    %623 = vector.load %arg1[%c80, %c0_255] : memref<408x64xf32, #tpu.memory_space<vmem>>, vector<1x5xf32>
    %624 = vector.broadcast %623 : vector<1x5xf32> to vector<2x5xf32>
    %625 = arith.mulf %622, %624 : vector<2x5xf32>
    %cst_256 = arith.constant 0.000000e+00 : f32
    %626 = vector.broadcast %cst_256 : f32 to vector<2x5xf32>
    %627 = arith.subf %626, %622 : vector<2x5xf32>
    %628 = math.exp %627 : vector<2x5xf32>
    %cst_257 = arith.constant 1.000000e+00 : f32
    %629 = vector.broadcast %cst_257 : f32 to vector<2x5xf32>
    %630 = arith.addf %629, %628 : vector<2x5xf32>
    %cst_258 = arith.constant 1.000000e+00 : f32
    %631 = vector.broadcast %cst_258 : f32 to vector<2x5xf32>
    %632 = arith.divf %631, %630 : vector<2x5xf32>
    %c81 = arith.constant 81 : index
    %c0_259 = arith.constant 0 : index
    %633 = vector.load %arg1[%c81, %c0_259] : memref<408x64xf32, #tpu.memory_space<vmem>>, vector<1x5xf32>
    %634 = vector.broadcast %633 : vector<1x5xf32> to vector<2x5xf32>
    %635 = arith.mulf %632, %634 : vector<2x5xf32>
    %636 = arith.addf %625, %635 : vector<2x5xf32>
    %637 = math.tanh %622 : vector<2x5xf32>
    %c82 = arith.constant 82 : index
    %c0_260 = arith.constant 0 : index
    %638 = vector.load %arg1[%c82, %c0_260] : memref<408x64xf32, #tpu.memory_space<vmem>>, vector<1x5xf32>
    %639 = vector.broadcast %638 : vector<1x5xf32> to vector<2x5xf32>
    %640 = arith.mulf %637, %639 : vector<2x5xf32>
    %641 = arith.addf %636, %640 : vector<2x5xf32>
    %cst_261 = arith.constant 0.000000e+00 : f32
    %642 = vector.broadcast %cst_261 : f32 to vector<2x5xf32>
    %643 = arith.maximumf %622, %642 : vector<2x5xf32>
    %644 = math.absf %622 : vector<2x5xf32>
    %cst_262 = arith.constant 0.000000e+00 : f32
    %645 = vector.broadcast %cst_262 : f32 to vector<2x5xf32>
    %646 = arith.subf %645, %644 : vector<2x5xf32>
    %647 = math.exp %646 : vector<2x5xf32>
    %cst_263 = arith.constant 1.000000e+00 : f32
    %648 = vector.broadcast %cst_263 : f32 to vector<2x5xf32>
    %649 = arith.addf %648, %647 : vector<2x5xf32>
    %650 = math.log %649 : vector<2x5xf32>
    %651 = arith.addf %643, %650 : vector<2x5xf32>
    %c83 = arith.constant 83 : index
    %c0_264 = arith.constant 0 : index
    %652 = vector.load %arg1[%c83, %c0_264] : memref<408x64xf32, #tpu.memory_space<vmem>>, vector<1x5xf32>
    %653 = vector.broadcast %652 : vector<1x5xf32> to vector<2x5xf32>
    %654 = arith.mulf %651, %653 : vector<2x5xf32>
    %655 = arith.addf %641, %654 : vector<2x5xf32>
    %c0_265 = arith.constant 0 : index
    %c0_266 = arith.constant 0 : index
    %656 = vector.load %arg7[%c0_265, %c0_266] : memref<2x5xf32, #tpu.memory_space<vmem>>, vector<2x5xf32>
    tpu.vector_store %arg7[%c0_265, %c0_266], %655 {strides = array<i32>} : memref<2x5xf32, #tpu.memory_space<vmem>>, vector<2x5xf32>,
    return
  }
}

</mosaic_0001>

<bundles_post_ra>
// kernel: forward.3
= control target key start
LH: loop header
LB: loop body
LE: loop exit
PB: predicated region body
PF: predicated region fallthrough
CT: control target
= control target key end

     0   :  { %vm34_vm0 = vcmask 64512   ;;  %vm118_vm1 = vcmask 261120   ;;  %vm575_vm3 = vcmask 130048   ;;  %vm1535_vm6 = vcmask 523264   ;;  %s5614_s1 = inlined_call_operand.vmem [shape: f32[408,64], index: 1, kind: input, shape index: {}]   ;;  %s5615_s0 = inlined_call_operand.vmem [shape: f32[16,8], index: 0, kind: input, shape index: {}]   ;;  %s5616_s2 = inlined_call_operand.vmem [shape: f32[2,224,64], index: 2, kind: input, shape index: {}]   ;;  %s5617_s3 = inlined_call_operand.vmem [shape: f32[16,32], index: 3, kind: input, shape index: {}]   ;;  %s5618_s4 = inlined_call_operand.vmem [shape: f32[1,32], index: 4, kind: input, shape index: {}]   ;;  %s5619_s5 = inlined_call_operand.vmem [shape: f32[32,5], index: 5, kind: input, shape index: {}]   ;;  %s5620_s6 = inlined_call_operand.vmem [shape: f32[1,5], index: 6, kind: input, shape index: {}]   ;;  %s5621_s7 = inlined_call_operand.vmem [shape: f32[2,5], index: 7, kind: output, shape index: {}]  }
   0x1   :  { %v28_v0 = vld [vmem:[%s5614_s1 + $0x58] sm:$0xff]  ;;  %v26_v1 = vld [vmem:[%s5615_s0] sm:$0xff]  ;;  %v27_v2 = vld [vmem:[%s5615_s0 + $0x8] sm:$0xff]  ;;  %vm4847_vm9 = vmmov 0   ;;  %vm3225_vm10 = vcmask 254976   ;;  %vm3360_vm12 = vcmask 123904  }
   0x2   :  { %4148 = vmatprep.subr.mxu0 %v28_v0  ;;  %4150 = vmatprep.mubr.msk.f32.mxu0 %vm34_vm0, %v26_v1  ;;  %v3820_v3 = vld [vmem:[%s5614_s1 + $0xa0] ss:$0 sm:$0xff]  ;;  %v3823_v27 = vld [vmem:[%s5614_s1 + $0xa8] ss:$0 sm:$0xff]  ;;  %v3824_v29 = vld [vmem:[%s5614_s1 + $0xb0] ss:$0 sm:$0xff] }
   0x3   :  { %4149 = vmatpush3.msra.mxu0 %v28_v0  ;;  %v158_v32 = vld [vmem:[%s5614_s1] sm:$0xff]  ;;  %v159_v37 = vld [vmem:[%s5614_s1 + $0x8] sm:$0xff]  ;;  %v170_v57 = vld [vmem:[%s5616_s2 + $0x10] sm:$0xff]  ;;  %vm3814_vm15 = vcmask 33792  }
   0x4   :  { %4151 = vmatmul.mubr.msk.f32.vlgmr.msra.gmra.mrb[0].mxu0 %vm34_vm0, %v27_v2  ;;  %v168_v52 = vld [vmem:[%s5616_s2] sm:$0xff]  ;;  %v169_v53 = vld [vmem:[%s5616_s2 + $0x8] sm:$0xff]  ;;  %v171_v58 = vld [vmem:[%s5616_s2 + $0x18] sm:$0xff] }
   0x5   :  { %v172_v54 = vld [vmem:[%s5616_s2 + $0x20] sm:$0xff]  ;;  %v4482_v55 = vpack.c.bf16 %v169_v53, %v168_v52  ;;  %v173_v56 = vld [vmem:[%s5616_s2 + $0x28] sm:$0xff]  ;;  %v4486_v60 = vpack.c.bf16 %v171_v58, %v170_v57  ;;  %v174_v61 = vld [vmem:[%s5616_s2 + $0x30] sm:$0xff] }
   0x6   :  { %v4490_v59 = vpack.c.bf16 %v173_v56, %v172_v54  ;;  %v175_v62 = vld [vmem:[%s5616_s2 + $0x38] sm:$0xff]  ;;  %v176_v0 = vld [vmem:[%s5616_s2 + $0x40] sm:$0xff]  ;;  %v177_v1 = vld [vmem:[%s5616_s2 + $0x48] sm:$0xff] }
   0x7   :  { %4483 = vmatprep.subr.bf16.mxu1 %v4482_v55  ;;  %v4494_v63 = vpack.c.bf16 %v175_v62, %v174_v61  ;;  %v4498_v2 = vpack.c.bf16 %v177_v1, %v176_v0  ;;  %vm4992_vm2 = vmpackc.low %vm118_vm1, %vm118_vm1 }
   0x8   :  { %4485 = vmatpush3.bf16.msra.mxu1 %v4482_v55  ;;  %4491 = vmatprep.subr.bf16.mxu0 %v4490_v59 }
   0x9   :  { %4493 = vmatpush3.bf16.msra.mxu0 %v4490_v59  ;;  %4487 = vmatprep.subr.bf16.mxu1 %v4486_v60 }
   0xa   :  { %4495 = vmatprep.subr.bf16.mxu0 %v4494_v63 }
   0xc   :  { %4489 = vmatpush3.bf16.msra.mxu1 %v4486_v60 }
   0xd   :  { %4497 = vmatpush3.bf16.msra.mxu0 %v4494_v63  ;;  %4499 = vmatprep.subr.bf16.mxu1 %v4498_v2 }
  0xd7   :  { %v4152_v4 = vpop.f32.mrb[0].mxu0 }
  0xd8   :  { %v107_v5 = vpop.f32.mrb[1].mxu0  ;;  %v113_v7 = vadd.f32 %v4152_v4, %v3820_v3 }
  0xd9   :  { %v108_v6 = vadd.f32 %v3820_v3, %v107_v5 }
  0xda   :  { %v122_v9 = vsel %vm118_vm1, %v113_v7, 0.0 }
  0xdb   :  { %v119_v8 = vsel %vm118_vm1, %v108_v6, 0.0 }
  0xdc   :  { %120 = vadd.xlane.f32.xlu0 %v119_v8 }
  0xe0   :  { %123 = vadd.xlane.f32.xlu0 %v122_v9 }
 0x169   :  { %v121_v10 = vpop.xlane.xlu0 %120 }
 0x16a   :  { %v126_v11 = vmul.f32 0.03125, %v121_v10  ;;  %v3825_v10 = vld [vmem:[%s5614_s1 + $0xf8] ss:$0 sm:$0xff] }
 0x16c   :  { %v128_v12 = vsub.f32 %v108_v6, %v126_v11 }
 0x16d   :  { %v124_v13 = vpop.xlane.xlu0 %123 }
 0x16e   :  { %v127_v14 = vmul.f32 0.03125, %v124_v13  ;;  %v130_v15 = vmul.f32 %v128_v12, %v128_v12 }
 0x170   :  { %v129_v16 = vsub.f32 %v113_v7, %v127_v14  ;;  %v132_v17 = vsel %vm118_vm1, %v130_v15, 0.0 }
 0x171   :  { %133 = vadd.xlane.f32.xlu1 %v132_v17  ;;  %v178_v17 = vld [vmem:[%s5616_s2 + $0x50] sm:$0xff] }
 0x172   :  { %v131_v18 = vmul.f32 %v129_v16, %v129_v16 }
 0x174   :  { %v135_v19 = vsel %vm118_vm1, %v131_v18, 0.0  ;;  %v179_v18 = vld [vmem:[%s5616_s2 + $0x58] sm:$0xff] }
 0x175   :  { %136 = vadd.xlane.f32.xlu1 %v135_v19 }
 0x1fe   :  { %v134_v20 = vpop.xlane.xlu1 %133 }
 0x1ff   :  { %v138_v21 = vmul.f32 0.03125, %v134_v20 }
 0x201   :  { %v140_v22 = vadd.f32 1e-05, %v138_v21  ;;  %v4502_v21 = vpack.c.bf16 %v179_v18, %v178_v17 }
 0x202   :  { %v137_v23 = vpop.xlane.xlu1 %136 }
 0x203   :  { %4714 = vrsqrt.f32 %v140_v22  ;;  %v139_v24 = vmul.f32 0.03125, %v137_v23  ;;  %v3830_v22 = vld [vmem:[%s5614_s1 + $0x110] ss:$0 sm:$0xff]  ;;  %v3827_v23 = vld [vmem:[%s5614_s1 + $0x108] ss:$0 sm:$0xff] }
 0x205   :  { %v141_v25 = vadd.f32 1e-05, %v139_v24 }
 0x207   :  { %4716 = vrsqrt.f32 %v141_v25 }
 0x20d   :  { %v4715_v26 = vpop.eup %4714 }
 0x20e   :  { %v144_v28 = vmul.f32 %v4715_v26, %v128_v12  ;;  %v3826_v12 = vld [vmem:[%s5614_s1 + $0x100] ss:$0 sm:$0xff]  ;;  %v4986_v26 = vld [vmem:[%s5614_s1 + $0x48] ss:$0 sm:$0xff] }
 0x210   :  { %v150_v30 = vmul.f32 %v3823_v27, %v144_v28 }
 0x211   :  { %v4717_v31 = vpop.eup %4716 }
 0x212   :  { %v156_v33 = vadd.f32 %v3824_v29, %v150_v30  ;;  %v145_v34 = vmul.f32 %v4717_v31, %v129_v16 }
 0x214   :  { %v4914_v35 = vadd.f32 %v158_v32, %v156_v33  ;;  %v151_v36 = vmul.f32 %v3823_v27, %v145_v34 }
 0x216   :  { %v198_v38 = vsel %vm118_vm1, %v4914_v35, 0.0  ;;  %v157_v39 = vadd.f32 %v3824_v29, %v151_v36  ;;  %v3833_v36 = vld [vmem:[%s5614_s1 + $0x118] ss:$0 sm:$0xff] }
 0x217   :  { %199 = vadd.xlane.f32.xlu0 %v198_v38 }
 0x218   :  { %v4921_v40 = vadd.f32 %v159_v37, %v157_v39 }
 0x21a   :  { %v201_v41 = vsel %vm118_vm1, %v4921_v40, 0.0 }
 0x21b   :  { %202 = vadd.xlane.f32.xlu1 %v201_v41 }
 0x2a4   :  { %v200_v42 = vpop.xlane.xlu0 %199 }
 0x2a5   :  { %v204_v43 = vmul.f32 0.03125, %v200_v42 }
 0x2a7   :  { %v206_v44 = vsub.f32 %v4914_v35, %v204_v43 }
 0x2a8   :  { %v203_v45 = vpop.xlane.xlu1 %202 }
 0x2a9   :  { %v205_v46 = vmul.f32 0.03125, %v203_v45  ;;  %v208_v47 = vmul.f32 %v206_v44, %v206_v44  ;;  %v5030_v45 = vld [vmem:[%s5614_s1 + $0x18] sm:$0xff] }
 0x2ab   :  { %v207_v48 = vsub.f32 %v4921_v40, %v205_v46  ;;  %v210_v49 = vsel %vm118_vm1, %v208_v47, 0.0  ;;  %v5035_v46 = vld [vmem:[%s5614_s1 + $0x10] sm:$0xff] }
 0x2ac   :  { %211 = vadd.xlane.f32.xlu0 %v210_v49 }
 0x2ad   :  { %v209_v50 = vmul.f32 %v207_v48, %v207_v48 }
 0x2af   :  { %v213_v51 = vsel %vm118_vm1, %v209_v50, 0.0 }
 0x2b0   :  { %214 = vadd.xlane.f32.xlu1 %v213_v51 }
 0x339   :  { %v212_v3 = vpop.xlane.xlu0 %211 }
 0x33a   :  { %v216_v4 = vmul.f32 0.03125, %v212_v3  ;;  %v5046_v3 = vld [vmem:[%s5614_s1 + $0x49] ss:$0 sm:$0xff] }
 0x33c   :  { %v218_v5 = vadd.f32 1e-05, %v216_v4 }
 0x33d   :  { %v215_v6 = vpop.xlane.xlu1 %214 }
 0x33e   :  { %4718 = vrsqrt.f32 %v218_v5  ;;  %v217_v7 = vmul.f32 0.03125, %v215_v6 }
 0x340   :  { %v219_v8 = vadd.f32 1e-05, %v217_v7 }
 0x342   :  { %4720 = vrsqrt.f32 %v219_v8 }
 0x348   :  { %v4719_v9 = vpop.eup %4718 }
 0x349   :  { %v222_v11 = vmul.f32 %v4719_v9, %v206_v44 }
 0x34b   :  { %v228_v13 = vmul.f32 %v3825_v10, %v222_v11 }
 0x34c   :  { %v4721_v14 = vpop.eup %4720 }
 0x34d   :  { %v223_v15 = vmul.f32 %v4721_v14, %v207_v48  ;;  %v234_v16 = vadd.f32 %v3826_v12, %v228_v13 }
 0x34f   :  { %v229_v19 = vmul.f32 %v3825_v10, %v223_v15  ;;  %4161 = vmatprep.mubr.msk.f32.mxu1 %vm118_vm1, %v234_v16  ;;  %4172 = vmatprep.mubr.msk.f32.mxu0 %vm118_vm1, %v234_v16 }
 0x351   :  { %v235_v20 = vadd.f32 %v3826_v12, %v229_v19 }
 0x353   :  { %4162 = vmatmul.mubr.msk.f32.vlgmr.msra.gmra.mrb[0].mxu1 %vm118_vm1, %v235_v20  ;;  %4173 = vmatmul.mubr.msk.f32.vlgmr.msra.gmra.mrb[2].mxu0 %vm118_vm1, %v235_v20 }
 0x354   :  { %4501 = vmatpush3.bf16.msra.mxu1 %v4498_v2  ;;  %4183 = vmatprep.mubr.msk.f32.mxu1 %vm118_vm1, %v234_v16 }
 0x355   :  { %4503 = vmatprep.subr.bf16.mxu1 %v4502_v21 }
 0x358   :  { %4505 = vmatpush3.bf16.msra.mxu1 %v4502_v21 }
 0x35b   :  { %4184 = vmatmul.mubr.msk.f32.vlgmr.msra.gmra.mrb[2].mxu1 %vm118_vm1, %v235_v20 }
 0x426   :  { %v4163_v24 = vpop.f32.mrb[0].mxu1  ;;  %v4174_v25 = vpop.f32.mrb[2].mxu0 }
 0x427   :  { %v399_v27 = vadd.f32 %v4174_v25, %v3830_v22  ;;  %v313_v28 = vpop.f32.mrb[1].mxu1  ;;  %v393_v29 = vpop.f32.mrb[3].mxu0  ;;  %v5010_v38 = vadd.f32 %v4163_v24, %v3827_v23 }
 0x428   :  { %v4988_v30 = vadd.f32 %v3827_v23, %v313_v28  ;;  %v394_v31 = vadd.f32 %v3830_v22, %v393_v29 }
 0x429   :  { %v487_v44 = vmul.f32 %v4986_v26, %v5010_v38  ;;  %v688_v7 = vmul.f32 %v5046_v3, %v5010_v38 }
 0x42a   :  { %v4996_v33 = vpack.c.bf16 %v399_v27, %v394_v31  ;;  %v486_v34 = vmul.f32 %v4986_v26, %v4988_v30  ;;  %v687_v6 = vmul.f32 %v5046_v3, %v4988_v30 }
 0x42c   :  { %4508 = vmatprep.subr.msk.bf16.mxu0 %vm4992_vm2, %v4996_v33  ;;  %4190 = vmatprep.mubr.msk.f32.mxu0 %vm118_vm1, %v486_v34  ;;  %v5073_v34 = vld [vmem:[%s5614_s1 + $0x4a] ss:$0 sm:$0xff] }
 0x42d   :  { %4511 = vmatpush3.bf16.xpose.msk.msra.mxu0 %vm4992_vm2, %v4996_v33 }
 0x42e   :  { %v4185_v37 = vpop.f32.mrb[2].mxu1 }
 0x42f   :  { %v479_v39 = vadd.f32 %v4185_v37, %v3833_v36  ;;  %v473_v41 = vpop.f32.mrb[3].mxu1 }
 0x430   :  { %v474_v42 = vadd.f32 %v3833_v36, %v473_v41  ;;  %v882_v41 = vmul.f32 %v5073_v34, %v5010_v38 }
 0x432   :  { %v5012_v43 = vpack.c.bf16 %v479_v39, %v474_v42  ;;  %v881_v39 = vmul.f32 %v5073_v34, %v4988_v30 }
 0x434   :  { %4513 = vmatprep.subr.bf16.mxu0 %v5012_v43  ;;  %4523 = vmatprep.subr.bf16.mxu1 %v5012_v43 }
 0x435   :  { %4191 = vmatmul.mubr.msk.f32.vlgmr.msra.gmra.mrb[4].mxu0 %vm118_vm1, %v487_v44  ;;  %4525 = vmatpush3.bf16.msra.mxu1 %v5012_v43 }
 0x436   :  { %4515 = vmatpush3.bf16.msra.mxu0 %v5012_v43  ;;  %4528 = vmatprep.subr.msk.bf16.mxu1 %vm4992_vm2, %v4996_v33 }
 0x437   :  { %4518 = vmatprep.subr.msk.bf16.mxu0 %vm4992_vm2, %v4996_v33 }
 0x508   :  { %v4192_v47 = vpop.f32.mrb[4].mxu0 }
 0x509   :  { %v572_v48 = vadd.f32 %v4192_v47, %v5030_v45  ;;  %v566_v49 = vpop.f32.mrb[5].mxu0 }
 0x50a   :  { %v567_v50 = vadd.f32 %v566_v49, %v5035_v46 }
 0x50b   :  { %v579_v51 = vsel %vm575_vm3, %v572_v48, -inf }
 0x50c   :  { %580 = vmax.xlane.f32.xlu1 %v579_v51  ;;  %v576_v52 = vsel %vm575_vm3, %v567_v50, -inf }
 0x50d   :  { %577 = vmax.xlane.f32.xlu0 %v576_v52 }
 0x599   :  { %v581_v53 = vpop.xlane.xlu1 %580 }
 0x59a   :  { %v583_v54 = vsub.f32 %v572_v48, %v581_v53  ;;  %v578_v55 = vpop.xlane.xlu0 %577 }
 0x59b   :  { %v582_v56 = vsub.f32 %v567_v50, %v578_v55 }
 0x59c   :  { %v586_v57 = vmul.f32 1.442695, %v583_v54 }
 0x59d   :  { %v584_v58 = vmul.f32 1.442695, %v582_v56 }
 0x59e   :  { %4722 = vpow2.f32 %v586_v57 }
 0x59f   :  { %4724 = vpow2.f32 %v584_v58 }
 0x5a8   :  { %v4723_v59 = vpop.eup %4722 }
 0x5a9   :  { %v4725_v60 = vpop.eup %4724  ;;  %v591_v61 = vsel %vm575_vm3, %v4723_v59, 0.0 }
 0x5aa   :  { %592 = vadd.xlane.f32.xlu1 %v591_v61  ;;  %v588_v62 = vsel %vm575_vm3, %v4725_v60, 0.0 }
 0x5ab   :  { %589 = vadd.xlane.f32.xlu0 %v588_v62 }
 0x637   :  { %v593_v63 = vpop.xlane.xlu1 %592 }
 0x638   :  { %4726 = vrcp.f32 %v593_v63  ;;  %v590_v0 = vpop.xlane.xlu0 %589 }
 0x639   :  { %4728 = vrcp.f32 %v590_v0 }
 0x642   :  { %v4727_v1 = vpop.eup %4726 }
 0x643   :  { %v4729_v2 = vpop.eup %4728  ;;  %v597_v5 = vmul.f32 %v4727_v1, %v4723_v59 }
 0x644   :  { %v595_v4 = vmul.f32 %v4729_v2, %v4725_v60 }
 0x646   :  { %4197 = vmatprep.mubr.msk.f32.mxu0 %vm575_vm3, %v595_v4 }
 0x647   :  { %4198 = vmatmul.mubr.msk.f32.vlgmr.msra.gmra.mrb[6].mxu0 %vm575_vm3, %v597_v5 }
 0x648   :  { %4521 = vmatpush3.bf16.xpose.msk.msra.mxu0 %vm4992_vm2, %v4996_v33  ;;  %4204 = vmatprep.mubr.msk.f32.mxu0 %vm118_vm1, %v687_v6 }
 0x649   :  { %4533 = vmatprep.subr.bf16.mxu0 %v5012_v43 }
 0x64f   :  { %4205 = vmatmul.mubr.msk.f32.vlgmr.msra.gmra.mrb[8].mxu0 %vm118_vm1, %v688_v7 }
 0x650   :  { %4535 = vmatpush3.bf16.msra.mxu0 %v5012_v43 }
 0x651   :  { %4538 = vmatprep.subr.msk.bf16.mxu0 %vm4992_vm2, %v4996_v33 }
 0x71a   :  { %v4199_v8 = vpop.f32.mrb[6].mxu0 }
 0x71b   :  { %v670_v9 = vpop.f32.mrb[7].mxu0  ;;  %v680_v44 = vmul.f32 %v4199_v8, %v4986_v26 }
 0x71c   :  { %v679_v49 = vmul.f32 %v4986_v26, %v670_v9  ;;  %v5101_v9 = vld [vmem:[%s5614_s1 + $0x4b] ss:$0 sm:$0xff] }
 0x722   :  { %v4206_v10 = vpop.f32.mrb[8].mxu0 }
 0x723   :  { %v767_v11 = vadd.f32 %v4206_v10, %v5030_v45  ;;  %v761_v12 = vpop.f32.mrb[9].mxu0 }
 0x724   :  { %v762_v13 = vadd.f32 %v761_v12, %v5035_v46  ;;  %v1075_v12 = vmul.f32 %v5101_v9, %v4988_v30 }
 0x725   :  { %v773_v14 = vsel %vm575_vm3, %v767_v11, -inf }
 0x726   :  { %774 = vmax.xlane.f32.xlu1 %v773_v14  ;;  %v770_v15 = vsel %vm575_vm3, %v762_v13, -inf }
 0x727   :  { %771 = vmax.xlane.f32.xlu0 %v770_v15 }
 0x7b3   :  { %v775_v16 = vpop.xlane.xlu1 %774 }
 0x7b4   :  { %v777_v17 = vsub.f32 %v767_v11, %v775_v16  ;;  %v772_v18 = vpop.xlane.xlu0 %771 }
 0x7b5   :  { %v776_v19 = vsub.f32 %v762_v13, %v772_v18  ;;  %v1076_v13 = vmul.f32 %v5101_v9, %v5010_v38 }
 0x7b6   :  { %v780_v20 = vmul.f32 1.442695, %v777_v17 }
 0x7b7   :  { %v778_v21 = vmul.f32 1.442695, %v776_v19 }
 0x7b8   :  { %4730 = vpow2.f32 %v780_v20 }
 0x7b9   :  { %4732 = vpow2.f32 %v778_v21 }
 0x7c2   :  { %v4731_v22 = vpop.eup %4730 }
 0x7c3   :  { %v4733_v23 = vpop.eup %4732  ;;  %v785_v24 = vsel %vm575_vm3, %v4731_v22, 0.0 }
 0x7c4   :  { %786 = vadd.xlane.f32.xlu1 %v785_v24  ;;  %v782_v25 = vsel %vm575_vm3, %v4733_v23, 0.0 }
 0x7c5   :  { %783 = vadd.xlane.f32.xlu0 %v782_v25 }
 0x851   :  { %v787_v27 = vpop.xlane.xlu1 %786 }
 0x852   :  { %4734 = vrcp.f32 %v787_v27  ;;  %v784_v28 = vpop.xlane.xlu0 %783 }
 0x853   :  { %4736 = vrcp.f32 %v784_v28 }
 0x85c   :  { %v4735_v29 = vpop.eup %4734 }
 0x85d   :  { %v4737_v31 = vpop.eup %4736  ;;  %v791_v37 = vmul.f32 %v4735_v29, %v4731_v22 }
 0x85e   :  { %v789_v36 = vmul.f32 %v4737_v31, %v4733_v23 }
 0x860   :  { %4211 = vmatprep.mubr.msk.f32.mxu1 %vm575_vm3, %v789_v36 }
 0x861   :  { %4212 = vmatmul.mubr.msk.f32.vlgmr.msra.gmra.mrb[4].mxu1 %vm575_vm3, %v791_v37 }
 0x862   :  { %4531 = vmatpush3.bf16.xpose.msk.msra.mxu1 %vm4992_vm2, %v4996_v33  ;;  %4218 = vmatprep.mubr.msk.f32.mxu1 %vm118_vm1, %v881_v39 }
 0x863   :  { %4543 = vmatprep.subr.bf16.mxu1 %v5012_v43 }
 0x869   :  { %4219 = vmatmul.mubr.msk.f32.vlgmr.msra.gmra.mrb[6].mxu1 %vm118_vm1, %v882_v41  ;;  %v180_v41 = vld [vmem:[%s5616_s2 + $0x60] sm:$0xff] }
 0x86a   :  { %4545 = vmatpush3.bf16.msra.mxu1 %v5012_v43 }
 0x934   :  { %v4213_v42 = vpop.f32.mrb[4].mxu1 }
 0x935   :  { %v874_v47 = vmul.f32 %v4213_v42, %v5046_v3  ;;  %v864_v48 = vpop.f32.mrb[5].mxu1  ;;  %v181_v42 = vld [vmem:[%s5616_s2 + $0x68] sm:$0xff] }
 0x936   :  { %v873_v50 = vmul.f32 %v5046_v3, %v864_v48 }
 0x937   :  { %v876_v51 = vadd.f32 %v874_v47, %v680_v44  ;;  %v4546_v44 = vpack.c.bf16 %v181_v42, %v180_v41 }
 0x938   :  { %v875_v52 = vadd.f32 %v873_v50, %v679_v49 }
 0x939   :  { %4547 = vmatprep.subr.bf16.mxu1 %v4546_v44 }
 0x93c   :  { %v4220_v53 = vpop.f32.mrb[6].mxu1 }
 0x93d   :  { %v961_v54 = vadd.f32 %v4220_v53, %v5030_v45  ;;  %v955_v55 = vpop.f32.mrb[7].mxu1  ;;  %v182_v53 = vld [vmem:[%s5616_s2 + $0x70] sm:$0xff] }
 0x93e   :  { %v956_v56 = vadd.f32 %v955_v55, %v5035_v46 }
 0x93f   :  { %v967_v43 = vsel %vm575_vm3, %v961_v54, -inf }
 0x940   :  { %968 = vmax.xlane.f32.xlu1 %v967_v43  ;;  %v964_v57 = vsel %vm575_vm3, %v956_v56, -inf }
 0x941   :  { %965 = vmax.xlane.f32.xlu0 %v964_v57 }
 0x9cd   :  { %v969_v58 = vpop.xlane.xlu1 %968 }
 0x9ce   :  { %v971_v59 = vsub.f32 %v961_v54, %v969_v58  ;;  %v966_v60 = vpop.xlane.xlu0 %965  ;;  %v183_v54 = vld [vmem:[%s5616_s2 + $0x78] sm:$0xff] }
 0x9cf   :  { %v970_v61 = vsub.f32 %v956_v56, %v966_v60  ;;  %v4550_v55 = vpack.c.bf16 %v183_v54, %v182_v53  ;;  %v193_v53 = vld [vmem:[%s5616_s2 + $0xc8] sm:$0xff] }
 0x9d0   :  { %v974_v62 = vmul.f32 1.442695, %v971_v59 }
 0x9d1   :  { %v972_v63 = vmul.f32 1.442695, %v970_v61 }
 0x9d2   :  { %4738 = vpow2.f32 %v974_v62  ;;  %v3866_v62 = vld [vmem:[%s5614_s1 + $0x120] ss:$0 sm:$0xff] }
 0x9d3   :  { %4740 = vpow2.f32 %v972_v63 }
 0x9dc   :  { %v4739_v0 = vpop.eup %4738 }
 0x9dd   :  { %v4741_v1 = vpop.eup %4740  ;;  %v979_v2 = vsel %vm575_vm3, %v4739_v0, 0.0 }
 0x9de   :  { %980 = vadd.xlane.f32.xlu1 %v979_v2  ;;  %v976_v4 = vsel %vm575_vm3, %v4741_v1, 0.0 }
 0x9df   :  { %977 = vadd.xlane.f32.xlu0 %v976_v4 }
 0xa6b   :  { %v981_v5 = vpop.xlane.xlu1 %980 }
 0xa6c   :  { %4742 = vrcp.f32 %v981_v5  ;;  %v978_v6 = vpop.xlane.xlu0 %977 }
 0xa6d   :  { %4744 = vrcp.f32 %v978_v6 }
 0xa76   :  { %v4743_v7 = vpop.eup %4742 }
 0xa77   :  { %v4745_v8 = vpop.eup %4744  ;;  %v985_v11 = vmul.f32 %v4743_v7, %v4739_v0 }
 0xa78   :  { %v983_v10 = vmul.f32 %v4745_v8, %v4741_v1 }
 0xa7a   :  { %4225 = vmatprep.mubr.msk.f32.mxu0 %vm575_vm3, %v983_v10 }
 0xa7b   :  { %4226 = vmatmul.mubr.msk.f32.vlgmr.msra.gmra.mrb[10].mxu0 %vm575_vm3, %v985_v11 }
 0xa7c   :  { %4541 = vmatpush3.bf16.xpose.msk.msra.mxu0 %vm4992_vm2, %v4996_v33  ;;  %4232 = vmatprep.mubr.msk.f32.mxu0 %vm118_vm1, %v1075_v12 }
 0xa83   :  { %4233 = vmatmul.mubr.msk.f32.vlgmr.msra.gmra.mrb[12].mxu0 %vm118_vm1, %v1076_v13 }
 0xb4e   :  { %v4227_v14 = vpop.f32.mrb[10].mxu0 }
 0xb4f   :  { %v1068_v15 = vmul.f32 %v4227_v14, %v5073_v34  ;;  %v1058_v16 = vpop.f32.mrb[11].mxu0 }
 0xb50   :  { %v1067_v17 = vmul.f32 %v5073_v34, %v1058_v16  ;;  %v184_v16 = vld [vmem:[%s5616_s2 + $0x80] sm:$0xff] }
 0xb51   :  { %v1070_v30 = vadd.f32 %v1068_v15, %v876_v51 }
 0xb52   :  { %v1069_v18 = vadd.f32 %v1067_v17, %v875_v52  ;;  %v185_v17 = vld [vmem:[%s5616_s2 + $0x88] sm:$0xff] }
 0xb56   :  { %v4234_v19 = vpop.f32.mrb[12].mxu0 }
 0xb57   :  { %v1155_v20 = vadd.f32 %v4234_v19, %v5030_v45  ;;  %v1149_v21 = vpop.f32.mrb[13].mxu0  ;;  %v187_v19 = vld [vmem:[%s5616_s2 + $0x98] sm:$0xff] }
 0xb58   :  { %v1150_v33 = vadd.f32 %v1149_v21, %v5035_v46 }
 0xb59   :  { %v1161_v22 = vsel %vm575_vm3, %v1155_v20, -inf }
 0xb5a   :  { %1162 = vmax.xlane.f32.xlu1 %v1161_v22  ;;  %v1158_v38 = vsel %vm575_vm3, %v1150_v33, -inf }
 0xb5b   :  { %1159 = vmax.xlane.f32.xlu0 %v1158_v38 }
 0xbe7   :  { %v1163_v23 = vpop.xlane.xlu1 %1162 }
 0xbe8   :  { %v1165_v24 = vsub.f32 %v1155_v20, %v1163_v23  ;;  %v1160_v25 = vpop.xlane.xlu0 %1159 }
 0xbe9   :  { %v1164_v27 = vsub.f32 %v1150_v33, %v1160_v25 }
 0xbea   :  { %v1168_v28 = vmul.f32 1.442695, %v1165_v24 }
 0xbeb   :  { %v1166_v29 = vmul.f32 1.442695, %v1164_v27  ;;  %v3867_v27 = vld [vmem:[%s5614_s1 + $0x128] ss:$0 sm:$0xff] }
 0xbec   :  { %4746 = vpow2.f32 %v1168_v28 }
 0xbed   :  { %4748 = vpow2.f32 %v1166_v29 }
 0xbf6   :  { %v4747_v31 = vpop.eup %4746 }
 0xbf7   :  { %v4749_v36 = vpop.eup %4748  ;;  %v1173_v37 = vsel %vm575_vm3, %v4747_v31, 0.0 }
 0xbf8   :  { %1174 = vadd.xlane.f32.xlu1 %v1173_v37  ;;  %v1170_v39 = vsel %vm575_vm3, %v4749_v36, 0.0 }
 0xbf9   :  { %1171 = vadd.xlane.f32.xlu0 %v1170_v39 }
 0xc85   :  { %v1175_v47 = vpop.xlane.xlu1 %1174 }
 0xc86   :  { %4750 = vrcp.f32 %v1175_v47  ;;  %v1172_v48 = vpop.xlane.xlu0 %1171  ;;  %v189_v47 = vld [vmem:[%s5616_s2 + $0xa8] sm:$0xff] }
 0xc87   :  { %4752 = vrcp.f32 %v1172_v48 }
 0xc90   :  { %v4751_v49 = vpop.eup %4750 }
 0xc91   :  { %v4753_v50 = vpop.eup %4752  ;;  %v1179_v52 = vmul.f32 %v4751_v49, %v4747_v31  ;;  %v190_v49 = vld [vmem:[%s5616_s2 + $0xb0] sm:$0xff] }
 0xc92   :  { %v1177_v51 = vmul.f32 %v4753_v50, %v4749_v36  ;;  %v3868_v36 = vld [vmem:[%s5614_s1 + $0x130] ss:$0 sm:$0xff]  ;;  %v191_v50 = vld [vmem:[%s5616_s2 + $0xb8] sm:$0xff] }
 0xc94   :  { %4239 = vmatprep.mubr.msk.f32.mxu1 %vm575_vm3, %v1177_v51  ;;  %v4566_v51 = vpack.c.bf16 %v191_v50, %v190_v49 }
 0xc95   :  { %4240 = vmatmul.mubr.msk.f32.vlgmr.msra.gmra.mrb[8].mxu1 %vm575_vm3, %v1179_v52  ;;  %v192_v52 = vld [vmem:[%s5616_s2 + $0xc0] sm:$0xff] }
 0xc96   :  { %4549 = vmatpush3.bf16.msra.mxu1 %v4546_v44  ;;  %v188_v44 = vld [vmem:[%s5616_s2 + $0xa0] sm:$0xff]  ;;  %v4570_v54 = vpack.c.bf16 %v193_v53, %v192_v52 }
 0xc97   :  { %4551 = vmatprep.subr.bf16.mxu1 %v4550_v55  ;;  %v4562_v48 = vpack.c.bf16 %v189_v47, %v188_v44  ;;  %v4845_v47 = vmov 1.0  }
 0xc9a   :  { %4553 = vmatpush3.bf16.msra.mxu1 %v4550_v55  ;;  %v194_v55 = vld [vmem:[%s5616_s2 + $0xd0] sm:$0xff] }
 0xc9b   :  { %4563 = vmatprep.subr.bf16.mxu1 %v4562_v48 }
 0xd68   :  { %v4241_v56 = vpop.f32.mrb[8].mxu1 }
 0xd69   :  { %v1262_v43 = vmul.f32 %v4241_v56, %v5101_v9  ;;  %v1252_v57 = vpop.f32.mrb[9].mxu1  ;;  %v195_v56 = vld [vmem:[%s5616_s2 + $0xd8] sm:$0xff] }
 0xd6a   :  { %v1261_v58 = vmul.f32 %v5101_v9, %v1252_v57  ;;  %v3869_v57 = vld [vmem:[%s5614_s1 + $0x138] ss:$0 sm:$0xff] }
 0xd6b   :  { %v1264_v59 = vadd.f32 %v1262_v43, %v1070_v30  ;;  %v4554_v30 = vpack.c.bf16 %v185_v17, %v184_v16  ;;  %v4574_v43 = vpack.c.bf16 %v195_v56, %v194_v55 }
 0xd6c   :  { %v1263_v60 = vadd.f32 %v1261_v58, %v1069_v18  ;;  %v186_v18 = vld [vmem:[%s5616_s2 + $0x90] sm:$0xff] }
 0xd6d   :  { %4555 = vmatprep.subr.bf16.mxu0 %v4554_v30  ;;  %v4558_v20 = vpack.c.bf16 %v187_v19, %v186_v18 }
 0xd6e   :  { %4250 = vmatprep.mubr.msk.f32.mxu1 %vm118_vm1, %v1263_v60  ;;  %4557 = vmatpush3.bf16.msra.mxu0 %v4554_v30 }
 0xd6f   :  { %4251 = vmatmul.mubr.msk.f32.vlgmr.msra.gmra.mrb[10].mxu1 %vm118_vm1, %v1264_v59  ;;  %4559 = vmatprep.subr.bf16.mxu0 %v4558_v20 }
 0xd70   :  { %4565 = vmatpush3.bf16.msra.mxu1 %v4562_v48 }
 0xd71   :  { %4567 = vmatprep.subr.bf16.mxu1 %v4566_v51 }
 0xd72   :  { %4561 = vmatpush3.bf16.msra.mxu0 %v4558_v20 }
 0xd74   :  { %4569 = vmatpush3.bf16.msra.mxu1 %v4566_v51 }
 0xd75   :  { %4571 = vmatprep.subr.bf16.mxu1 %v4570_v54 }
 0xd78   :  { %4573 = vmatpush3.bf16.msra.mxu1 %v4570_v54 }
 0xd79   :  { %4575 = vmatprep.subr.bf16.mxu1 %v4574_v43 }
 0xd7c   :  { %4577 = vmatpush3.bf16.msra.mxu1 %v4574_v43 }
 0xe42   :  { %v4252_v61 = vpop.f32.mrb[10].mxu1 }
 0xe43   :  { %v1347_v63 = vadd.f32 %v4252_v61, %v4921_v40  ;;  %v1337_v0 = vpop.f32.mrb[11].mxu1 }
 0xe44   :  { %v1346_v1 = vadd.f32 %v1337_v0, %v4914_v35 }
 0xe45   :  { %v5145_v2 = vadd.f32 %v3866_v62, %v1347_v63 }
 0xe46   :  { %v5147_v4 = vadd.f32 %v3866_v62, %v1346_v1 }
 0xe47   :  { %v1360_v5 = vsel %vm118_vm1, %v5145_v2, 0.0 }
 0xe48   :  { %1361 = vadd.xlane.f32.xlu1 %v1360_v5  ;;  %v1357_v6 = vsel %vm118_vm1, %v5147_v4, 0.0 }
 0xe49   :  { %1358 = vadd.xlane.f32.xlu0 %v1357_v6 }
 0xed5   :  { %v1362_v7 = vpop.xlane.xlu1 %1361 }
 0xed6   :  { %v1364_v8 = vmul.f32 0.03125, %v1362_v7  ;;  %v1359_v10 = vpop.xlane.xlu0 %1358 }
 0xed7   :  { %v1363_v11 = vmul.f32 0.03125, %v1359_v10 }
 0xed8   :  { %v1366_v40 = vsub.f32 %v5145_v2, %v1364_v8 }
 0xed9   :  { %v1365_v35 = vsub.f32 %v5147_v4, %v1363_v11 }
 0xeda   :  { %v1368_v12 = vmul.f32 %v1366_v40, %v1366_v40 }
 0xedb   :  { %v1367_v13 = vmul.f32 %v1365_v35, %v1365_v35 }
 0xedc   :  { %v1372_v14 = vsel %vm118_vm1, %v1368_v12, 0.0 }
 0xedd   :  { %1373 = vadd.xlane.f32.xlu1 %v1372_v14  ;;  %v1369_v15 = vsel %vm118_vm1, %v1367_v13, 0.0 }
 0xede   :  { %1370 = vadd.xlane.f32.xlu0 %v1369_v15 }
 0xf6a   :  { %v1374_v21 = vpop.xlane.xlu1 %1373 }
 0xf6b   :  { %v1376_v33 = vmul.f32 0.03125, %v1374_v21  ;;  %v1371_v22 = vpop.xlane.xlu0 %1370 }
 0xf6c   :  { %v1375_v38 = vmul.f32 0.03125, %v1371_v22 }
 0xf6d   :  { %v1378_v23 = vadd.f32 1e-05, %v1376_v33 }
 0xf6e   :  { %v1377_v24 = vadd.f32 1e-05, %v1375_v38 }
 0xf6f   :  { %4754 = vrsqrt.f32 %v1378_v23 }
 0xf70   :  { %4756 = vrsqrt.f32 %v1377_v24 }
 0xf79   :  { %v4755_v25 = vpop.eup %4754 }
 0xf7a   :  { %v4757_v28 = vpop.eup %4756  ;;  %v1382_v29 = vmul.f32 %v4755_v25, %v1366_v40 }
 0xf7b   :  { %v1381_v31 = vmul.f32 %v4757_v28, %v1365_v35 }
 0xf7c   :  { %v1388_v37 = vmul.f32 %v3867_v27, %v1382_v29 }
 0xf7d   :  { %v1387_v39 = vmul.f32 %v3867_v27, %v1381_v31 }
 0xf7e   :  { %v1394_v42 = vadd.f32 %v3868_v36, %v1388_v37 }
 0xf7f   :  { %v1393_v41 = vadd.f32 %v3868_v36, %v1387_v39 }
 0xf81   :  { %4261 = vmatprep.mubr.msk.f32.mxu0 %vm118_vm1, %v1393_v41 }
 0xf82   :  { %4262 = vmatmul.mubr.msk.f32.vlgmr.msra.gmra.mrb[14].mxu0 %vm118_vm1, %v1394_v42 }
0x1055   :  { %v4263_v58 = vpop.f32.mrb[14].mxu0 }
0x1056   :  { %v1478_v59 = vadd.f32 %v4263_v58, %v3869_v57  ;;  %v1472_v60 = vpop.f32.mrb[15].mxu0 }
0x1057   :  { %v1473_v61 = vadd.f32 %v3869_v57, %v1472_v60  ;;  %v3874_v60 = vld [vmem:[%s5614_s1 + $0x140] ss:$0 sm:$0xff] }
0x1058   :  { %v1484_v62 = vmul.f32 0.70710677, %v1478_v59  ;;  %v1482_v56 = vmul.f32 0.5, %v1478_v59 }
0x1059   :  { %v1483_v63 = vmul.f32 0.70710677, %v1473_v61  ;;  %v1481_v54 = vmul.f32 0.5, %v1473_v61 }
0x105a   :  { %v1490_v0 = vand.u32 2147483647, %v1484_v62  ;;  %vm1486_vm4 = vcmp.lt.f32.partialorder %v1484_v62, 0.0 }
0x105b   :  { %v1489_v1 = vand.u32 2147483647, %v1483_v63  ;;  %vm1485_vm5 = vcmp.lt.f32.partialorder %v1483_v63, 0.0  ;;  %v1488_v48 = vsel %vm1486_vm4, -1.0, %v4845_v47 }
0x105c   :  { %v1492_v5 = vmul.f32 0.3275911, %v1490_v0  ;;  %v1518_v10 = vsub.f32 0.0, %v1490_v0  ;;  %v1487_v51 = vsel %vm1485_vm5, -1.0, %v4845_v47 }
0x105d   :  { %v1491_v6 = vmul.f32 0.3275911, %v1489_v1  ;;  %v1517_v11 = vsub.f32 0.0, %v1489_v1 }
0x105e   :  { %v1494_v7 = vadd.f32 1.0, %v1492_v5  ;;  %v1520_v35 = vmul.f32 %v1518_v10, %v1490_v0 }
0x105f   :  { %v1493_v8 = vadd.f32 1.0, %v1491_v6  ;;  %v1519_v14 = vmul.f32 %v1517_v11, %v1489_v1 }
0x1060   :  { %4758 = vrcp.f32 %v1494_v7  ;;  %v1523_v17 = vmul.f32 1.442695, %v1520_v35 }
0x1061   :  { %4760 = vrcp.f32 %v1493_v8  ;;  %v1521_v19 = vmul.f32 1.442695, %v1519_v14  ;;  %v3876_v14 = vld [vmem:[%s5616_s2 + $0xe8] sm:$0xff] }
0x1062   :  { %4762 = vpow2.f32 %v1523_v17  ;;  %v3884_v17 = vld [vmem:[%s5616_s2 + $0x128] sm:$0xff] }
0x1063   :  { %4764 = vpow2.f32 %v1521_v19  ;;  %v3878_v19 = vld [vmem:[%s5616_s2 + $0xf8] sm:$0xff] }
0x106a   :  { %v4759_v40 = vpop.eup %4758 }
0x106b   :  { %v4761_v12 = vpop.eup %4760  ;;  %v1500_v13 = vmul.f32 1.0614054, %v4759_v40 }
0x106c   :  { %v1499_v15 = vmul.f32 1.0614054, %v4761_v12  ;;  %v4763_v36 = vpop.eup %4762 }
0x106d   :  { %v1502_v16 = vadd.f32 -1.4531521, %v1500_v13  ;;  %v4765_v39 = vpop.eup %4764  ;;  %v3875_v13 = vld [vmem:[%s5616_s2 + $0xe0] sm:$0xff] }
0x106e   :  { %v1501_v30 = vadd.f32 -1.4531521, %v1499_v15  ;;  %v4578_v15 = vpack.c.bf16 %v3876_v14, %v3875_v13 }
0x106f   :  { %v1504_v18 = vmul.f32 %v4759_v40, %v1502_v16  ;;  %v3883_v16 = vld [vmem:[%s5616_s2 + $0x120] sm:$0xff] }
0x1070   :  { %v1503_v20 = vmul.f32 %v4761_v12, %v1501_v30  ;;  %v4594_v30 = vpack.c.bf16 %v3884_v17, %v3883_v16  ;;  %4579 = vmatprep.subr.bf16.mxu0 %v4578_v15 }
0x1071   :  { %v1506_v21 = vadd.f32 1.4214138, %v1504_v18  ;;  %4581 = vmatpush3.bf16.msra.mxu0 %v4578_v15  ;;  %v3877_v18 = vld [vmem:[%s5616_s2 + $0xf0] sm:$0xff] }
0x1072   :  { %v1505_v33 = vadd.f32 1.4214138, %v1503_v20  ;;  %4595 = vmatprep.subr.bf16.mxu1 %v4594_v30  ;;  %v3885_v20 = vld [vmem:[%s5616_s2 + $0x130] sm:$0xff] }
0x1073   :  { %v1508_v22 = vmul.f32 %v4759_v40, %v1506_v21  ;;  %v4582_v21 = vpack.c.bf16 %v3878_v19, %v3877_v18 }
0x1074   :  { %v1507_v38 = vmul.f32 %v4761_v12, %v1505_v33  ;;  %v3886_v33 = vld [vmem:[%s5616_s2 + $0x138] sm:$0xff] }
0x1075   :  { %v1510_v23 = vadd.f32 -0.28449672, %v1508_v22  ;;  %v4598_v22 = vpack.c.bf16 %v3886_v33, %v3885_v20  ;;  %4583 = vmatprep.subr.bf16.mxu0 %v4582_v21 }
0x1076   :  { %v1509_v24 = vadd.f32 -0.28449672, %v1507_v38  ;;  %4585 = vmatpush3.bf16.msra.mxu0 %v4582_v21  ;;  %v3879_v38 = vld [vmem:[%s5616_s2 + $0x100] sm:$0xff] }
0x1077   :  { %v1512_v25 = vmul.f32 %v4759_v40, %v1510_v23  ;;  %v3880_v23 = vld [vmem:[%s5616_s2 + $0x108] sm:$0xff] }
0x1078   :  { %v1511_v27 = vmul.f32 %v4761_v12, %v1509_v24  ;;  %v4586_v24 = vpack.c.bf16 %v3880_v23, %v3879_v38 }
0x1079   :  { %v1514_v28 = vadd.f32 0.2548296, %v1512_v25 }
0x107a   :  { %v1513_v29 = vadd.f32 0.2548296, %v1511_v27  ;;  %4587 = vmatprep.subr.bf16.mxu0 %v4586_v24 }
0x107b   :  { %v1516_v31 = vmul.f32 %v4759_v40, %v1514_v28 }
0x107c   :  { %v1515_v37 = vmul.f32 %v4761_v12, %v1513_v29 }
0x107d   :  { %v1526_v41 = vmul.f32 %v4763_v36, %v1516_v31 }
0x107e   :  { %v1525_v42 = vmul.f32 %v4765_v39, %v1515_v37  ;;  %v3903_v39 = vld [vmem:[%s5614_s1 + $0x148] ss:$0 sm:$0xff] }
0x107f   :  { %v1528_v44 = vsub.f32 1.0, %v1526_v41 }
0x1080   :  { %v1527_v49 = vsub.f32 1.0, %v1525_v42 }
0x1081   :  { %v1530_v50 = vmul.f32 %v1528_v44, %v1488_v48  ;;  %v3904_v48 = vld [vmem:[%s5614_s1 + $0x150] ss:$0 sm:$0xff] }
0x1082   :  { %v1529_v52 = vmul.f32 %v1527_v49, %v1487_v51  ;;  %v3881_v51 = vld [vmem:[%s5616_s2 + $0x110] sm:$0xff] }
0x1083   :  { %v1532_v53 = vadd.f32 1.0, %v1530_v50 }
0x1084   :  { %v1531_v55 = vadd.f32 1.0, %v1529_v52  ;;  %v3882_v52 = vld [vmem:[%s5616_s2 + $0x118] sm:$0xff] }
0x1085   :  { %v1534_v57 = vmul.f32 %v1532_v53, %v1482_v56  ;;  %v3911_v56 = vld [vmem:[%s5614_s1 + $0x168] ss:$0 sm:$0xff] }
0x1086   :  { %v1533_v43 = vmul.f32 %v1531_v55, %v1481_v54  ;;  %v4590_v55 = vpack.c.bf16 %v3882_v52, %v3881_v51 }
0x1088   :  { %4280 = vmatprep.mubr.msk.f32.mxu1 %vm1535_vm6, %v1533_v43  ;;  %v3905_v43 = vld [vmem:[%s5614_s1 + $0x158] ss:$0 sm:$0xff] }
0x1089   :  { %4281 = vmatmul.mubr.msk.f32.vlgmr.msra.gmra.mrb[12].mxu1 %vm1535_vm6, %v1534_v57 }
0x108a   :  { %4597 = vmatpush3.bf16.msra.mxu1 %v4594_v30 }
0x108b   :  { %4599 = vmatprep.subr.bf16.mxu1 %v4598_v22 }
0x108e   :  { %4601 = vmatpush3.bf16.msra.mxu1 %v4598_v22 }
0x115c   :  { %v4282_v58 = vpop.f32.mrb[12].mxu1 }
0x115d   :  { %v1618_v62 = vadd.f32 %v4282_v58, %v5145_v2  ;;  %v1608_v63 = vpop.f32.mrb[13].mxu1 }
0x115e   :  { %v1617_v0 = vadd.f32 %v1608_v63, %v5147_v4 }
0x115f   :  { %v5213_v61 = vadd.f32 %v3874_v60, %v1618_v62 }
0x1160   :  { %v5215_v59 = vadd.f32 %v3874_v60, %v1617_v0 }
0x1161   :  { %v1660_v1 = vsel %vm118_vm1, %v5213_v61, 0.0 }
0x1162   :  { %1661 = vadd.xlane.f32.xlu1 %v1660_v1  ;;  %v1657_v5 = vsel %vm118_vm1, %v5215_v59, 0.0 }
0x1163   :  { %1658 = vadd.xlane.f32.xlu0 %v1657_v5 }
0x11ef   :  { %v1662_v6 = vpop.xlane.xlu1 %1661 }
0x11f0   :  { %v1664_v7 = vmul.f32 0.03125, %v1662_v6  ;;  %v1659_v8 = vpop.xlane.xlu0 %1658 }
0x11f1   :  { %v1663_v10 = vmul.f32 0.03125, %v1659_v8 }
0x11f2   :  { %v1666_v2 = vsub.f32 %v5213_v61, %v1664_v7  ;;  %v3908_v7 = vld [vmem:[%s5614_s1 + $0x160] ss:$0 sm:$0xff] }
0x11f3   :  { %v1665_v4 = vsub.f32 %v5215_v59, %v1663_v10 }
0x11f4   :  { %v1668_v11 = vmul.f32 %v1666_v2, %v1666_v2 }
0x11f5   :  { %v1667_v40 = vmul.f32 %v1665_v4, %v1665_v4 }
0x11f6   :  { %v1672_v35 = vsel %vm118_vm1, %v1668_v11, 0.0 }
0x11f7   :  { %1673 = vadd.xlane.f32.xlu1 %v1672_v35  ;;  %v1669_v12 = vsel %vm118_vm1, %v1667_v40, 0.0 }
0x11f8   :  { %1670 = vadd.xlane.f32.xlu0 %v1669_v12 }
0x1284   :  { %v1674_v25 = vpop.xlane.xlu1 %1673 }
0x1285   :  { %v1676_v27 = vmul.f32 0.03125, %v1674_v25  ;;  %v1671_v28 = vpop.xlane.xlu0 %1670 }
0x1286   :  { %v1675_v29 = vmul.f32 0.03125, %v1671_v28 }
0x1287   :  { %v1678_v31 = vadd.f32 1e-05, %v1676_v27 }
0x1288   :  { %v1677_v36 = vadd.f32 1e-05, %v1675_v29 }
0x1289   :  { %4766 = vrsqrt.f32 %v1678_v31 }
0x128a   :  { %4768 = vrsqrt.f32 %v1677_v36 }
0x1293   :  { %v4767_v37 = vpop.eup %4766 }
0x1294   :  { %v4769_v41 = vpop.eup %4768  ;;  %v1682_v42 = vmul.f32 %v4767_v37, %v1666_v2 }
0x1295   :  { %v1681_v44 = vmul.f32 %v4769_v41, %v1665_v4 }
0x1296   :  { %v1688_v49 = vmul.f32 %v3903_v39, %v1682_v42 }
0x1297   :  { %v1687_v50 = vmul.f32 %v3903_v39, %v1681_v44 }
0x1298   :  { %v1694_v54 = vadd.f32 %v3904_v48, %v1688_v49 }
0x1299   :  { %v1693_v53 = vadd.f32 %v3904_v48, %v1687_v50 }
0x129b   :  { %4291 = vmatprep.mubr.msk.f32.mxu0 %vm118_vm1, %v1693_v53  ;;  %4313 = vmatprep.mubr.msk.f32.mxu1 %vm118_vm1, %v1693_v53 }
0x129c   :  { %4292 = vmatmul.mubr.msk.f32.vlgmr.msra.gmra.mrb[16].mxu0 %vm118_vm1, %v1694_v54  ;;  %4314 = vmatmul.mubr.msk.f32.vlgmr.msra.gmra.mrb[14].mxu1 %vm118_vm1, %v1694_v54 }
0x129d   :  { %4589 = vmatpush3.bf16.msra.mxu0 %v4586_v24  ;;  %4302 = vmatprep.mubr.msk.f32.mxu0 %vm118_vm1, %v1693_v53 }
0x129e   :  { %4591 = vmatprep.subr.bf16.mxu0 %v4590_v55 }
0x12a1   :  { %4593 = vmatpush3.bf16.msra.mxu0 %v4590_v55 }
0x12a4   :  { %4303 = vmatmul.mubr.msk.f32.vlgmr.msra.gmra.mrb[18].mxu0 %vm118_vm1, %v1694_v54 }
0x136f   :  { %v4293_v57 = vpop.f32.mrb[16].mxu0  ;;  %v4315_v58 = vpop.f32.mrb[14].mxu1 }
0x1370   :  { %v1938_v60 = vadd.f32 %v4315_v58, %v3911_v56  ;;  %v1772_v62 = vpop.f32.mrb[17].mxu0  ;;  %v1932_v63 = vpop.f32.mrb[15].mxu1  ;;  %v5300_v40 = vadd.f32 %v4293_v57, %v3905_v43 }
0x1371   :  { %v5279_v0 = vadd.f32 %v3905_v43, %v1772_v62  ;;  %v1933_v1 = vadd.f32 %v3911_v56, %v1932_v63 }
0x1372   :  { %v1942_v35 = vmul.f32 %v4986_v26, %v5300_v40  ;;  %v2138_v13 = vmul.f32 %v5046_v3, %v5300_v40 }
0x1373   :  { %v5281_v5 = vpack.c.bf16 %v1938_v60, %v1933_v1  ;;  %v1941_v6 = vmul.f32 %v4986_v26, %v5279_v0  ;;  %v2137_v12 = vmul.f32 %v5046_v3, %v5279_v0 }
0x1375   :  { %4320 = vmatprep.mubr.msk.f32.mxu0 %vm118_vm1, %v1941_v6  ;;  %4609 = vmatprep.subr.bf16.mxu1 %v5281_v5  ;;  %v2327_v6 = vmul.f32 %v5073_v34, %v5279_v0 }
0x1376   :  { %4611 = vmatpush3.bf16.msra.mxu1 %v5281_v5 }
0x1377   :  { %v4304_v8 = vpop.f32.mrb[18].mxu0  ;;  %4619 = vmatprep.subr.bf16.mxu1 %v5281_v5 }
0x1378   :  { %v1858_v10 = vadd.f32 %v4304_v8, %v3908_v7  ;;  %v1852_v2 = vpop.f32.mrb[19].mxu0 }
0x1379   :  { %v1853_v4 = vadd.f32 %v3908_v7, %v1852_v2  ;;  %v2328_v7 = vmul.f32 %v5073_v34, %v5300_v40 }
0x137b   :  { %v5292_v11 = vpack.c.bf16 %v1858_v10, %v1853_v4  ;;  %v4842_v4 = vld [vmem:[%s5614_s1 + $0x48] ss:$0 sm:$0xff] }
0x137d   :  { %4604 = vmatprep.subr.msk.bf16.mxu0 %vm4992_vm2, %v5292_v11 }
0x137e   :  { %4607 = vmatpush3.bf16.xpose.msk.msra.mxu0 %vm4992_vm2, %v5292_v11 }
0x137f   :  { %4614 = vmatprep.subr.msk.bf16.mxu0 %vm4992_vm2, %v5292_v11 }
0x1385   :  { %4321 = vmatmul.mubr.msk.f32.vlgmr.msra.gmra.mrb[20].mxu0 %vm118_vm1, %v1942_v35 }
0x1386   :  { %4617 = vmatpush3.bf16.xpose.msk.msra.mxu0 %vm4992_vm2, %v5292_v11  ;;  %4334 = vmatprep.mubr.msk.f32.mxu0 %vm118_vm1, %v2137_v12 }
0x1387   :  { %4629 = vmatprep.subr.bf16.mxu0 %v5281_v5 }
0x138d   :  { %4335 = vmatmul.mubr.msk.f32.vlgmr.msra.gmra.mrb[22].mxu0 %vm118_vm1, %v2138_v13 }
0x138e   :  { %4631 = vmatpush3.bf16.msra.mxu0 %v5281_v5 }
0x138f   :  { %4634 = vmatprep.subr.msk.bf16.mxu0 %vm4992_vm2, %v5292_v11 }
0x1458   :  { %v4322_v26 = vpop.f32.mrb[20].mxu0 }
0x1459   :  { %v2027_v14 = vadd.f32 %v4322_v26, %v5030_v45  ;;  %v2021_v15 = vpop.f32.mrb[21].mxu0 }
0x145a   :  { %v2022_v16 = vadd.f32 %v2021_v15, %v5035_v46 }
0x145b   :  { %v2033_v17 = vsel %vm575_vm3, %v2027_v14, -inf }
0x145c   :  { %2034 = vmax.xlane.f32.xlu1 %v2033_v17  ;;  %v2030_v30 = vsel %vm575_vm3, %v2022_v16, -inf }
0x145d   :  { %2031 = vmax.xlane.f32.xlu0 %v2030_v30 }
0x1460   :  { %v4336_v18 = vpop.f32.mrb[22].mxu0 }
0x1461   :  { %v2217_v19 = vadd.f32 %v4336_v18, %v5030_v45  ;;  %v2211_v20 = vpop.f32.mrb[23].mxu0 }
0x1462   :  { %v2212_v21 = vadd.f32 %v2211_v20, %v5035_v46 }
0x1463   :  { %v2223_v33 = vsel %vm575_vm3, %v2217_v19, -inf }
0x1464   :  { %2224 = vmax.xlane.f32.xlu1 %v2223_v33  ;;  %v2220_v22 = vsel %vm575_vm3, %v2212_v21, -inf }
0x1465   :  { %2221 = vmax.xlane.f32.xlu0 %v2220_v22 }
0x14e9   :  { %v2035_v38 = vpop.xlane.xlu1 %2034 }
0x14ea   :  { %v2037_v23 = vsub.f32 %v2027_v14, %v2035_v38  ;;  %v2032_v24 = vpop.xlane.xlu0 %2031 }
0x14eb   :  { %v2036_v25 = vsub.f32 %v2022_v16, %v2032_v24 }
0x14ec   :  { %v2040_v27 = vmul.f32 1.442695, %v2037_v23 }
0x14ed   :  { %v2038_v28 = vmul.f32 1.442695, %v2036_v25 }
0x14ee   :  { %4770 = vpow2.f32 %v2040_v27 }
0x14ef   :  { %4772 = vpow2.f32 %v2038_v28 }
0x14f1   :  { %v2225_v29 = vpop.xlane.xlu1 %2224 }
0x14f2   :  { %v2227_v31 = vsub.f32 %v2217_v19, %v2225_v29  ;;  %v2222_v45 = vpop.xlane.xlu0 %2221  ;;  %v4844_v19 = vld [vmem:[%s5614_s1 + $0x10] sm:$0xff] }
0x14f3   :  { %v2226_v36 = vsub.f32 %v2212_v21, %v2222_v45 }
0x14f4   :  { %v2230_v37 = vmul.f32 1.442695, %v2227_v31 }
0x14f5   :  { %v2228_v46 = vmul.f32 1.442695, %v2226_v36 }
0x14f6   :  { %4774 = vpow2.f32 %v2230_v37 }
0x14f7   :  { %4776 = vpow2.f32 %v2228_v46 }
0x14f8   :  { %v4771_v39 = vpop.eup %4770 }
0x14f9   :  { %v4773_v41 = vpop.eup %4772  ;;  %v2045_v42 = vsel %vm575_vm3, %v4771_v39, 0.0 }
0x14fa   :  { %2046 = vadd.xlane.f32.xlu1 %v2045_v42  ;;  %v2042_v44 = vsel %vm575_vm3, %v4773_v41, 0.0  ;;  %v2517_v42 = vmul.f32 %v5101_v9, %v5279_v0 }
0x14fb   :  { %2043 = vadd.xlane.f32.xlu0 %v2042_v44  ;;  %v2518_v44 = vmul.f32 %v5101_v9, %v5300_v40 }
0x1500   :  { %v4775_v48 = vpop.eup %4774 }
0x1501   :  { %v4777_v49 = vpop.eup %4776  ;;  %v2235_v50 = vsel %vm575_vm3, %v4775_v48, 0.0 }
0x1502   :  { %2236 = vadd.xlane.f32.xlu1 %v2235_v50  ;;  %v2232_v51 = vsel %vm575_vm3, %v4777_v49, 0.0 }
0x1503   :  { %2233 = vadd.xlane.f32.xlu0 %v2232_v51 }
0x1587   :  { %v2047_v52 = vpop.xlane.xlu1 %2046 }
0x1588   :  { %4778 = vrcp.f32 %v2047_v52  ;;  %v2044_v53 = vpop.xlane.xlu0 %2043 }
0x1589   :  { %4780 = vrcp.f32 %v2044_v53 }
0x158f   :  { %v2237_v54 = vpop.xlane.xlu1 %2236 }
0x1590   :  { %4782 = vrcp.f32 %v2237_v54  ;;  %v2234_v55 = vpop.xlane.xlu0 %2233 }
0x1591   :  { %4784 = vrcp.f32 %v2234_v55 }
0x1592   :  { %v4779_v56 = vpop.eup %4778 }
0x1593   :  { %v4781_v43 = vpop.eup %4780  ;;  %v2051_v58 = vmul.f32 %v4779_v56, %v4771_v39 }
0x1594   :  { %v2049_v57 = vmul.f32 %v4781_v43, %v4773_v41 }
0x1596   :  { %4327 = vmatprep.mubr.msk.f32.mxu1 %vm575_vm3, %v2049_v57 }
0x1597   :  { %4328 = vmatmul.mubr.msk.f32.vlgmr.msra.gmra.mrb[16].mxu1 %vm575_vm3, %v2051_v58 }
0x1598   :  { %4621 = vmatpush3.bf16.msra.mxu1 %v5281_v5 }
0x1599   :  { %4624 = vmatprep.subr.msk.bf16.mxu1 %vm4992_vm2, %v5292_v11 }
0x159a   :  { %v4783_v60 = vpop.eup %4782 }
0x159b   :  { %v4785_v62 = vpop.eup %4784  ;;  %v2241_v1 = vmul.f32 %v4783_v60, %v4775_v48 }
0x159c   :  { %v2239_v63 = vmul.f32 %v4785_v62, %v4777_v49 }
0x159e   :  { %4341 = vmatprep.mubr.msk.f32.mxu1 %vm575_vm3, %v2239_v63 }
0x159f   :  { %4342 = vmatmul.mubr.msk.f32.vlgmr.msra.gmra.mrb[18].mxu1 %vm575_vm3, %v2241_v1 }
0x15a0   :  { %4348 = vmatprep.mubr.msk.f32.mxu1 %vm118_vm1, %v2327_v6 }
0x15a1   :  { %4627 = vmatpush3.bf16.xpose.msk.msra.mxu1 %vm4992_vm2, %v5292_v11 }
0x15a2   :  { %4639 = vmatprep.subr.bf16.mxu1 %v5281_v5 }
0x15a8   :  { %4349 = vmatmul.mubr.msk.f32.vlgmr.msra.gmra.mrb[20].mxu1 %vm118_vm1, %v2328_v7  ;;  %v3887_v7 = vld [vmem:[%s5616_s2 + $0x140] sm:$0xff] }
0x15a9   :  { %4641 = vmatpush3.bf16.msra.mxu1 %v5281_v5  ;;  %v4843_v5 = vld [vmem:[%s5614_s1 + $0x18] sm:$0xff] }
0x166a   :  { %v4329_v8 = vpop.f32.mrb[16].mxu1 }
0x166b   :  { %v2124_v10 = vpop.f32.mrb[17].mxu1  ;;  %v2134_v35 = vmul.f32 %v4842_v4, %v4329_v8  ;;  %v3888_v8 = vld [vmem:[%s5616_s2 + $0x148] sm:$0xff] }
0x166c   :  { %v2133_v26 = vmul.f32 %v4842_v4, %v2124_v10  ;;  %v4642_v10 = vpack.c.bf16 %v3888_v8, %v3887_v7  ;;  %v3898_v7 = vld [vmem:[%s5616_s2 + $0x198] sm:$0xff] }
0x166e   :  { %4643 = vmatprep.subr.bf16.mxu1 %v4642_v10 }
0x1672   :  { %v4343_v2 = vpop.f32.mrb[18].mxu1 }
0x1673   :  { %v2324_v12 = vmul.f32 %v4343_v2, %v5046_v3  ;;  %v2314_v13 = vpop.f32.mrb[19].mxu1 }
0x1674   :  { %v2323_v14 = vmul.f32 %v5046_v3, %v2314_v13 }
0x1675   :  { %v2326_v15 = vadd.f32 %v2324_v12, %v2134_v35 }
0x1676   :  { %v2325_v16 = vadd.f32 %v2323_v14, %v2133_v26  ;;  %v3889_v14 = vld [vmem:[%s5616_s2 + $0x150] sm:$0xff] }
0x167b   :  { %v4350_v17 = vpop.f32.mrb[20].mxu1 }
0x167c   :  { %v2407_v30 = vadd.f32 %v4843_v5, %v4350_v17  ;;  %v2401_v18 = vpop.f32.mrb[21].mxu1 }
0x167d   :  { %v2402_v20 = vadd.f32 %v4844_v19, %v2401_v18 }
0x167e   :  { %v2413_v21 = vsel %vm575_vm3, %v2407_v30, -inf }
0x167f   :  { %2414 = vmax.xlane.f32.xlu1 %v2413_v21  ;;  %v2410_v33 = vsel %vm575_vm3, %v2402_v20, -inf }
0x1680   :  { %2411 = vmax.xlane.f32.xlu0 %v2410_v33  ;;  %v3940_v33 = vld [vmem:[%s5614_s1 + $0x170] ss:$0 sm:$0xff] }
0x170c   :  { %v2415_v3 = vpop.xlane.xlu1 %2414 }
0x170d   :  { %v2417_v22 = vsub.f32 %v2407_v30, %v2415_v3  ;;  %v2412_v38 = vpop.xlane.xlu0 %2411 }
0x170e   :  { %v2416_v23 = vsub.f32 %v2402_v20, %v2412_v38 }
0x170f   :  { %v2420_v24 = vmul.f32 1.442695, %v2417_v22 }
0x1710   :  { %v2418_v25 = vmul.f32 1.442695, %v2416_v23 }
0x1711   :  { %4786 = vpow2.f32 %v2420_v24 }
0x1712   :  { %4788 = vpow2.f32 %v2418_v25 }
0x171b   :  { %v4787_v27 = vpop.eup %4786 }
0x171c   :  { %v4789_v28 = vpop.eup %4788  ;;  %v2425_v29 = vsel %vm575_vm3, %v4787_v27, 0.0 }
0x171d   :  { %2426 = vadd.xlane.f32.xlu1 %v2425_v29  ;;  %v2422_v31 = vsel %vm575_vm3, %v4789_v28, 0.0 }
0x171e   :  { %2423 = vadd.xlane.f32.xlu0 %v2422_v31 }
0x17aa   :  { %v2427_v45 = vpop.xlane.xlu1 %2426 }
0x17ab   :  { %4790 = vrcp.f32 %v2427_v45  ;;  %v2424_v36 = vpop.xlane.xlu0 %2423 }
0x17ac   :  { %4792 = vrcp.f32 %v2424_v36 }
0x17b5   :  { %v4791_v37 = vpop.eup %4790 }
0x17b6   :  { %v4793_v46 = vpop.eup %4792  ;;  %v2431_v41 = vmul.f32 %v4791_v37, %v4787_v27 }
0x17b7   :  { %v2429_v39 = vmul.f32 %v4793_v46, %v4789_v28 }
0x17b9   :  { %4355 = vmatprep.mubr.msk.f32.mxu0 %vm575_vm3, %v2429_v39  ;;  %v3891_v39 = vld [vmem:[%s5616_s2 + $0x160] sm:$0xff] }
0x17ba   :  { %4356 = vmatmul.mubr.msk.f32.vlgmr.msra.gmra.mrb[24].mxu0 %vm575_vm3, %v2431_v41  ;;  %v3892_v41 = vld [vmem:[%s5616_s2 + $0x168] sm:$0xff] }
0x17bb   :  { %4637 = vmatpush3.bf16.xpose.msk.msra.mxu0 %vm4992_vm2, %v5292_v11  ;;  %4362 = vmatprep.mubr.msk.f32.mxu0 %vm118_vm1, %v2517_v42  ;;  %v4650_v42 = vpack.c.bf16 %v3892_v41, %v3891_v39 }
0x17bd   :  { %4651 = vmatprep.subr.bf16.mxu0 %v4650_v42 }
0x17c2   :  { %4363 = vmatmul.mubr.msk.f32.vlgmr.msra.gmra.mrb[26].mxu0 %vm118_vm1, %v2518_v44  ;;  %v3893_v44 = vld [vmem:[%s5616_s2 + $0x170] sm:$0xff] }
0x17c3   :  { %4653 = vmatpush3.bf16.msra.mxu0 %v4650_v42 }
0x188d   :  { %v4357_v48 = vpop.f32.mrb[24].mxu0 }
0x188e   :  { %v2514_v49 = vmul.f32 %v4357_v48, %v5073_v34  ;;  %v2504_v50 = vpop.f32.mrb[25].mxu0  ;;  %v3894_v48 = vld [vmem:[%s5616_s2 + $0x178] sm:$0xff] }
0x188f   :  { %v2513_v51 = vmul.f32 %v5073_v34, %v2504_v50 }
0x1890   :  { %v2516_v0 = vadd.f32 %v2514_v49, %v2326_v15  ;;  %v3890_v15 = vld [vmem:[%s5616_s2 + $0x158] sm:$0xff]  ;;  %v4654_v49 = vpack.c.bf16 %v3894_v48, %v3893_v44 }
0x1891   :  { %v2515_v52 = vadd.f32 %v2513_v51, %v2325_v16  ;;  %v4646_v16 = vpack.c.bf16 %v3890_v15, %v3889_v14 }
0x1892   :  { %4655 = vmatprep.subr.bf16.mxu0 %v4654_v49 }
0x1893   :  { %4657 = vmatpush3.bf16.msra.mxu0 %v4654_v49 }
0x1895   :  { %v4364_v53 = vpop.f32.mrb[26].mxu0 }
0x1896   :  { %v2597_v54 = vadd.f32 %v4843_v5, %v4364_v53  ;;  %v2591_v55 = vpop.f32.mrb[27].mxu0 }
0x1897   :  { %v2592_v32 = vadd.f32 %v4844_v19, %v2591_v55 }
0x1898   :  { %v2603_v11 = vsel %vm575_vm3, %v2597_v54, -inf }
0x1899   :  { %2604 = vmax.xlane.f32.xlu1 %v2603_v11  ;;  %v2600_v56 = vsel %vm575_vm3, %v2592_v32, -inf }
0x189a   :  { %2601 = vmax.xlane.f32.xlu0 %v2600_v56 }
0x1926   :  { %v2605_v40 = vpop.xlane.xlu1 %2604 }
0x1927   :  { %v2607_v43 = vsub.f32 %v2597_v54, %v2605_v40  ;;  %v2602_v57 = vpop.xlane.xlu0 %2601 }
0x1928   :  { %v2606_v58 = vsub.f32 %v2592_v32, %v2602_v57  ;;  %v3941_v32 = vld [vmem:[%s5614_s1 + $0x178] ss:$0 sm:$0xff] }
0x1929   :  { %v2610_v60 = vmul.f32 1.442695, %v2607_v43  ;;  %v3942_v43 = vld [vmem:[%s5614_s1 + $0x180] ss:$0 sm:$0xff] }
0x192a   :  { %v2608_v62 = vmul.f32 1.442695, %v2606_v58 }
0x192b   :  { %4794 = vpow2.f32 %v2610_v60 }
0x192c   :  { %4796 = vpow2.f32 %v2608_v62 }
0x1935   :  { %v4795_v34 = vpop.eup %4794 }
0x1936   :  { %v4797_v63 = vpop.eup %4796  ;;  %v2615_v1 = vsel %vm575_vm3, %v4795_v34, 0.0 }
0x1937   :  { %2616 = vadd.xlane.f32.xlu1 %v2615_v1  ;;  %v2612_v6 = vsel %vm575_vm3, %v4797_v63, 0.0 }
0x1938   :  { %2613 = vadd.xlane.f32.xlu0 %v2612_v6  ;;  %v3897_v6 = vld [vmem:[%s5616_s2 + $0x190] sm:$0xff] }
0x1939   :  { %v4662_v8 = vpack.c.bf16 %v3898_v7, %v3897_v6 }
0x19c4   :  { %v2617_v2 = vpop.xlane.xlu1 %2616 }
0x19c5   :  { %4798 = vrcp.f32 %v2617_v2  ;;  %v2614_v4 = vpop.xlane.xlu0 %2613  ;;  %v3900_v2 = vld [vmem:[%s5616_s2 + $0x1a8] sm:$0xff] }
0x19c6   :  { %4800 = vrcp.f32 %v2614_v4 }
0x19cf   :  { %v4799_v35 = vpop.eup %4798 }
0x19d0   :  { %v4801_v12 = vpop.eup %4800  ;;  %v2621_v26 = vmul.f32 %v4799_v35, %v4795_v34  ;;  %v3895_v34 = vld [vmem:[%s5616_s2 + $0x180] sm:$0xff]  ;;  %v3901_v35 = vld [vmem:[%s5616_s2 + $0x1b0] sm:$0xff] }
0x19d1   :  { %v2619_v13 = vmul.f32 %v4801_v12, %v4797_v63  ;;  %v3896_v63 = vld [vmem:[%s5616_s2 + $0x188] sm:$0xff]  ;;  %v3902_v12 = vld [vmem:[%s5616_s2 + $0x1b8] sm:$0xff] }
0x19d2   :  { %v4658_v1 = vpack.c.bf16 %v3896_v63, %v3895_v34 }
0x19d3   :  { %4369 = vmatprep.mubr.msk.f32.mxu1 %vm575_vm3, %v2619_v13  ;;  %v4670_v13 = vpack.c.bf16 %v3902_v12, %v3901_v35  ;;  %v3948_v35 = vld [vmem:[%s5614_s1 + $0x190] ss:$0 sm:$0xff] }
0x19d4   :  { %4370 = vmatmul.mubr.msk.f32.vlgmr.msra.gmra.mrb[22].mxu1 %vm575_vm3, %v2621_v26  ;;  %v3943_v26 = vld [vmem:[%s5614_s1 + $0x188] ss:$0 sm:$0xff] }
0x19d5   :  { %4645 = vmatpush3.bf16.msra.mxu1 %v4642_v10  ;;  %v3899_v10 = vld [vmem:[%s5616_s2 + $0x1a0] sm:$0xff] }
0x19d6   :  { %4647 = vmatprep.subr.bf16.mxu1 %v4646_v16  ;;  %v4666_v4 = vpack.c.bf16 %v3900_v2, %v3899_v10  ;;  %v4846_v10 = vmov 0.0|0.0   ;;  %v4848_v2 = vmov 0.0  }
0x19d7   :  { %4674 = vmatprep.subr.bf16.mxu0 %v4846_v10 }
0x19d9   :  { %4649 = vmatpush3.bf16.msra.mxu1 %v4646_v16 }
0x19da   :  { %4659 = vmatprep.subr.bf16.mxu1 %v4658_v1 }
0x1aa7   :  { %v4371_v17 = vpop.f32.mrb[22].mxu1 }
0x1aa8   :  { %v2704_v5 = vmul.f32 %v4371_v17, %v5101_v9  ;;  %v2694_v30 = vpop.f32.mrb[23].mxu1 }
0x1aa9   :  { %v2703_v18 = vmul.f32 %v5101_v9, %v2694_v30 }
0x1aaa   :  { %v2706_v19 = vadd.f32 %v2704_v5, %v2516_v0 }
0x1aab   :  { %v2705_v20 = vadd.f32 %v2703_v18, %v2515_v52 }
0x1aad   :  { %4380 = vmatprep.mubr.msk.f32.mxu1 %vm118_vm1, %v2705_v20 }
0x1aae   :  { %4381 = vmatmul.mubr.msk.f32.vlgmr.msra.gmra.mrb[24].mxu1 %vm118_vm1, %v2706_v19 }
0x1aaf   :  { %4661 = vmatpush3.bf16.msra.mxu1 %v4658_v1 }
0x1ab0   :  { %4663 = vmatprep.subr.bf16.mxu1 %v4662_v8 }
0x1ab3   :  { %4665 = vmatpush3.bf16.msra.mxu1 %v4662_v8 }
0x1ab4   :  { %4667 = vmatprep.subr.bf16.mxu1 %v4666_v4 }
0x1ab7   :  { %4669 = vmatpush3.bf16.msra.mxu1 %v4666_v4 }
0x1ab8   :  { %4671 = vmatprep.subr.bf16.mxu1 %v4670_v13 }
0x1abb   :  { %4673 = vmatpush3.bf16.msra.mxu1 %v4670_v13 }
0x1abc   :  { %4689 = vmatprep.subr.bf16.mxu1 %v4846_v10 }
0x1b81   :  { %v4382_v21 = vpop.f32.mrb[24].mxu1 }
0x1b82   :  { %v2789_v3 = vadd.f32 %v4382_v21, %v5213_v61  ;;  %v2779_v22 = vpop.f32.mrb[25].mxu1 }
0x1b83   :  { %v2788_v38 = vadd.f32 %v2779_v22, %v5215_v59 }
0x1b84   :  { %v5408_v23 = vadd.f32 %v3940_v33, %v2789_v3 }
0x1b85   :  { %v5410_v24 = vadd.f32 %v3940_v33, %v2788_v38 }
0x1b86   :  { %v2802_v9 = vsel %vm118_vm1, %v5408_v23, 0.0 }
0x1b87   :  { %2803 = vadd.xlane.f32.xlu1 %v2802_v9  ;;  %v2799_v25 = vsel %vm118_vm1, %v5410_v24, 0.0 }
0x1b88   :  { %2800 = vadd.xlane.f32.xlu0 %v2799_v25 }
0x1c14   :  { %v2804_v27 = vpop.xlane.xlu1 %2803 }
0x1c15   :  { %v2806_v28 = vmul.f32 0.03125, %v2804_v27  ;;  %v2801_v29 = vpop.xlane.xlu0 %2800 }
0x1c16   :  { %v2805_v31 = vmul.f32 0.03125, %v2801_v29 }
0x1c17   :  { %v2808_v61 = vsub.f32 %v5408_v23, %v2806_v28 }
0x1c18   :  { %v2807_v59 = vsub.f32 %v5410_v24, %v2805_v31 }
0x1c19   :  { %v2810_v45 = vmul.f32 %v2808_v61, %v2808_v61 }
0x1c1a   :  { %v2809_v36 = vmul.f32 %v2807_v59, %v2807_v59 }
0x1c1b   :  { %v2814_v37 = vsel %vm118_vm1, %v2810_v45, 0.0 }
0x1c1c   :  { %2815 = vadd.xlane.f32.xlu1 %v2814_v37  ;;  %v2811_v46 = vsel %vm118_vm1, %v2809_v36, 0.0 }
0x1c1d   :  { %2812 = vadd.xlane.f32.xlu0 %v2811_v46 }
0x1ca9   :  { %v2816_v50 = vpop.xlane.xlu1 %2815 }
0x1caa   :  { %v2818_v51 = vmul.f32 0.03125, %v2816_v50  ;;  %v2813_v0 = vpop.xlane.xlu0 %2812 }
0x1cab   :  { %v2817_v52 = vmul.f32 0.03125, %v2813_v0 }
0x1cac   :  { %v2820_v53 = vadd.f32 1e-05, %v2818_v51 }
0x1cad   :  { %v2819_v54 = vadd.f32 1e-05, %v2817_v52 }
0x1cae   :  { %4802 = vrsqrt.f32 %v2820_v53 }
0x1caf   :  { %4804 = vrsqrt.f32 %v2819_v54 }
0x1cb8   :  { %v4803_v55 = vpop.eup %4802 }
0x1cb9   :  { %v4805_v11 = vpop.eup %4804  ;;  %v2824_v56 = vmul.f32 %v4803_v55, %v2808_v61 }
0x1cba   :  { %v2823_v40 = vmul.f32 %v4805_v11, %v2807_v59 }
0x1cbb   :  { %v2830_v57 = vmul.f32 %v3941_v32, %v2824_v56 }
0x1cbc   :  { %v2829_v58 = vmul.f32 %v3941_v32, %v2823_v40 }
0x1cbd   :  { %v2836_v62 = vadd.f32 %v3942_v43, %v2830_v57 }
0x1cbe   :  { %v2835_v60 = vadd.f32 %v3942_v43, %v2829_v58 }
0x1cc0   :  { %4391 = vmatprep.mubr.msk.f32.mxu0 %vm118_vm1, %v2835_v60 }
0x1cc1   :  { %4392 = vmatmul.mubr.msk.f32.vlgmr.msra.gmra.mrb[28].mxu0 %vm118_vm1, %v2836_v62 }
0x1cc2   :  { %4417 = vmatprep.mubr.msk.f32.mxu0 %vm4847_vm9, %v4848_v2 }
0x1d94   :  { %v4393_v14 = vpop.f32.mrb[28].mxu0 }
0x1d95   :  { %v2920_v15 = vadd.f32 %v4393_v14, %v3943_v26  ;;  %v2914_v16 = vpop.f32.mrb[29].mxu0 }
0x1d96   :  { %v2915_v17 = vadd.f32 %v3943_v26, %v2914_v16  ;;  %v3141_v16 = vld [vmem:[%s5614_s1 + $0x60] sm:$0xff] }
0x1d97   :  { %v2926_v5 = vmul.f32 0.70710677, %v2920_v15  ;;  %v2924_v6 = vmul.f32 0.5, %v2920_v15 }
0x1d98   :  { %v2925_v30 = vmul.f32 0.70710677, %v2915_v17  ;;  %v2923_v63 = vmul.f32 0.5, %v2915_v17  ;;  %v3142_v17 = vld [vmem:[%s5614_s1 + $0x68] sm:$0xff] }
0x1d99   :  { %v2932_v18 = vand.u32 2147483647, %v2926_v5  ;;  %vm2928_vm7 = vcmp.lt.f32.partialorder %v2926_v5, 0.0 }
0x1d9a   :  { %v2931_v19 = vand.u32 2147483647, %v2925_v30  ;;  %vm2927_vm8 = vcmp.lt.f32.partialorder %v2925_v30, 0.0  ;;  %v2930_v43 = vsel %vm2928_vm7, -1.0, %v4845_v47  ;;  %v3067_v30 = vld [vmem:[%s5614_s1 + $0x20] sm:$0x3] }
0x1d9b   :  { %v2934_v20 = vmul.f32 0.3275911, %v2932_v18  ;;  %v2960_v22 = vsub.f32 0.0, %v2932_v18  ;;  %v2929_v60 = vsel %vm2927_vm8, -1.0, %v4845_v47 }
0x1d9c   :  { %v2933_v21 = vmul.f32 0.3275911, %v2931_v19  ;;  %v2959_v38 = vsub.f32 0.0, %v2931_v19 }
0x1d9d   :  { %v2936_v33 = vadd.f32 1.0, %v2934_v20  ;;  %v2962_v25 = vmul.f32 %v2960_v22, %v2932_v18  ;;  %v3144_v18 = vld [vmem:[%s5614_s1 + $0x78] sm:$0xff] }
0x1d9e   :  { %v2935_v3 = vadd.f32 1.0, %v2933_v21  ;;  %v2961_v29 = vmul.f32 %v2959_v38, %v2931_v19 }
0x1d9f   :  { %4806 = vrcp.f32 %v2936_v33  ;;  %v2965_v59 = vmul.f32 1.442695, %v2962_v25  ;;  %v3950_v33 = vld [vmem:[%s5614_s1 + $0xb8] ss:$0 sm:$0xff] }
0x1da0   :  { %4808 = vrcp.f32 %v2935_v3  ;;  %v2963_v37 = vmul.f32 1.442695, %v2961_v29 }
0x1da1   :  { %4810 = vpow2.f32 %v2965_v59  ;;  %v3277_v59 = vld [vmem:[%s5614_s1 + $0x88] sm:$0xff] }
0x1da2   :  { %4812 = vpow2.f32 %v2963_v37  ;;  %v3279_v37 = vld [vmem:[%s5614_s1 + $0x98] sm:$0xff] }
0x1da9   :  { %v4807_v9 = vpop.eup %4806 }
0x1daa   :  { %v4809_v27 = vpop.eup %4808  ;;  %v2942_v28 = vmul.f32 1.0614054, %v4807_v9 }
0x1dab   :  { %v2941_v31 = vmul.f32 1.0614054, %v4809_v27  ;;  %v4811_v54 = vpop.eup %4810 }
0x1dac   :  { %v2944_v61 = vadd.f32 -1.4531521, %v2942_v28  ;;  %v4813_v32 = vpop.eup %4812 }
0x1dad   :  { %v2943_v45 = vadd.f32 -1.4531521, %v2941_v31 }
0x1dae   :  { %v2946_v36 = vmul.f32 %v4807_v9, %v2944_v61  ;;  %v3276_v61 = vld [vmem:[%s5614_s1 + $0x80] sm:$0xff] }
0x1daf   :  { %v2945_v46 = vmul.f32 %v4809_v27, %v2943_v45  ;;  %v3278_v45 = vld [vmem:[%s5614_s1 + $0x90] sm:$0xff] }
0x1db0   :  { %v2948_v39 = vadd.f32 1.4214138, %v2946_v36  ;;  %v4684_v36 = vpack.c.bf16 %v3277_v59, %v3276_v61  ;;  %v3957_v59 = vld [vmem:[%s5614_s1 + $0xe0] ss:$0 sm:$0xff] }
0x1db1   :  { %v2947_v41 = vadd.f32 1.4214138, %v2945_v46  ;;  %v4687_v46 = vpack.c.bf16 %v3279_v37, %v3278_v45 }
0x1db2   :  { %v2950_v42 = vmul.f32 %v4807_v9, %v2948_v39 }
0x1db3   :  { %v2949_v44 = vmul.f32 %v4809_v27, %v2947_v41 }
0x1db4   :  { %v2952_v48 = vadd.f32 -0.28449672, %v2950_v42 }
0x1db5   :  { %v2951_v49 = vadd.f32 -0.28449672, %v2949_v44 }
0x1db6   :  { %v2954_v50 = vmul.f32 %v4807_v9, %v2952_v48  ;;  %v3952_v48 = vld [vmem:[%s5614_s1 + $0xc0] ss:$0 sm:$0xff] }
0x1db7   :  { %v2953_v51 = vmul.f32 %v4809_v27, %v2951_v49 }
0x1db8   :  { %v2956_v0 = vadd.f32 0.2548296, %v2954_v50  ;;  %v3953_v50 = vld [vmem:[%s5614_s1 + $0xc8] ss:$0 sm:$0xff] }
0x1db9   :  { %v2955_v52 = vadd.f32 0.2548296, %v2953_v51 }
0x1dba   :  { %v2958_v53 = vmul.f32 %v4807_v9, %v2956_v0 }
0x1dbb   :  { %v2957_v55 = vmul.f32 %v4809_v27, %v2955_v52 }
0x1dbc   :  { %v2968_v11 = vmul.f32 %v4811_v54, %v2958_v53 }
0x1dbd   :  { %v2967_v56 = vmul.f32 %v4813_v32, %v2957_v55 }
0x1dbe   :  { %v2970_v40 = vsub.f32 1.0, %v2968_v11 }
0x1dbf   :  { %v2969_v57 = vsub.f32 1.0, %v2967_v56 }
0x1dc0   :  { %v2972_v58 = vmul.f32 %v2970_v40, %v2930_v43 }
0x1dc1   :  { %v2971_v62 = vmul.f32 %v2969_v57, %v2929_v60 }
0x1dc2   :  { %v2974_v34 = vadd.f32 1.0, %v2972_v58 }
0x1dc3   :  { %v2973_v1 = vadd.f32 1.0, %v2971_v62 }
0x1dc4   :  { %v2976_v8 = vmul.f32 %v2974_v34, %v2924_v6 }
0x1dc5   :  { %v2975_v7 = vmul.f32 %v2973_v1, %v2923_v63 }
0x1dc7   :  { %4410 = vmatprep.mubr.msk.f32.mxu1 %vm1535_vm6, %v2975_v7 }
0x1dc8   :  { %4411 = vmatmul.mubr.msk.f32.vlgmr.msra.gmra.mrb[26].mxu1 %vm1535_vm6, %v2976_v8 }
0x1dc9   :  { %4446 = vmatprep.mubr.msk.f32.mxu1 %vm4847_vm9, %v4848_v2 }
0x1e9b   :  { %v4412_v4 = vpop.f32.mrb[26].mxu1 }
0x1e9c   :  { %v3059_v12 = vadd.f32 %v4412_v4, %v5408_v23  ;;  %v3049_v13 = vpop.f32.mrb[27].mxu1  ;;  %v4678_v23 = vpack.c.bf16 %v3142_v17, %v3141_v16 }
0x1e9d   :  { %v3058_v26 = vadd.f32 %v3049_v13, %v5410_v24  ;;  %v3143_v24 = vld [vmem:[%s5614_s1 + $0x70] sm:$0xff] }
0x1e9e   :  { %v3066_v14 = vadd.f32 %v3948_v35, %v3059_v12  ;;  %v4681_v19 = vpack.c.bf16 %v3144_v18, %v3143_v24 }
0x1e9f   :  { %v3065_v15 = vadd.f32 %v3948_v35, %v3058_v26 }
0x1ea1   :  { %v4675_v5 = vpack.c.bf16 %v3066_v14, %v3065_v15  ;;  %v3954_v15 = vld [vmem:[%s5614_s1 + $0xd0] ss:$0 sm:$0xff] }
0x1ea3   :  { %4676 = vmatpush3.bf16.msra.mxu0 %v4675_v5 }
0x1ea4   :  { %4677 = vmatprep.subr.bf16.mxu0 %v4846_v10 }
0x1ea6   :  { %4418 = vmatmul.mubr.msk.f32.vlgmr.msra.gmra.mrb[30].mxu0 %vm575_vm3, %v3067_v30 }
0x1ea7   :  { %4679 = vmatpush3.bf16.msra.mxu0 %v4678_v23  ;;  %4428 = vmatprep.mubr.msk.f32.mxu0 %vm4847_vm9, %v4848_v2 }
0x1ea8   :  { %4680 = vmatprep.subr.bf16.mxu0 %v4846_v10 }
0x1eab   :  { %4682 = vmatpush3.bf16.msra.mxu0 %v4681_v19 }
0x1eac   :  { %4683 = vmatprep.subr.bf16.mxu0 %v4846_v10 }
0x1f79   :  { %v3137_v20 = vpop.f32.mrb[30].mxu0 }
0x1f7a   :  { %v4419_v21 = vpop.f32.mrb[31].mxu0  ;;  %4429 = vmatmul.mubr.msk.f32.vlgmr.msra.gmra.mrb[32].mxu0 %vm118_vm1, %v3137_v20 }
0x1f7b   :  { %4439 = vmatprep.mubr.msk.f32.mxu0 %vm4847_vm9, %v4848_v2  ;;  %4685 = vmatpush3.bf16.msra.mxu0 %v4684_v36  ;;  %v3412_v21 = vld [vmem:[%s5617_s3] sm:$0xff] }
0x1f7c   :  { %4686 = vmatprep.subr.bf16.mxu0 %v4846_v10 }
0x1f7f   :  { %4688 = vmatpush3.bf16.msra.mxu0 %v4687_v46 }
0x1f80   :  { %4698 = vmatprep.subr.bf16.mxu0 %v4846_v10 }
0x204d   :  { %v3219_v3 = vpop.f32.mrb[32].mxu0 }
0x204e   :  { %v3220_v22 = vadd.f32 %v3950_v33, %v3219_v3  ;;  %v4430_v38 = vpop.f32.mrb[33].mxu0  ;;  %v3413_v33 = vld [vmem:[%s5617_s3 + $0x8] sm:$0xff] }
0x204f   :  { %v4690_v3 = vpack.c.bf16 %v3413_v33, %v3412_v21  ;;  %v3495_v38 = vld [vmem:[%s5614_s1 + $0x30] sm:$0xff] }
0x2050   :  { %v3226_v9 = vsel %vm3225_vm10, %v3220_v22, 0.0  ;;  %v3963_v33 = vld [vmem:[%s5614_s1 + $0xf0] ss:$0 sm:$0xff] }
0x2051   :  { %3227 = vadd.xlane.f32.xlu0 %v3226_v9  ;;  %4691 = vmatpush3.bf16.msra.mxu1 %v4690_v3 }
0x2052   :  { %4692 = vmatprep.subr.bf16.mxu1 %v4846_v10 }
0x20de   :  { %v3228_v25 = vpop.xlane.xlu0 %3227 }
0x20df   :  { %v3229_v27 = vmul.f32 0.03125, %v3228_v25 }
0x20e1   :  { %v3230_v28 = vsub.f32 %v3220_v22, %v3229_v27  ;;  %v3494_v22 = vld [vmem:[%s5614_s1 + $0x28] sm:$0xff] }
0x20e2   :  { %v4693_v9 = vpack.c.bf16 %v3495_v38, %v3494_v22 }
0x20e3   :  { %v3231_v29 = vmul.f32 %v3230_v28, %v3230_v28 }
0x20e5   :  { %v3232_v31 = vsel %vm3225_vm10, %v3231_v29, 0.0 }
0x20e6   :  { %3233 = vadd.xlane.f32.xlu1 %v3232_v31  ;;  %v3956_v31 = vld [vmem:[%s5614_s1 + $0xd8] ss:$0 sm:$0xff] }
0x2173   :  { %v3234_v39 = vpop.xlane.xlu1 %3233 }
0x2174   :  { %v3235_v41 = vmul.f32 0.03125, %v3234_v39 }
0x2176   :  { %v3236_v42 = vadd.f32 1e-05, %v3235_v41 }
0x2178   :  { %4814 = vrsqrt.f32 %v3236_v42 }
0x2182   :  { %v4815_v44 = vpop.eup %4814 }
0x2183   :  { %v3238_v49 = vmul.f32 %v4815_v44, %v3230_v28 }
0x2185   :  { %v3243_v51 = vmul.f32 %v3952_v48, %v3238_v49 }
0x2187   :  { %v3248_v0 = vadd.f32 %v3953_v50, %v3243_v51 }
0x2189   :  { %v3250_v52 = vmul.f32 0.70710677, %v3248_v0  ;;  %v3249_v13 = vmul.f32 0.5, %v3248_v0 }
0x218b   :  { %v3253_v53 = vand.u32 2147483647, %v3250_v52  ;;  %vm3251_vm11 = vcmp.lt.f32.partialorder %v3250_v52, 0.0 }
0x218c   :  { %v3252_v35 = vsel %vm3251_vm11, -1.0, %v4845_v47 }
0x218d   :  { %v3254_v54 = vmul.f32 0.3275911, %v3253_v53  ;;  %v3267_v32 = vsub.f32 0.0, %v3253_v53 }
0x218f   :  { %v3255_v55 = vadd.f32 1.0, %v3254_v54  ;;  %v3268_v56 = vmul.f32 %v3267_v32, %v3253_v53 }
0x2191   :  { %4816 = vrcp.f32 %v3255_v55  ;;  %v3269_v57 = vmul.f32 1.442695, %v3268_v56 }
0x2193   :  { %4818 = vpow2.f32 %v3269_v57 }
0x219b   :  { %v4817_v11 = vpop.eup %4816 }
0x219c   :  { %v3258_v40 = vmul.f32 1.0614054, %v4817_v11 }
0x219d   :  { %v4819_v7 = vpop.eup %4818 }
0x219e   :  { %v3259_v43 = vadd.f32 -1.4531521, %v3258_v40 }
0x21a0   :  { %v3260_v58 = vmul.f32 %v4817_v11, %v3259_v43 }
0x21a2   :  { %v3261_v60 = vadd.f32 1.4214138, %v3260_v58 }
0x21a4   :  { %v3262_v62 = vmul.f32 %v4817_v11, %v3261_v60 }
0x21a6   :  { %v3263_v34 = vadd.f32 -0.28449672, %v3262_v62 }
0x21a8   :  { %v3264_v63 = vmul.f32 %v4817_v11, %v3263_v34 }
0x21aa   :  { %v3265_v1 = vadd.f32 0.2548296, %v3264_v63  ;;  %v3496_v63 = vld [vmem:[%s5614_s1 + $0x38] sm:$0xff] }
0x21ac   :  { %v3266_v6 = vmul.f32 %v4817_v11, %v3265_v1  ;;  %v3497_v1 = vld [vmem:[%s5614_s1 + $0x40] sm:$0xff] }
0x21ae   :  { %v3271_v8 = vmul.f32 %v4819_v7, %v3266_v6  ;;  %v4696_v6 = vpack.c.bf16 %v3497_v1, %v3496_v63  ;;  %v3958_v7 = vld [vmem:[%s5618_s4] ss:$0 sm:$0xff]  ;;  %v3967_v63 = vld [vmem:[%s5614_s1 + $0x51] ss:$0 sm:$0xff]  ;;  %v3966_v1 = vld [vmem:[%s5614_s1 + $0x50] ss:$0 sm:$0xff] }
0x21b0   :  { %v3272_v4 = vsub.f32 1.0, %v3271_v8 }
0x21b2   :  { %v3273_v12 = vmul.f32 %v3272_v4, %v3252_v35 }
0x21b4   :  { %v3274_v26 = vadd.f32 1.0, %v3273_v12 }
0x21b6   :  { %v3275_v14 = vmul.f32 %v3274_v26, %v3249_v13 }
0x21b8   :  { %4440 = vmatmul.mubr.msk.f32.vlgmr.msra.gmra.mrb[34].mxu0 %vm118_vm1, %v3275_v14 }
0x21b9   :  { %4468 = vmatprep.mubr.msk.f32.mxu0 %vm4847_vm9, %v4848_v2  ;;  %4700 = vmatpush3.bf16.msra.mxu0 %v4693_v9 }
0x21ba   :  { %4701 = vmatprep.subr.bf16.mxu0 %v4846_v10 }
0x21bd   :  { %4703 = vmatpush3.bf16.msra.mxu0 %v4696_v6 }
0x228b   :  { %v3354_v16 = vpop.f32.mrb[34].mxu0 }
0x228c   :  { %v3355_v17 = vadd.f32 %v3954_v15, %v3354_v16  ;;  %v4441_v5 = vpop.f32.mrb[35].mxu0  ;;  %v3687_v15 = vld [vmem:[%s5619_s5] sm:$0xff]  ;;  %v3688_v16 = vld [vmem:[%s5619_s5 + $0x8] sm:$0xff] }
0x228d   :  { %v4705_v5 = vpack.c.bf16 %v3688_v16, %v3687_v15  ;;  %v3969_v15 = vld [vmem:[%s5614_s1 + $0x53] ss:$0 sm:$0xff] }
0x228e   :  { %v3361_v30 = vsel %vm3360_vm12, %v3355_v17, 0.0 }
0x228f   :  { %3362 = vadd.xlane.f32.xlu0 %v3361_v30 }
0x231c   :  { %v3363_v23 = vpop.xlane.xlu0 %3362 }
0x231d   :  { %v3365_v24 = vmul.f32 0.0625, %v3363_v23 }
0x231f   :  { %v3366_v18 = vsub.f32 %v3355_v17, %v3365_v24  ;;  %v3689_v17 = vld [vmem:[%s5619_s5 + $0x10] sm:$0xff] }
0x2321   :  { %v3367_v19 = vmul.f32 %v3366_v18, %v3366_v18 }
0x2323   :  { %v3368_v20 = vsel %vm3360_vm12, %v3367_v19, 0.0 }
0x2324   :  { %3369 = vadd.xlane.f32.xlu1 %v3368_v20  ;;  %v3962_v20 = vld [vmem:[%s5614_s1 + $0xe8] ss:$0 sm:$0xff] }
0x23b1   :  { %v3370_v25 = vpop.xlane.xlu1 %3369 }
0x23b2   :  { %v3371_v27 = vmul.f32 0.0625, %v3370_v25 }
0x23b4   :  { %v3372_v28 = vadd.f32 1e-05, %v3371_v27 }
0x23b6   :  { %4820 = vrsqrt.f32 %v3372_v28 }
0x23c0   :  { %v4821_v29 = vpop.eup %4820 }
0x23c1   :  { %v3374_v61 = vmul.f32 %v4821_v29, %v3366_v18 }
0x23c3   :  { %v3379_v45 = vmul.f32 %v3956_v31, %v3374_v61 }
0x23c5   :  { %v3384_v36 = vadd.f32 %v3957_v59, %v3379_v45 }
0x23c7   :  { %v3386_v37 = vmul.f32 0.70710677, %v3384_v36  ;;  %v3385_v60 = vmul.f32 0.5, %v3384_v36 }
0x23c9   :  { %v3389_v46 = vand.u32 2147483647, %v3386_v37  ;;  %vm3387_vm13 = vcmp.lt.f32.partialorder %v3386_v37, 0.0 }
0x23ca   :  { %v3388_v57 = vsel %vm3387_vm13, -1.0, %v4845_v47 }
0x23cb   :  { %v3390_v39 = vmul.f32 0.3275911, %v3389_v46  ;;  %v3403_v42 = vsub.f32 0.0, %v3389_v46 }
0x23cd   :  { %v3391_v41 = vadd.f32 1.0, %v3390_v39  ;;  %v3404_v48 = vmul.f32 %v3403_v42, %v3389_v46 }
0x23cf   :  { %4822 = vrcp.f32 %v3391_v41  ;;  %v3405_v51 = vmul.f32 1.442695, %v3404_v48 }
0x23d1   :  { %4824 = vpow2.f32 %v3405_v51 }
0x23d9   :  { %v4823_v44 = vpop.eup %4822 }
0x23da   :  { %v3394_v49 = vmul.f32 1.0614054, %v4823_v44 }
0x23db   :  { %v4825_v56 = vpop.eup %4824 }
0x23dc   :  { %v3395_v50 = vadd.f32 -1.4531521, %v3394_v49 }
0x23de   :  { %v3396_v0 = vmul.f32 %v4823_v44, %v3395_v50 }
0x23e0   :  { %v3397_v52 = vadd.f32 1.4214138, %v3396_v0 }
0x23e2   :  { %v3398_v53 = vmul.f32 %v4823_v44, %v3397_v52 }
0x23e4   :  { %v3399_v54 = vadd.f32 -0.28449672, %v3398_v53 }
0x23e6   :  { %v3400_v55 = vmul.f32 %v4823_v44, %v3399_v54  ;;  %v3964_v54 = vld [vmem:[%s5620_s6] ss:$0 sm:$0xff] }
0x23e8   :  { %v3401_v32 = vadd.f32 0.2548296, %v3400_v55 }
0x23ea   :  { %v3402_v11 = vmul.f32 %v4823_v44, %v3401_v32 }
0x23ec   :  { %v3407_v40 = vmul.f32 %v4825_v56, %v3402_v11 }
0x23ee   :  { %v3408_v43 = vsub.f32 1.0, %v3407_v40 }
0x23f0   :  { %v3409_v58 = vmul.f32 %v3408_v43, %v3388_v57 }
0x23f2   :  { %v3410_v62 = vadd.f32 1.0, %v3409_v58 }
0x23f4   :  { %v3411_v34 = vmul.f32 %v3410_v62, %v3385_v60 }
0x23f6   :  { %4447 = vmatmul.mubr.msk.f32.vlgmr.msra.gmra.mrb[28].mxu1 %vm575_vm3, %v3411_v34 }
0x23f7   :  { %4694 = vmatpush3.bf16.msra.mxu1 %v4693_v9  ;;  %4457 = vmatprep.mubr.msk.f32.mxu1 %vm4847_vm9, %v4848_v2 }
0x23f8   :  { %4695 = vmatprep.subr.bf16.mxu1 %v4846_v10 }
0x23fb   :  { %4697 = vmatpush3.bf16.msra.mxu1 %v4696_v6 }
0x23fc   :  { %4704 = vmatprep.subr.bf16.mxu1 %v4846_v10 }
0x24c9   :  { %v3490_v8 = vpop.f32.mrb[28].mxu1 }
0x24ca   :  { %v3491_v4 = vadd.f32 %v3958_v7, %v3490_v8  ;;  %v4448_v35 = vpop.f32.mrb[29].mxu1 }
0x24cc   :  { %4458 = vmatmul.mubr.msk.f32.vlgmr.msra.gmra.mrb[30].mxu1 %vm118_vm1, %v3491_v4 }
0x24cd   :  { %4479 = vmatprep.mubr.msk.f32.mxu1 %vm4847_vm9, %v4848_v2  ;;  %v3690_v2 = vld [vmem:[%s5619_s5 + $0x18] sm:$0xff]  ;;  %4706 = vmatpush3.bf16.msra.mxu1 %v4705_v5 }
0x24ce   :  { %v4708_v30 = vpack.c.bf16 %v3690_v2, %v3689_v17  ;;  %4707 = vmatprep.subr.bf16.mxu1 %v4846_v10 }
0x24d1   :  { %4709 = vmatpush3.bf16.msra.mxu1 %v4708_v30 }
0x259f   :  { %v3567_v12 = vpop.f32.mrb[30].mxu1 }
0x25a0   :  { %v3571_v13 = vsub.f32 %v3491_v4, %v3567_v12  ;;  %v4459_v26 = vpop.f32.mrb[31].mxu1  ;;  %v3968_v12 = vld [vmem:[%s5614_s1 + $0x52] ss:$0 sm:$0xff] }
0x25a2   :  { %v3572_v14 = vmul.f32 %v3571_v13, %v3571_v13 }
0x25a4   :  { %4469 = vmatmul.mubr.msk.f32.vlgmr.msra.gmra.mrb[36].mxu0 %vm118_vm1, %v3572_v14 }
0x2677   :  { %v3642_v23 = vpop.f32.mrb[36].mxu0 }
0x2678   :  { %v3643_v24 = vadd.f32 1e-05, %v3642_v23  ;;  %v4470_v18 = vpop.f32.mrb[37].mxu0 }
0x267a   :  { %4826 = vrsqrt.f32 %v3643_v24 }
0x2684   :  { %v4827_v19 = vpop.eup %4826 }
0x2685   :  { %v3647_v21 = vmul.f32 %v4827_v19, %v3571_v13 }
0x2687   :  { %v3653_v3 = vmul.f32 %v3962_v20, %v3647_v21 }
0x2689   :  { %v3659_v22 = vadd.f32 %v3963_v33, %v3653_v3 }
0x268b   :  { %v3661_v38 = vmul.f32 0.70710677, %v3659_v22  ;;  %v3660_v0 = vmul.f32 0.5, %v3659_v22 }
0x268d   :  { %v3664_v9 = vand.u32 2147483647, %v3661_v38  ;;  %vm3662_vm14 = vcmp.lt.f32.partialorder %v3661_v38, 0.0 }
0x268e   :  { %v3663_v50 = vsel %vm3662_vm14, -1.0, %v4845_v47 }
0x268f   :  { %v3665_v10 = vmul.f32 0.3275911, %v3664_v9  ;;  %v3678_v27 = vsub.f32 0.0, %v3664_v9 }
0x2691   :  { %v3666_v25 = vadd.f32 1.0, %v3665_v10  ;;  %v3679_v29 = vmul.f32 %v3678_v27, %v3664_v9 }
0x2693   :  { %4828 = vrcp.f32 %v3666_v25  ;;  %v3680_v59 = vmul.f32 1.442695, %v3679_v29 }
0x2695   :  { %4830 = vpow2.f32 %v3680_v59 }
0x269d   :  { %v4829_v28 = vpop.eup %4828 }
0x269e   :  { %v3669_v31 = vmul.f32 1.0614054, %v4829_v28 }
0x269f   :  { %v4831_v44 = vpop.eup %4830 }
0x26a0   :  { %v3670_v61 = vadd.f32 -1.4531521, %v3669_v31 }
0x26a2   :  { %v3671_v45 = vmul.f32 %v4829_v28, %v3670_v61 }
0x26a4   :  { %v3672_v36 = vadd.f32 1.4214138, %v3671_v45 }
0x26a6   :  { %v3673_v37 = vmul.f32 %v4829_v28, %v3672_v36 }
0x26a8   :  { %v3674_v46 = vadd.f32 -0.28449672, %v3673_v37 }
0x26aa   :  { %v3675_v39 = vmul.f32 %v4829_v28, %v3674_v46 }
0x26ac   :  { %v3676_v41 = vadd.f32 0.2548296, %v3675_v39 }
0x26ae   :  { %v3677_v42 = vmul.f32 %v4829_v28, %v3676_v41 }
0x26b0   :  { %v3682_v48 = vmul.f32 %v4831_v44, %v3677_v42 }
0x26b2   :  { %v3683_v49 = vsub.f32 1.0, %v3682_v48 }
0x26b4   :  { %v3684_v51 = vmul.f32 %v3683_v49, %v3663_v50 }
0x26b6   :  { %v3685_v52 = vadd.f32 1.0, %v3684_v51 }
0x26b8   :  { %v3686_v53 = vmul.f32 %v3685_v52, %v3660_v0 }
0x26ba   :  { %4480 = vmatmul.mubr.msk.f32.vlgmr.msra.gmra.mrb[32].mxu1 %vm118_vm1, %v3686_v53 }
0x278d   :  { %v3767_v55 = vpop.f32.mrb[32].mxu1 }
0x278e   :  { %v3768_v32 = vadd.f32 %v3964_v54, %v3767_v55  ;;  %v4481_v11 = vpop.f32.mrb[33].mxu1 }
0x2790   :  { %v3777_v56 = vsub.f32 0.0, %v3768_v32  ;;  %v3799_v40 = vand.u32 2147483647, %v3768_v32  ;;  %v3776_v4 = vmul.f32 %v3966_v1, %v3768_v32  ;;  %v3798_v26 = vmax.f32 %v3768_v32, 0.0 }
0x2792   :  { %v3778_v43 = vmul.f32 1.442695, %v3777_v56  ;;  %v3800_v57 = vsub.f32 0.0, %v3799_v40 }
0x2794   :  { %4832 = vpow2.f32 %v3778_v43  ;;  %v3801_v58 = vmul.f32 1.442695, %v3800_v57 }
0x2796   :  { %4834 = vpow2.f32 %v3801_v58 }
0x279e   :  { %v4833_v47 = vpop.eup %4832 }
0x279f   :  { %v3780_v60 = vadd.f32 1.0, %v4833_v47 }
0x27a0   :  { %v4835_v62 = vpop.eup %4834 }
0x27a1   :  { %4836 = vrcp.f32 %v3780_v60  ;;  %v3803_v34 = vadd.f32 1.0, %v4835_v62 }
0x27a2   :  { %4838 = vtanh.f32 %v3768_v32 }
0x27a3   :  { %4840 = vlog2.f32 %v3803_v34 }
0x27ab   :  { %v4837_v6 = vpop.eup %4836 }
0x27ac   :  { %v3788_v7 = vmul.f32 %v4837_v6, %v3967_v63  ;;  %v4839_v8 = vpop.eup %4838 }
0x27ad   :  { %v4841_v35 = vpop.eup %4840  ;;  %v3796_v16 = vmul.f32 %v4839_v8, %v3968_v12 }
0x27ae   :  { %v3789_v13 = vadd.f32 %v3788_v7, %v3776_v4  ;;  %v3805_v14 = vmul.f32 0.6931472, %v4841_v35 }
0x27b0   :  { %v3806_v17 = vadd.f32 %v3805_v14, %v3798_v26  ;;  %v3797_v5 = vadd.f32 %v3796_v16, %v3789_v13 }
0x27b2   :  { %v3812_v2 = vmul.f32 %v3969_v15, %v3806_v17 }
0x27b4   :  { %v3813_v30 = vadd.f32 %v3812_v2, %v3797_v5 }
0x27b6   :  { %3815 = vst.msk [vmem:[%s5621_s7] sm:$0x3] %vm3814_vm15, %v3813_v30 }

</bundles_post_ra>
